<compile_context>
chip_gen: v7x
topology: tpu7x:2x2x1
jax: 0.10.0
libtpu: 0.0.40
codegen_flags: <defaults>
</compile_context>

<pallas_src>
import jax
import jax.numpy as jnp
from jax.experimental import pallas as pl
from jax.experimental.pallas import tpu as pltpu


# ----------------------------- kernels ------------------------------------------


def _conv3x3_stack(w_ref, b_ref, x_ref, pad_ref):
    """3x3 'same' conv as a VPU stencil over an in-kernel zero-padded scratch slab.

    w_ref:   SMEM (Cout*Cin*9,) conv weights, OIHW order.
    b_ref:   SMEM (Cout,) bias.
    x_ref:   VMEM (NB, Cin, H, W) input block (NB images).
    pad_ref: VMEM (NB, Cin, H+2, W+2) scratch for the zero halo.

    Returns y: (H, NB*Cout*W) f32 -- conv channels of all images stacked along the
    lane axis in (nb, co) order, bias folded into the accumulator init.
    """
    NB, Cin, H, W = x_ref.shape
    Cout = b_ref.shape[0]

    # In-kernel zero pad (stays in VMEM; no HBM pad pass in the wrapper).
    pad_ref[...] = jnp.zeros(pad_ref.shape, pad_ref.dtype)
    pad_ref[:, :, 1:H + 1, 1:W + 1] = x_ref[...]

    # Hoist ALL SMEM scalar reads out of the stencil loops (JAX does not CSE them).
    wv = [w_ref[i] for i in range(Cout * Cin * 9)]
    bv = [b_ref[i] for i in range(Cout)]

    accs = [[jnp.full((H, W), bv[co], jnp.float32) for co in range(Cout)]
            for _ in range(NB)]

    # TODO(synk): for H, W >~ 64 tile W into 128-lane chunks / use
    # lax.fori_loop(unroll=True) over ci to bound live vregs.
    for nb in range(NB):
        for ci in range(Cin):
            for dy in range(3):
                for dx in range(3):
                    # Shifted tap comes straight off the load path (static slice of
                    # the padded scratch ref), loaded once and reused for all Cout.
                    tap = pad_ref[nb, ci, dy:dy + H, dx:dx + W]
                    for co in range(Cout):
                        w = wv[((co * Cin + ci) * 3 + dy) * 3 + dx]
                        accs[nb][co] = accs[nb][co] + w * tap

    cols = [accs[nb][co] for nb in range(NB) for co in range(Cout)]
    return jnp.concatenate(cols, axis=1)                     # (H, NB*Cout*W)


def _conv_up_kernel(w_ref, b_ref, x_ref, wwk_ref, wh_ref, o_ref, pad_ref):
    """Fused conv3x3 + bilinear upsample for one batch block (NB images).

    wwk_ref: VMEM (NB*Cout*W, NB*Cout*Wout)  blockdiag(Ww^T)  W-interp matrix.
    wh_ref:  VMEM (Hout, H)                  H-interp matrix.
    o_ref:   VMEM (1, Hout, NB*Cout*Wout)    lane-dense output slab.
    """
    y = _conv3x3_stack(w_ref, b_ref, x_ref, pad_ref)         # (H, NB*Cout*W) f32
    mdt = wwk_ref.dtype                                      # bf16 on v6e/v7x
    # Two batched matmuls for ALL images/channels (never round-trips to HBM).
    t = jnp.dot(y.astype(mdt), wwk_ref[...],
                preferred_element_type=jnp.float32)          # (H, NB*Cout*Wout)
    out = jnp.dot(wh_ref[...], t.astype(mdt),
                  preferred_element_type=jnp.float32)        # (Hout, NB*Cout*Wout)
    o_ref[0] = out.astype(o_ref.dtype)


def _conv_only_kernel(w_ref, b_ref, x_ref, o_ref, pad_ref):
    """Conv3x3 only (size=None -> nn.Identity branch)."""
    o_ref[0] = _conv3x3_stack(w_ref, b_ref, x_ref, pad_ref).astype(o_ref.dtype)


# ----------------------------- wrapper ------------------------------------------


def _bilinear_matrix(out_size, in_size):
    """PyTorch nn.Upsample(mode='bilinear', align_corners=False) as a dense matrix."""
    scale = in_size / out_size
    i = jnp.arange(out_size, dtype=jnp.float32)
    src = (i + 0.5) * scale - 0.5
    src = jnp.maximum(src, 0.0)
    i0 = jnp.minimum(jnp.floor(src).astype(jnp.int32), in_size - 1)
    i1 = jnp.minimum(i0 + 1, in_size - 1)
    frac = src - i0.astype(jnp.float32)
    w0 = (1.0 - frac)[:, None] * jax.nn.one_hot(i0, in_size, dtype=jnp.float32)
    w1 = frac[:, None] * jax.nn.one_hot(i1, in_size, dtype=jnp.float32)
    return w0 + w1                                           # (out_size, in_size)


def _pick_batch_block(n):
    """Whole batch per step when small; keep the 'parallel' grid even for v7x."""
    if n <= 8:
        return n
    for nb in range(8, 0, -1):
        if n % nb == 0 and (n // nb) % 2 == 0:
            return nb
    return 1


def segmentation_head(x_nchw, weight_oihw, bias, size, dropout=0.0,
                      training=False, batch_block=None, mxu_dtype=jnp.bfloat16):
    """Forward pass of SegmentationHead. x: (N, Cin, H, W) float32 NCHW."""
    if training and dropout > 0.0:
        # TODO(synk): training-mode Dropout2d (per-channel masks via pltpu.prng_*)
        # is not implemented; inference-mode Dropout2d is the identity.
        raise NotImplementedError("training-mode Dropout2d (p>0) not implemented")

    N, Cin, H, W = x_nchw.shape
    Cout, cin_w, KH, KW = weight_oihw.shape
    assert (KH, KW) == (3, 3) and cin_w == Cin

    NB = batch_block if batch_block is not None else _pick_batch_block(N)
    assert N % NB == 0, "batch must be divisible by the batch block"
    G = N // NB
    K = NB * Cout

    x = x_nchw.astype(jnp.float32)
    w_flat = weight_oihw.astype(jnp.float32).reshape(-1)     # (Cout*Cin*9,), OIHW
    b_flat = bias.astype(jnp.float32).reshape(-1)            # (Cout,)

    smem = pl.BlockSpec(memory_space=pltpu.MemorySpace.SMEM)
    x_spec = pl.BlockSpec((NB, Cin, H, W), lambda g: (g, 0, 0, 0))
    scratch = [pltpu.VMEM((NB, Cin, H + 2, W + 2), jnp.float32)]
    cparams = pltpu.CompilerParams(dimension_semantics=("parallel",))

    if size is None:                                         # nn.Identity() branch
        out = pl.pallas_call(
            _conv_only_kernel,
            grid=(G,),
            out_shape=jax.ShapeDtypeStruct((G, H, K * W), jnp.float32),
            in_specs=[smem, smem, x_spec],
            out_specs=pl.BlockSpec((1, H, K * W), lambda g: (g, 0, 0)),
            scratch_shapes=scratch,
            compiler_params=cparams,
        )(w_flat, b_flat, x)
        out = out.reshape(G, H, NB, Cout, W).transpose(0, 2, 3, 1, 4)
        return out.reshape(N, Cout, H, W)

    Hout, Wout = size
    wh = _bilinear_matrix(Hout, H).astype(mxu_dtype)         # (Hout, H)
    wwT = _bilinear_matrix(Wout, W).T                        # (W, Wout)
    # Block-diagonal W-interp so the lane-stacked channels are upsampled in ONE
    # matmul: kron(I_K, Ww^T) has K copies of Ww^T on the diagonal.
    wwk = jnp.kron(jnp.eye(K, dtype=jnp.float32), wwT).astype(mxu_dtype)

    out = pl.pallas_call(
        _conv_up_kernel,
        grid=(G,),
        out_shape=jax.ShapeDtypeStruct((G, Hout, K * Wout), jnp.float32),
        in_specs=[
            smem,                                             # conv weights (SMEM)
            smem,                                             # bias         (SMEM)
            x_spec,                                           # image block
            pl.BlockSpec((K * W, K * Wout), lambda g: (0, 0)),  # resident interp
            pl.BlockSpec((Hout, H), lambda g: (0, 0)),
        ],
        out_specs=pl.BlockSpec((1, Hout, K * Wout), lambda g: (g, 0, 0)),
        scratch_shapes=scratch,
        compiler_params=cparams,
    )(w_flat, b_flat, x, wwk, wh)
    out = out.reshape(G, Hout, NB, Cout, Wout).transpose(0, 2, 3, 1, 4)
    return out.reshape(N, Cout, Hout, Wout)


# ----------------------------- reference & demo ---------------------------------


def _reference(x, weight, bias, size):
    conv = jax.lax.conv_general_dilated(
        x, weight, window_strides=(1, 1), padding=((1, 1), (1, 1)),
        dimension_numbers=("NCHW", "OIHW", "NCHW"),
        precision=jax.lax.Precision.HIGHEST)
    conv = conv + bias[None, :, None, None]
    if size is None:
        return conv
    Hout, Wout = size
    wh = _bilinear_matrix(Hout, conv.shape[2])
    ww = _bilinear_matrix(Wout, conv.shape[3])
    return jnp.einsum("Oh,nchw,Pw->ncOP", wh, conv, ww,
                      precision=jax.lax.Precision.HIGHEST)


if __name__ == "__main__":
    key = jax.random.PRNGKey(0)
    kx, kw, kb = jax.random.split(key, 3)

    N, Cin, H, W = 2, 4, 16, 16
    Cout = 2
    size = (32, 32)                 # tuple -> exercises the bilinear Upsample branch

    x = jax.random.normal(kx, (N, Cin, H, W), dtype=jnp.float32)

    # Deterministic Conv2d-style init: U(-b, b), b = 1/sqrt(fan_in)
    fan_in = Cin * 3 * 3
    bound = 1.0 / (fan_in ** 0.5)
    weight = jax.random.uniform(kw, (Cout, Cin, 3, 3), jnp.float32, -bound, bound)
    bias = jax.random.uniform(kb, (Cout,), jnp.float32, -bound, bound)

    ref = _reference(x, weight, bias, size)

    # Upsample branch, bf16 MXU inputs (recommended v6e/v7x config; f32 accumulate).
    out = segmentation_head(x, weight, bias, size, dropout=0.0)
    out = jax.block_until_ready(out)
    assert out.shape == (N, Cout, size[0], size[1]), out.shape
    assert bool(jnp.all(jnp.isfinite(out)))
    # bf16 interp weights / matmul inputs relax the tolerance from 2e-3.
    assert bool(jnp.allclose(out, ref, atol=3e-2, rtol=2e-2)), \
        float(jnp.max(jnp.abs(out - ref)))

    # Upsample branch, strict f32 MXU inputs.
    out_f32 = jax.block_until_ready(
        segmentation_head(x, weight, bias, size, mxu_dtype=jnp.float32))
    assert bool(jnp.allclose(out_f32, ref, atol=2e-3, rtol=2e-3)), \
        float(jnp.max(jnp.abs(out_f32 - ref)))

    # Identity branch (size=None).
    out_id = jax.block_until_ready(segmentation_head(x, weight, bias, None))
    assert out_id.shape == (N, Cout, H, W), out_id.shape
    ref_id = _reference(x, weight, bias, None)
    assert bool(jnp.allclose(out_id, ref_id, atol=2e-3, rtol=2e-3)), \
        float(jnp.max(jnp.abs(out_id - ref_id)))

    print("KERNEL_OK")
</pallas_src>

<mosaic_0001>
module attributes {stable_mosaic.version = 11 : i64} {
  func.func @_conv_up_kernel(%arg0: i32, %arg1: memref<72xf32, #tpu.memory_space<smem>>, %arg2: memref<2xf32, #tpu.memory_space<smem>>, %arg3: memref<2x4x16x16xf32, #tpu.memory_space<vmem>>, %arg4: memref<64x128xbf16, #tpu.memory_space<vmem>>, %arg5: memref<32x16xbf16, #tpu.memory_space<vmem>>, %arg6: memref<1x32x128xf32, #tpu.memory_space<vmem>>, %arg7: memref<2x4x18x18xf32, #tpu.memory_space<vmem>>) attributes {dimension_semantics = [#tpu.dimension_semantics<parallel>], iteration_bounds = array<i64: 1>, scalar_prefetch = 0 : i64, scratch_operands = 1 : i64, tpu.core_type = #tpu.core_type<tc>, window_params = [{transform_indices = @transform_0, window_bounds = array<i64: 72>}, {transform_indices = @transform_1, window_bounds = array<i64: 2>}, {transform_indices = @transform_2, window_bounds = array<i64: 2, 4, 16, 16>}, {pipeline_mode = #tpu.pipeline_mode<synchronous>, transform_indices = @transform_3, window_bounds = array<i64: 64, 128>}, {pipeline_mode = #tpu.pipeline_mode<synchronous>, transform_indices = @transform_4, window_bounds = array<i64: 32, 16>}, {transform_indices = @transform_5, window_bounds = array<i64: 1, 32, 128>}]} {
    %cst = arith.constant 0.000000e+00 : f32
    %0 = vector.broadcast %cst : f32 to vector<2x4x18x18xf32>
    %c0 = arith.constant 0 : index
    %c0_0 = arith.constant 0 : index
    %c0_1 = arith.constant 0 : index
    %c0_2 = arith.constant 0 : index
    %1 = vector.load %arg7[%c0, %c0_0, %c0_1, %c0_2] : memref<2x4x18x18xf32, #tpu.memory_space<vmem>>, vector<2x4x18x18xf32>
    tpu.vector_store %arg7[%c0, %c0_0, %c0_1, %c0_2], %0 {strides = array<i32>} : memref<2x4x18x18xf32, #tpu.memory_space<vmem>>, vector<2x4x18x18xf32>,
    %c0_3 = arith.constant 0 : index
    %c0_4 = arith.constant 0 : index
    %c0_5 = arith.constant 0 : index
    %c0_6 = arith.constant 0 : index
    %2 = vector.load %arg3[%c0_3, %c0_4, %c0_5, %c0_6] : memref<2x4x16x16xf32, #tpu.memory_space<vmem>>, vector<2x4x16x16xf32>
    %c0_7 = arith.constant 0 : index
    %c0_8 = arith.constant 0 : index
    %c1 = arith.constant 1 : index
    %c1_9 = arith.constant 1 : index
    %3 = vector.load %arg7[%c0_7, %c0_8, %c1, %c1_9] : memref<2x4x18x18xf32, #tpu.memory_space<vmem>>, vector<2x4x16x16xf32>
    tpu.vector_store %arg7[%c0_7, %c0_8, %c1, %c1_9], %2 {strides = array<i32>} : memref<2x4x18x18xf32, #tpu.memory_space<vmem>>, vector<2x4x16x16xf32>,
    %c0_10 = arith.constant 0 : index
    %4 = memref.load %arg1[%c0_10] : memref<72xf32, #tpu.memory_space<smem>>
    %c1_11 = arith.constant 1 : index
    %5 = memref.load %arg1[%c1_11] : memref<72xf32, #tpu.memory_space<smem>>
    %c2 = arith.constant 2 : index
    %6 = memref.load %arg1[%c2] : memref<72xf32, #tpu.memory_space<smem>>
    %c3 = arith.constant 3 : index
    %7 = memref.load %arg1[%c3] : memref<72xf32, #tpu.memory_space<smem>>
    %c4 = arith.constant 4 : index
    %8 = memref.load %arg1[%c4] : memref<72xf32, #tpu.memory_space<smem>>
    %c5 = arith.constant 5 : index
    %9 = memref.load %arg1[%c5] : memref<72xf32, #tpu.memory_space<smem>>
    %c6 = arith.constant 6 : index
    %10 = memref.load %arg1[%c6] : memref<72xf32, #tpu.memory_space<smem>>
    %c7 = arith.constant 7 : index
    %11 = memref.load %arg1[%c7] : memref<72xf32, #tpu.memory_space<smem>>
    %c8 = arith.constant 8 : index
    %12 = memref.load %arg1[%c8] : memref<72xf32, #tpu.memory_space<smem>>
    %c9 = arith.constant 9 : index
    %13 = memref.load %arg1[%c9] : memref<72xf32, #tpu.memory_space<smem>>
    %c10 = arith.constant 10 : index
    %14 = memref.load %arg1[%c10] : memref<72xf32, #tpu.memory_space<smem>>
    %c11 = arith.constant 11 : index
    %15 = memref.load %arg1[%c11] : memref<72xf32, #tpu.memory_space<smem>>
    %c12 = arith.constant 12 : index
    %16 = memref.load %arg1[%c12] : memref<72xf32, #tpu.memory_space<smem>>
    %c13 = arith.constant 13 : index
    %17 = memref.load %arg1[%c13] : memref<72xf32, #tpu.memory_space<smem>>
    %c14 = arith.constant 14 : index
    %18 = memref.load %arg1[%c14] : memref<72xf32, #tpu.memory_space<smem>>
    %c15 = arith.constant 15 : index
    %19 = memref.load %arg1[%c15] : memref<72xf32, #tpu.memory_space<smem>>
    %c16 = arith.constant 16 : index
    %20 = memref.load %arg1[%c16] : memref<72xf32, #tpu.memory_space<smem>>
    %c17 = arith.constant 17 : index
    %21 = memref.load %arg1[%c17] : memref<72xf32, #tpu.memory_space<smem>>
    %c18 = arith.constant 18 : index
    %22 = memref.load %arg1[%c18] : memref<72xf32, #tpu.memory_space<smem>>
    %c19 = arith.constant 19 : index
    %23 = memref.load %arg1[%c19] : memref<72xf32, #tpu.memory_space<smem>>
    %c20 = arith.constant 20 : index
    %24 = memref.load %arg1[%c20] : memref<72xf32, #tpu.memory_space<smem>>
    %c21 = arith.constant 21 : index
    %25 = memref.load %arg1[%c21] : memref<72xf32, #tpu.memory_space<smem>>
    %c22 = arith.constant 22 : index
    %26 = memref.load %arg1[%c22] : memref<72xf32, #tpu.memory_space<smem>>
    %c23 = arith.constant 23 : index
    %27 = memref.load %arg1[%c23] : memref<72xf32, #tpu.memory_space<smem>>
    %c24 = arith.constant 24 : index
    %28 = memref.load %arg1[%c24] : memref<72xf32, #tpu.memory_space<smem>>
    %c25 = arith.constant 25 : index
    %29 = memref.load %arg1[%c25] : memref<72xf32, #tpu.memory_space<smem>>
    %c26 = arith.constant 26 : index
    %30 = memref.load %arg1[%c26] : memref<72xf32, #tpu.memory_space<smem>>
    %c27 = arith.constant 27 : index
    %31 = memref.load %arg1[%c27] : memref<72xf32, #tpu.memory_space<smem>>
    %c28 = arith.constant 28 : index
    %32 = memref.load %arg1[%c28] : memref<72xf32, #tpu.memory_space<smem>>
    %c29 = arith.constant 29 : index
    %33 = memref.load %arg1[%c29] : memref<72xf32, #tpu.memory_space<smem>>
    %c30 = arith.constant 30 : index
    %34 = memref.load %arg1[%c30] : memref<72xf32, #tpu.memory_space<smem>>
    %c31 = arith.constant 31 : index
    %35 = memref.load %arg1[%c31] : memref<72xf32, #tpu.memory_space<smem>>
    %c32 = arith.constant 32 : index
    %36 = memref.load %arg1[%c32] : memref<72xf32, #tpu.memory_space<smem>>
    %c33 = arith.constant 33 : index
    %37 = memref.load %arg1[%c33] : memref<72xf32, #tpu.memory_space<smem>>
    %c34 = arith.constant 34 : index
    %38 = memref.load %arg1[%c34] : memref<72xf32, #tpu.memory_space<smem>>
    %c35 = arith.constant 35 : index
    %39 = memref.load %arg1[%c35] : memref<72xf32, #tpu.memory_space<smem>>
    %c36 = arith.constant 36 : index
    %40 = memref.load %arg1[%c36] : memref<72xf32, #tpu.memory_space<smem>>
    %c37 = arith.constant 37 : index
    %41 = memref.load %arg1[%c37] : memref<72xf32, #tpu.memory_space<smem>>
    %c38 = arith.constant 38 : index
    %42 = memref.load %arg1[%c38] : memref<72xf32, #tpu.memory_space<smem>>
    %c39 = arith.constant 39 : index
    %43 = memref.load %arg1[%c39] : memref<72xf32, #tpu.memory_space<smem>>
    %c40 = arith.constant 40 : index
    %44 = memref.load %arg1[%c40] : memref<72xf32, #tpu.memory_space<smem>>
    %c41 = arith.constant 41 : index
    %45 = memref.load %arg1[%c41] : memref<72xf32, #tpu.memory_space<smem>>
    %c42 = arith.constant 42 : index
    %46 = memref.load %arg1[%c42] : memref<72xf32, #tpu.memory_space<smem>>
    %c43 = arith.constant 43 : index
    %47 = memref.load %arg1[%c43] : memref<72xf32, #tpu.memory_space<smem>>
    %c44 = arith.constant 44 : index
    %48 = memref.load %arg1[%c44] : memref<72xf32, #tpu.memory_space<smem>>
    %c45 = arith.constant 45 : index
    %49 = memref.load %arg1[%c45] : memref<72xf32, #tpu.memory_space<smem>>
    %c46 = arith.constant 46 : index
    %50 = memref.load %arg1[%c46] : memref<72xf32, #tpu.memory_space<smem>>
    %c47 = arith.constant 47 : index
    %51 = memref.load %arg1[%c47] : memref<72xf32, #tpu.memory_space<smem>>
    %c48 = arith.constant 48 : index
    %52 = memref.load %arg1[%c48] : memref<72xf32, #tpu.memory_space<smem>>
    %c49 = arith.constant 49 : index
    %53 = memref.load %arg1[%c49] : memref<72xf32, #tpu.memory_space<smem>>
    %c50 = arith.constant 50 : index
    %54 = memref.load %arg1[%c50] : memref<72xf32, #tpu.memory_space<smem>>
    %c51 = arith.constant 51 : index
    %55 = memref.load %arg1[%c51] : memref<72xf32, #tpu.memory_space<smem>>
    %c52 = arith.constant 52 : index
    %56 = memref.load %arg1[%c52] : memref<72xf32, #tpu.memory_space<smem>>
    %c53 = arith.constant 53 : index
    %57 = memref.load %arg1[%c53] : memref<72xf32, #tpu.memory_space<smem>>
    %c54 = arith.constant 54 : index
    %58 = memref.load %arg1[%c54] : memref<72xf32, #tpu.memory_space<smem>>
    %c55 = arith.constant 55 : index
    %59 = memref.load %arg1[%c55] : memref<72xf32, #tpu.memory_space<smem>>
    %c56 = arith.constant 56 : index
    %60 = memref.load %arg1[%c56] : memref<72xf32, #tpu.memory_space<smem>>
    %c57 = arith.constant 57 : index
    %61 = memref.load %arg1[%c57] : memref<72xf32, #tpu.memory_space<smem>>
    %c58 = arith.constant 58 : index
    %62 = memref.load %arg1[%c58] : memref<72xf32, #tpu.memory_space<smem>>
    %c59 = arith.constant 59 : index
    %63 = memref.load %arg1[%c59] : memref<72xf32, #tpu.memory_space<smem>>
    %c60 = arith.constant 60 : index
    %64 = memref.load %arg1[%c60] : memref<72xf32, #tpu.memory_space<smem>>
    %c61 = arith.constant 61 : index
    %65 = memref.load %arg1[%c61] : memref<72xf32, #tpu.memory_space<smem>>
    %c62 = arith.constant 62 : index
    %66 = memref.load %arg1[%c62] : memref<72xf32, #tpu.memory_space<smem>>
    %c63 = arith.constant 63 : index
    %67 = memref.load %arg1[%c63] : memref<72xf32, #tpu.memory_space<smem>>
    %c64 = arith.constant 64 : index
    %68 = memref.load %arg1[%c64] : memref<72xf32, #tpu.memory_space<smem>>
    %c65 = arith.constant 65 : index
    %69 = memref.load %arg1[%c65] : memref<72xf32, #tpu.memory_space<smem>>
    %c66 = arith.constant 66 : index
    %70 = memref.load %arg1[%c66] : memref<72xf32, #tpu.memory_space<smem>>
    %c67 = arith.constant 67 : index
    %71 = memref.load %arg1[%c67] : memref<72xf32, #tpu.memory_space<smem>>
    %c68 = arith.constant 68 : index
    %72 = memref.load %arg1[%c68] : memref<72xf32, #tpu.memory_space<smem>>
    %c69 = arith.constant 69 : index
    %73 = memref.load %arg1[%c69] : memref<72xf32, #tpu.memory_space<smem>>
    %c70 = arith.constant 70 : index
    %74 = memref.load %arg1[%c70] : memref<72xf32, #tpu.memory_space<smem>>
    %c71 = arith.constant 71 : index
    %75 = memref.load %arg1[%c71] : memref<72xf32, #tpu.memory_space<smem>>
    %c0_12 = arith.constant 0 : index
    %76 = memref.load %arg2[%c0_12] : memref<2xf32, #tpu.memory_space<smem>>
    %c1_13 = arith.constant 1 : index
    %77 = memref.load %arg2[%c1_13] : memref<2xf32, #tpu.memory_space<smem>>
    %78 = vector.broadcast %76 : f32 to vector<16x16xf32>
    %79 = vector.broadcast %77 : f32 to vector<16x16xf32>
    %80 = vector.broadcast %76 : f32 to vector<16x16xf32>
    %81 = vector.broadcast %77 : f32 to vector<16x16xf32>
    %c0_14 = arith.constant 0 : index
    %c0_15 = arith.constant 0 : index
    %c0_16 = arith.constant 0 : index
    %c0_17 = arith.constant 0 : index
    %82 = vector.load %arg7[%c0_14, %c0_15, %c0_16, %c0_17] : memref<2x4x18x18xf32, #tpu.memory_space<vmem>>, vector<1x1x16x16xf32>
    %83 = vector.shape_cast %82 : vector<1x1x16x16xf32> to vector<16x16xf32>
    %84 = vector.broadcast %4 : f32 to vector<16x16xf32>
    %85 = arith.mulf %84, %83 : vector<16x16xf32>
    %86 = arith.addf %78, %85 : vector<16x16xf32>
    %87 = vector.broadcast %40 : f32 to vector<16x16xf32>
    %88 = arith.mulf %87, %83 : vector<16x16xf32>
    %89 = arith.addf %79, %88 : vector<16x16xf32>
    %c0_18 = arith.constant 0 : index
    %c0_19 = arith.constant 0 : index
    %c0_20 = arith.constant 0 : index
    %c1_21 = arith.constant 1 : index
    %90 = vector.load %arg7[%c0_18, %c0_19, %c0_20, %c1_21] : memref<2x4x18x18xf32, #tpu.memory_space<vmem>>, vector<1x1x16x16xf32>
    %91 = vector.shape_cast %90 : vector<1x1x16x16xf32> to vector<16x16xf32>
    %92 = vector.broadcast %5 : f32 to vector<16x16xf32>
    %93 = arith.mulf %92, %91 : vector<16x16xf32>
    %94 = arith.addf %86, %93 : vector<16x16xf32>
    %95 = vector.broadcast %41 : f32 to vector<16x16xf32>
    %96 = arith.mulf %95, %91 : vector<16x16xf32>
    %97 = arith.addf %89, %96 : vector<16x16xf32>
    %c0_22 = arith.constant 0 : index
    %c0_23 = arith.constant 0 : index
    %c0_24 = arith.constant 0 : index
    %c2_25 = arith.constant 2 : index
    %98 = vector.load %arg7[%c0_22, %c0_23, %c0_24, %c2_25] : memref<2x4x18x18xf32, #tpu.memory_space<vmem>>, vector<1x1x16x16xf32>
    %99 = vector.shape_cast %98 : vector<1x1x16x16xf32> to vector<16x16xf32>
    %100 = vector.broadcast %6 : f32 to vector<16x16xf32>
    %101 = arith.mulf %100, %99 : vector<16x16xf32>
    %102 = arith.addf %94, %101 : vector<16x16xf32>
    %103 = vector.broadcast %42 : f32 to vector<16x16xf32>
    %104 = arith.mulf %103, %99 : vector<16x16xf32>
    %105 = arith.addf %97, %104 : vector<16x16xf32>
    %c0_26 = arith.constant 0 : index
    %c0_27 = arith.constant 0 : index
    %c1_28 = arith.constant 1 : index
    %c0_29 = arith.constant 0 : index
    %106 = vector.load %arg7[%c0_26, %c0_27, %c1_28, %c0_29] : memref<2x4x18x18xf32, #tpu.memory_space<vmem>>, vector<1x1x16x16xf32>
    %107 = vector.shape_cast %106 : vector<1x1x16x16xf32> to vector<16x16xf32>
    %108 = vector.broadcast %7 : f32 to vector<16x16xf32>
    %109 = arith.mulf %108, %107 : vector<16x16xf32>
    %110 = arith.addf %102, %109 : vector<16x16xf32>
    %111 = vector.broadcast %43 : f32 to vector<16x16xf32>
    %112 = arith.mulf %111, %107 : vector<16x16xf32>
    %113 = arith.addf %105, %112 : vector<16x16xf32>
    %c0_30 = arith.constant 0 : index
    %c0_31 = arith.constant 0 : index
    %c1_32 = arith.constant 1 : index
    %c1_33 = arith.constant 1 : index
    %114 = vector.load %arg7[%c0_30, %c0_31, %c1_32, %c1_33] : memref<2x4x18x18xf32, #tpu.memory_space<vmem>>, vector<1x1x16x16xf32>
    %115 = vector.shape_cast %114 : vector<1x1x16x16xf32> to vector<16x16xf32>
    %116 = vector.broadcast %8 : f32 to vector<16x16xf32>
    %117 = arith.mulf %116, %115 : vector<16x16xf32>
    %118 = arith.addf %110, %117 : vector<16x16xf32>
    %119 = vector.broadcast %44 : f32 to vector<16x16xf32>
    %120 = arith.mulf %119, %115 : vector<16x16xf32>
    %121 = arith.addf %113, %120 : vector<16x16xf32>
    %c0_34 = arith.constant 0 : index
    %c0_35 = arith.constant 0 : index
    %c1_36 = arith.constant 1 : index
    %c2_37 = arith.constant 2 : index
    %122 = vector.load %arg7[%c0_34, %c0_35, %c1_36, %c2_37] : memref<2x4x18x18xf32, #tpu.memory_space<vmem>>, vector<1x1x16x16xf32>
    %123 = vector.shape_cast %122 : vector<1x1x16x16xf32> to vector<16x16xf32>
    %124 = vector.broadcast %9 : f32 to vector<16x16xf32>
    %125 = arith.mulf %124, %123 : vector<16x16xf32>
    %126 = arith.addf %118, %125 : vector<16x16xf32>
    %127 = vector.broadcast %45 : f32 to vector<16x16xf32>
    %128 = arith.mulf %127, %123 : vector<16x16xf32>
    %129 = arith.addf %121, %128 : vector<16x16xf32>
    %c0_38 = arith.constant 0 : index
    %c0_39 = arith.constant 0 : index
    %c2_40 = arith.constant 2 : index
    %c0_41 = arith.constant 0 : index
    %130 = vector.load %arg7[%c0_38, %c0_39, %c2_40, %c0_41] : memref<2x4x18x18xf32, #tpu.memory_space<vmem>>, vector<1x1x16x16xf32>
    %131 = vector.shape_cast %130 : vector<1x1x16x16xf32> to vector<16x16xf32>
    %132 = vector.broadcast %10 : f32 to vector<16x16xf32>
    %133 = arith.mulf %132, %131 : vector<16x16xf32>
    %134 = arith.addf %126, %133 : vector<16x16xf32>
    %135 = vector.broadcast %46 : f32 to vector<16x16xf32>
    %136 = arith.mulf %135, %131 : vector<16x16xf32>
    %137 = arith.addf %129, %136 : vector<16x16xf32>
    %c0_42 = arith.constant 0 : index
    %c0_43 = arith.constant 0 : index
    %c2_44 = arith.constant 2 : index
    %c1_45 = arith.constant 1 : index
    %138 = vector.load %arg7[%c0_42, %c0_43, %c2_44, %c1_45] : memref<2x4x18x18xf32, #tpu.memory_space<vmem>>, vector<1x1x16x16xf32>
    %139 = vector.shape_cast %138 : vector<1x1x16x16xf32> to vector<16x16xf32>
    %140 = vector.broadcast %11 : f32 to vector<16x16xf32>
    %141 = arith.mulf %140, %139 : vector<16x16xf32>
    %142 = arith.addf %134, %141 : vector<16x16xf32>
    %143 = vector.broadcast %47 : f32 to vector<16x16xf32>
    %144 = arith.mulf %143, %139 : vector<16x16xf32>
    %145 = arith.addf %137, %144 : vector<16x16xf32>
    %c0_46 = arith.constant 0 : index
    %c0_47 = arith.constant 0 : index
    %c2_48 = arith.constant 2 : index
    %c2_49 = arith.constant 2 : index
    %146 = vector.load %arg7[%c0_46, %c0_47, %c2_48, %c2_49] : memref<2x4x18x18xf32, #tpu.memory_space<vmem>>, vector<1x1x16x16xf32>
    %147 = vector.shape_cast %146 : vector<1x1x16x16xf32> to vector<16x16xf32>
    %148 = vector.broadcast %12 : f32 to vector<16x16xf32>
    %149 = arith.mulf %148, %147 : vector<16x16xf32>
    %150 = arith.addf %142, %149 : vector<16x16xf32>
    %151 = vector.broadcast %48 : f32 to vector<16x16xf32>
    %152 = arith.mulf %151, %147 : vector<16x16xf32>
    %153 = arith.addf %145, %152 : vector<16x16xf32>
    %c0_50 = arith.constant 0 : index
    %c1_51 = arith.constant 1 : index
    %c0_52 = arith.constant 0 : index
    %c0_53 = arith.constant 0 : index
    %154 = vector.load %arg7[%c0_50, %c1_51, %c0_52, %c0_53] : memref<2x4x18x18xf32, #tpu.memory_space<vmem>>, vector<1x1x16x16xf32>
    %155 = vector.shape_cast %154 : vector<1x1x16x16xf32> to vector<16x16xf32>
    %156 = vector.broadcast %13 : f32 to vector<16x16xf32>
    %157 = arith.mulf %156, %155 : vector<16x16xf32>
    %158 = arith.addf %150, %157 : vector<16x16xf32>
    %159 = vector.broadcast %49 : f32 to vector<16x16xf32>
    %160 = arith.mulf %159, %155 : vector<16x16xf32>
    %161 = arith.addf %153, %160 : vector<16x16xf32>
    %c0_54 = arith.constant 0 : index
    %c1_55 = arith.constant 1 : index
    %c0_56 = arith.constant 0 : index
    %c1_57 = arith.constant 1 : index
    %162 = vector.load %arg7[%c0_54, %c1_55, %c0_56, %c1_57] : memref<2x4x18x18xf32, #tpu.memory_space<vmem>>, vector<1x1x16x16xf32>
    %163 = vector.shape_cast %162 : vector<1x1x16x16xf32> to vector<16x16xf32>
    %164 = vector.broadcast %14 : f32 to vector<16x16xf32>
    %165 = arith.mulf %164, %163 : vector<16x16xf32>
    %166 = arith.addf %158, %165 : vector<16x16xf32>
    %167 = vector.broadcast %50 : f32 to vector<16x16xf32>
    %168 = arith.mulf %167, %163 : vector<16x16xf32>
    %169 = arith.addf %161, %168 : vector<16x16xf32>
    %c0_58 = arith.constant 0 : index
    %c1_59 = arith.constant 1 : index
    %c0_60 = arith.constant 0 : index
    %c2_61 = arith.constant 2 : index
    %170 = vector.load %arg7[%c0_58, %c1_59, %c0_60, %c2_61] : memref<2x4x18x18xf32, #tpu.memory_space<vmem>>, vector<1x1x16x16xf32>
    %171 = vector.shape_cast %170 : vector<1x1x16x16xf32> to vector<16x16xf32>
    %172 = vector.broadcast %15 : f32 to vector<16x16xf32>
    %173 = arith.mulf %172, %171 : vector<16x16xf32>
    %174 = arith.addf %166, %173 : vector<16x16xf32>
    %175 = vector.broadcast %51 : f32 to vector<16x16xf32>
    %176 = arith.mulf %175, %171 : vector<16x16xf32>
    %177 = arith.addf %169, %176 : vector<16x16xf32>
    %c0_62 = arith.constant 0 : index
    %c1_63 = arith.constant 1 : index
    %c1_64 = arith.constant 1 : index
    %c0_65 = arith.constant 0 : index
    %178 = vector.load %arg7[%c0_62, %c1_63, %c1_64, %c0_65] : memref<2x4x18x18xf32, #tpu.memory_space<vmem>>, vector<1x1x16x16xf32>
    %179 = vector.shape_cast %178 : vector<1x1x16x16xf32> to vector<16x16xf32>
    %180 = vector.broadcast %16 : f32 to vector<16x16xf32>
    %181 = arith.mulf %180, %179 : vector<16x16xf32>
    %182 = arith.addf %174, %181 : vector<16x16xf32>
    %183 = vector.broadcast %52 : f32 to vector<16x16xf32>
    %184 = arith.mulf %183, %179 : vector<16x16xf32>
    %185 = arith.addf %177, %184 : vector<16x16xf32>
    %c0_66 = arith.constant 0 : index
    %c1_67 = arith.constant 1 : index
    %c1_68 = arith.constant 1 : index
    %c1_69 = arith.constant 1 : index
    %186 = vector.load %arg7[%c0_66, %c1_67, %c1_68, %c1_69] : memref<2x4x18x18xf32, #tpu.memory_space<vmem>>, vector<1x1x16x16xf32>
    %187 = vector.shape_cast %186 : vector<1x1x16x16xf32> to vector<16x16xf32>
    %188 = vector.broadcast %17 : f32 to vector<16x16xf32>
    %189 = arith.mulf %188, %187 : vector<16x16xf32>
    %190 = arith.addf %182, %189 : vector<16x16xf32>
    %191 = vector.broadcast %53 : f32 to vector<16x16xf32>
    %192 = arith.mulf %191, %187 : vector<16x16xf32>
    %193 = arith.addf %185, %192 : vector<16x16xf32>
    %c0_70 = arith.constant 0 : index
    %c1_71 = arith.constant 1 : index
    %c1_72 = arith.constant 1 : index
    %c2_73 = arith.constant 2 : index
    %194 = vector.load %arg7[%c0_70, %c1_71, %c1_72, %c2_73] : memref<2x4x18x18xf32, #tpu.memory_space<vmem>>, vector<1x1x16x16xf32>
    %195 = vector.shape_cast %194 : vector<1x1x16x16xf32> to vector<16x16xf32>
    %196 = vector.broadcast %18 : f32 to vector<16x16xf32>
    %197 = arith.mulf %196, %195 : vector<16x16xf32>
    %198 = arith.addf %190, %197 : vector<16x16xf32>
    %199 = vector.broadcast %54 : f32 to vector<16x16xf32>
    %200 = arith.mulf %199, %195 : vector<16x16xf32>
    %201 = arith.addf %193, %200 : vector<16x16xf32>
    %c0_74 = arith.constant 0 : index
    %c1_75 = arith.constant 1 : index
    %c2_76 = arith.constant 2 : index
    %c0_77 = arith.constant 0 : index
    %202 = vector.load %arg7[%c0_74, %c1_75, %c2_76, %c0_77] : memref<2x4x18x18xf32, #tpu.memory_space<vmem>>, vector<1x1x16x16xf32>
    %203 = vector.shape_cast %202 : vector<1x1x16x16xf32> to vector<16x16xf32>
    %204 = vector.broadcast %19 : f32 to vector<16x16xf32>
    %205 = arith.mulf %204, %203 : vector<16x16xf32>
    %206 = arith.addf %198, %205 : vector<16x16xf32>
    %207 = vector.broadcast %55 : f32 to vector<16x16xf32>
    %208 = arith.mulf %207, %203 : vector<16x16xf32>
    %209 = arith.addf %201, %208 : vector<16x16xf32>
    %c0_78 = arith.constant 0 : index
    %c1_79 = arith.constant 1 : index
    %c2_80 = arith.constant 2 : index
    %c1_81 = arith.constant 1 : index
    %210 = vector.load %arg7[%c0_78, %c1_79, %c2_80, %c1_81] : memref<2x4x18x18xf32, #tpu.memory_space<vmem>>, vector<1x1x16x16xf32>
    %211 = vector.shape_cast %210 : vector<1x1x16x16xf32> to vector<16x16xf32>
    %212 = vector.broadcast %20 : f32 to vector<16x16xf32>
    %213 = arith.mulf %212, %211 : vector<16x16xf32>
    %214 = arith.addf %206, %213 : vector<16x16xf32>
    %215 = vector.broadcast %56 : f32 to vector<16x16xf32>
    %216 = arith.mulf %215, %211 : vector<16x16xf32>
    %217 = arith.addf %209, %216 : vector<16x16xf32>
    %c0_82 = arith.constant 0 : index
    %c1_83 = arith.constant 1 : index
    %c2_84 = arith.constant 2 : index
    %c2_85 = arith.constant 2 : index
    %218 = vector.load %arg7[%c0_82, %c1_83, %c2_84, %c2_85] : memref<2x4x18x18xf32, #tpu.memory_space<vmem>>, vector<1x1x16x16xf32>
    %219 = vector.shape_cast %218 : vector<1x1x16x16xf32> to vector<16x16xf32>
    %220 = vector.broadcast %21 : f32 to vector<16x16xf32>
    %221 = arith.mulf %220, %219 : vector<16x16xf32>
    %222 = arith.addf %214, %221 : vector<16x16xf32>
    %223 = vector.broadcast %57 : f32 to vector<16x16xf32>
    %224 = arith.mulf %223, %219 : vector<16x16xf32>
    %225 = arith.addf %217, %224 : vector<16x16xf32>
    %c0_86 = arith.constant 0 : index
    %c2_87 = arith.constant 2 : index
    %c0_88 = arith.constant 0 : index
    %c0_89 = arith.constant 0 : index
    %226 = vector.load %arg7[%c0_86, %c2_87, %c0_88, %c0_89] : memref<2x4x18x18xf32, #tpu.memory_space<vmem>>, vector<1x1x16x16xf32>
    %227 = vector.shape_cast %226 : vector<1x1x16x16xf32> to vector<16x16xf32>
    %228 = vector.broadcast %22 : f32 to vector<16x16xf32>
    %229 = arith.mulf %228, %227 : vector<16x16xf32>
    %230 = arith.addf %222, %229 : vector<16x16xf32>
    %231 = vector.broadcast %58 : f32 to vector<16x16xf32>
    %232 = arith.mulf %231, %227 : vector<16x16xf32>
    %233 = arith.addf %225, %232 : vector<16x16xf32>
    %c0_90 = arith.constant 0 : index
    %c2_91 = arith.constant 2 : index
    %c0_92 = arith.constant 0 : index
    %c1_93 = arith.constant 1 : index
    %234 = vector.load %arg7[%c0_90, %c2_91, %c0_92, %c1_93] : memref<2x4x18x18xf32, #tpu.memory_space<vmem>>, vector<1x1x16x16xf32>
    %235 = vector.shape_cast %234 : vector<1x1x16x16xf32> to vector<16x16xf32>
    %236 = vector.broadcast %23 : f32 to vector<16x16xf32>
    %237 = arith.mulf %236, %235 : vector<16x16xf32>
    %238 = arith.addf %230, %237 : vector<16x16xf32>
    %239 = vector.broadcast %59 : f32 to vector<16x16xf32>
    %240 = arith.mulf %239, %235 : vector<16x16xf32>
    %241 = arith.addf %233, %240 : vector<16x16xf32>
    %c0_94 = arith.constant 0 : index
    %c2_95 = arith.constant 2 : index
    %c0_96 = arith.constant 0 : index
    %c2_97 = arith.constant 2 : index
    %242 = vector.load %arg7[%c0_94, %c2_95, %c0_96, %c2_97] : memref<2x4x18x18xf32, #tpu.memory_space<vmem>>, vector<1x1x16x16xf32>
    %243 = vector.shape_cast %242 : vector<1x1x16x16xf32> to vector<16x16xf32>
    %244 = vector.broadcast %24 : f32 to vector<16x16xf32>
    %245 = arith.mulf %244, %243 : vector<16x16xf32>
    %246 = arith.addf %238, %245 : vector<16x16xf32>
    %247 = vector.broadcast %60 : f32 to vector<16x16xf32>
    %248 = arith.mulf %247, %243 : vector<16x16xf32>
    %249 = arith.addf %241, %248 : vector<16x16xf32>
    %c0_98 = arith.constant 0 : index
    %c2_99 = arith.constant 2 : index
    %c1_100 = arith.constant 1 : index
    %c0_101 = arith.constant 0 : index
    %250 = vector.load %arg7[%c0_98, %c2_99, %c1_100, %c0_101] : memref<2x4x18x18xf32, #tpu.memory_space<vmem>>, vector<1x1x16x16xf32>
    %251 = vector.shape_cast %250 : vector<1x1x16x16xf32> to vector<16x16xf32>
    %252 = vector.broadcast %25 : f32 to vector<16x16xf32>
    %253 = arith.mulf %252, %251 : vector<16x16xf32>
    %254 = arith.addf %246, %253 : vector<16x16xf32>
    %255 = vector.broadcast %61 : f32 to vector<16x16xf32>
    %256 = arith.mulf %255, %251 : vector<16x16xf32>
    %257 = arith.addf %249, %256 : vector<16x16xf32>
    %c0_102 = arith.constant 0 : index
    %c2_103 = arith.constant 2 : index
    %c1_104 = arith.constant 1 : index
    %c1_105 = arith.constant 1 : index
    %258 = vector.load %arg7[%c0_102, %c2_103, %c1_104, %c1_105] : memref<2x4x18x18xf32, #tpu.memory_space<vmem>>, vector<1x1x16x16xf32>
    %259 = vector.shape_cast %258 : vector<1x1x16x16xf32> to vector<16x16xf32>
    %260 = vector.broadcast %26 : f32 to vector<16x16xf32>
    %261 = arith.mulf %260, %259 : vector<16x16xf32>
    %262 = arith.addf %254, %261 : vector<16x16xf32>
    %263 = vector.broadcast %62 : f32 to vector<16x16xf32>
    %264 = arith.mulf %263, %259 : vector<16x16xf32>
    %265 = arith.addf %257, %264 : vector<16x16xf32>
    %c0_106 = arith.constant 0 : index
    %c2_107 = arith.constant 2 : index
    %c1_108 = arith.constant 1 : index
    %c2_109 = arith.constant 2 : index
    %266 = vector.load %arg7[%c0_106, %c2_107, %c1_108, %c2_109] : memref<2x4x18x18xf32, #tpu.memory_space<vmem>>, vector<1x1x16x16xf32>
    %267 = vector.shape_cast %266 : vector<1x1x16x16xf32> to vector<16x16xf32>
    %268 = vector.broadcast %27 : f32 to vector<16x16xf32>
    %269 = arith.mulf %268, %267 : vector<16x16xf32>
    %270 = arith.addf %262, %269 : vector<16x16xf32>
    %271 = vector.broadcast %63 : f32 to vector<16x16xf32>
    %272 = arith.mulf %271, %267 : vector<16x16xf32>
    %273 = arith.addf %265, %272 : vector<16x16xf32>
    %c0_110 = arith.constant 0 : index
    %c2_111 = arith.constant 2 : index
    %c2_112 = arith.constant 2 : index
    %c0_113 = arith.constant 0 : index
    %274 = vector.load %arg7[%c0_110, %c2_111, %c2_112, %c0_113] : memref<2x4x18x18xf32, #tpu.memory_space<vmem>>, vector<1x1x16x16xf32>
    %275 = vector.shape_cast %274 : vector<1x1x16x16xf32> to vector<16x16xf32>
    %276 = vector.broadcast %28 : f32 to vector<16x16xf32>
    %277 = arith.mulf %276, %275 : vector<16x16xf32>
    %278 = arith.addf %270, %277 : vector<16x16xf32>
    %279 = vector.broadcast %64 : f32 to vector<16x16xf32>
    %280 = arith.mulf %279, %275 : vector<16x16xf32>
    %281 = arith.addf %273, %280 : vector<16x16xf32>
    %c0_114 = arith.constant 0 : index
    %c2_115 = arith.constant 2 : index
    %c2_116 = arith.constant 2 : index
    %c1_117 = arith.constant 1 : index
    %282 = vector.load %arg7[%c0_114, %c2_115, %c2_116, %c1_117] : memref<2x4x18x18xf32, #tpu.memory_space<vmem>>, vector<1x1x16x16xf32>
    %283 = vector.shape_cast %282 : vector<1x1x16x16xf32> to vector<16x16xf32>
    %284 = vector.broadcast %29 : f32 to vector<16x16xf32>
    %285 = arith.mulf %284, %283 : vector<16x16xf32>
    %286 = arith.addf %278, %285 : vector<16x16xf32>
    %287 = vector.broadcast %65 : f32 to vector<16x16xf32>
    %288 = arith.mulf %287, %283 : vector<16x16xf32>
    %289 = arith.addf %281, %288 : vector<16x16xf32>
    %c0_118 = arith.constant 0 : index
    %c2_119 = arith.constant 2 : index
    %c2_120 = arith.constant 2 : index
    %c2_121 = arith.constant 2 : index
    %290 = vector.load %arg7[%c0_118, %c2_119, %c2_120, %c2_121] : memref<2x4x18x18xf32, #tpu.memory_space<vmem>>, vector<1x1x16x16xf32>
    %291 = vector.shape_cast %290 : vector<1x1x16x16xf32> to vector<16x16xf32>
    %292 = vector.broadcast %30 : f32 to vector<16x16xf32>
    %293 = arith.mulf %292, %291 : vector<16x16xf32>
    %294 = arith.addf %286, %293 : vector<16x16xf32>
    %295 = vector.broadcast %66 : f32 to vector<16x16xf32>
    %296 = arith.mulf %295, %291 : vector<16x16xf32>
    %297 = arith.addf %289, %296 : vector<16x16xf32>
    %c0_122 = arith.constant 0 : index
    %c3_123 = arith.constant 3 : index
    %c0_124 = arith.constant 0 : index
    %c0_125 = arith.constant 0 : index
    %298 = vector.load %arg7[%c0_122, %c3_123, %c0_124, %c0_125] : memref<2x4x18x18xf32, #tpu.memory_space<vmem>>, vector<1x1x16x16xf32>
    %299 = vector.shape_cast %298 : vector<1x1x16x16xf32> to vector<16x16xf32>
    %300 = vector.broadcast %31 : f32 to vector<16x16xf32>
    %301 = arith.mulf %300, %299 : vector<16x16xf32>
    %302 = arith.addf %294, %301 : vector<16x16xf32>
    %303 = vector.broadcast %67 : f32 to vector<16x16xf32>
    %304 = arith.mulf %303, %299 : vector<16x16xf32>
    %305 = arith.addf %297, %304 : vector<16x16xf32>
    %c0_126 = arith.constant 0 : index
    %c3_127 = arith.constant 3 : index
    %c0_128 = arith.constant 0 : index
    %c1_129 = arith.constant 1 : index
    %306 = vector.load %arg7[%c0_126, %c3_127, %c0_128, %c1_129] : memref<2x4x18x18xf32, #tpu.memory_space<vmem>>, vector<1x1x16x16xf32>
    %307 = vector.shape_cast %306 : vector<1x1x16x16xf32> to vector<16x16xf32>
    %308 = vector.broadcast %32 : f32 to vector<16x16xf32>
    %309 = arith.mulf %308, %307 : vector<16x16xf32>
    %310 = arith.addf %302, %309 : vector<16x16xf32>
    %311 = vector.broadcast %68 : f32 to vector<16x16xf32>
    %312 = arith.mulf %311, %307 : vector<16x16xf32>
    %313 = arith.addf %305, %312 : vector<16x16xf32>
    %c0_130 = arith.constant 0 : index
    %c3_131 = arith.constant 3 : index
    %c0_132 = arith.constant 0 : index
    %c2_133 = arith.constant 2 : index
    %314 = vector.load %arg7[%c0_130, %c3_131, %c0_132, %c2_133] : memref<2x4x18x18xf32, #tpu.memory_space<vmem>>, vector<1x1x16x16xf32>
    %315 = vector.shape_cast %314 : vector<1x1x16x16xf32> to vector<16x16xf32>
    %316 = vector.broadcast %33 : f32 to vector<16x16xf32>
    %317 = arith.mulf %316, %315 : vector<16x16xf32>
    %318 = arith.addf %310, %317 : vector<16x16xf32>
    %319 = vector.broadcast %69 : f32 to vector<16x16xf32>
    %320 = arith.mulf %319, %315 : vector<16x16xf32>
    %321 = arith.addf %313, %320 : vector<16x16xf32>
    %c0_134 = arith.constant 0 : index
    %c3_135 = arith.constant 3 : index
    %c1_136 = arith.constant 1 : index
    %c0_137 = arith.constant 0 : index
    %322 = vector.load %arg7[%c0_134, %c3_135, %c1_136, %c0_137] : memref<2x4x18x18xf32, #tpu.memory_space<vmem>>, vector<1x1x16x16xf32>
    %323 = vector.shape_cast %322 : vector<1x1x16x16xf32> to vector<16x16xf32>
    %324 = vector.broadcast %34 : f32 to vector<16x16xf32>
    %325 = arith.mulf %324, %323 : vector<16x16xf32>
    %326 = arith.addf %318, %325 : vector<16x16xf32>
    %327 = vector.broadcast %70 : f32 to vector<16x16xf32>
    %328 = arith.mulf %327, %323 : vector<16x16xf32>
    %329 = arith.addf %321, %328 : vector<16x16xf32>
    %c0_138 = arith.constant 0 : index
    %c3_139 = arith.constant 3 : index
    %c1_140 = arith.constant 1 : index
    %c1_141 = arith.constant 1 : index
    %330 = vector.load %arg7[%c0_138, %c3_139, %c1_140, %c1_141] : memref<2x4x18x18xf32, #tpu.memory_space<vmem>>, vector<1x1x16x16xf32>
    %331 = vector.shape_cast %330 : vector<1x1x16x16xf32> to vector<16x16xf32>
    %332 = vector.broadcast %35 : f32 to vector<16x16xf32>
    %333 = arith.mulf %332, %331 : vector<16x16xf32>
    %334 = arith.addf %326, %333 : vector<16x16xf32>
    %335 = vector.broadcast %71 : f32 to vector<16x16xf32>
    %336 = arith.mulf %335, %331 : vector<16x16xf32>
    %337 = arith.addf %329, %336 : vector<16x16xf32>
    %c0_142 = arith.constant 0 : index
    %c3_143 = arith.constant 3 : index
    %c1_144 = arith.constant 1 : index
    %c2_145 = arith.constant 2 : index
    %338 = vector.load %arg7[%c0_142, %c3_143, %c1_144, %c2_145] : memref<2x4x18x18xf32, #tpu.memory_space<vmem>>, vector<1x1x16x16xf32>
    %339 = vector.shape_cast %338 : vector<1x1x16x16xf32> to vector<16x16xf32>
    %340 = vector.broadcast %36 : f32 to vector<16x16xf32>
    %341 = arith.mulf %340, %339 : vector<16x16xf32>
    %342 = arith.addf %334, %341 : vector<16x16xf32>
    %343 = vector.broadcast %72 : f32 to vector<16x16xf32>
    %344 = arith.mulf %343, %339 : vector<16x16xf32>
    %345 = arith.addf %337, %344 : vector<16x16xf32>
    %c0_146 = arith.constant 0 : index
    %c3_147 = arith.constant 3 : index
    %c2_148 = arith.constant 2 : index
    %c0_149 = arith.constant 0 : index
    %346 = vector.load %arg7[%c0_146, %c3_147, %c2_148, %c0_149] : memref<2x4x18x18xf32, #tpu.memory_space<vmem>>, vector<1x1x16x16xf32>
    %347 = vector.shape_cast %346 : vector<1x1x16x16xf32> to vector<16x16xf32>
    %348 = vector.broadcast %37 : f32 to vector<16x16xf32>
    %349 = arith.mulf %348, %347 : vector<16x16xf32>
    %350 = arith.addf %342, %349 : vector<16x16xf32>
    %351 = vector.broadcast %73 : f32 to vector<16x16xf32>
    %352 = arith.mulf %351, %347 : vector<16x16xf32>
    %353 = arith.addf %345, %352 : vector<16x16xf32>
    %c0_150 = arith.constant 0 : index
    %c3_151 = arith.constant 3 : index
    %c2_152 = arith.constant 2 : index
    %c1_153 = arith.constant 1 : index
    %354 = vector.load %arg7[%c0_150, %c3_151, %c2_152, %c1_153] : memref<2x4x18x18xf32, #tpu.memory_space<vmem>>, vector<1x1x16x16xf32>
    %355 = vector.shape_cast %354 : vector<1x1x16x16xf32> to vector<16x16xf32>
    %356 = vector.broadcast %38 : f32 to vector<16x16xf32>
    %357 = arith.mulf %356, %355 : vector<16x16xf32>
    %358 = arith.addf %350, %357 : vector<16x16xf32>
    %359 = vector.broadcast %74 : f32 to vector<16x16xf32>
    %360 = arith.mulf %359, %355 : vector<16x16xf32>
    %361 = arith.addf %353, %360 : vector<16x16xf32>
    %c0_154 = arith.constant 0 : index
    %c3_155 = arith.constant 3 : index
    %c2_156 = arith.constant 2 : index
    %c2_157 = arith.constant 2 : index
    %362 = vector.load %arg7[%c0_154, %c3_155, %c2_156, %c2_157] : memref<2x4x18x18xf32, #tpu.memory_space<vmem>>, vector<1x1x16x16xf32>
    %363 = vector.shape_cast %362 : vector<1x1x16x16xf32> to vector<16x16xf32>
    %364 = vector.broadcast %39 : f32 to vector<16x16xf32>
    %365 = arith.mulf %364, %363 : vector<16x16xf32>
    %366 = arith.addf %358, %365 : vector<16x16xf32>
    %367 = vector.broadcast %75 : f32 to vector<16x16xf32>
    %368 = arith.mulf %367, %363 : vector<16x16xf32>
    %369 = arith.addf %361, %368 : vector<16x16xf32>
    %c1_158 = arith.constant 1 : index
    %c0_159 = arith.constant 0 : index
    %c0_160 = arith.constant 0 : index
    %c0_161 = arith.constant 0 : index
    %370 = vector.load %arg7[%c1_158, %c0_159, %c0_160, %c0_161] : memref<2x4x18x18xf32, #tpu.memory_space<vmem>>, vector<1x1x16x16xf32>
    %371 = vector.shape_cast %370 : vector<1x1x16x16xf32> to vector<16x16xf32>
    %372 = vector.broadcast %4 : f32 to vector<16x16xf32>
    %373 = arith.mulf %372, %371 : vector<16x16xf32>
    %374 = arith.addf %80, %373 : vector<16x16xf32>
    %375 = vector.broadcast %40 : f32 to vector<16x16xf32>
    %376 = arith.mulf %375, %371 : vector<16x16xf32>
    %377 = arith.addf %81, %376 : vector<16x16xf32>
    %c1_162 = arith.constant 1 : index
    %c0_163 = arith.constant 0 : index
    %c0_164 = arith.constant 0 : index
    %c1_165 = arith.constant 1 : index
    %378 = vector.load %arg7[%c1_162, %c0_163, %c0_164, %c1_165] : memref<2x4x18x18xf32, #tpu.memory_space<vmem>>, vector<1x1x16x16xf32>
    %379 = vector.shape_cast %378 : vector<1x1x16x16xf32> to vector<16x16xf32>
    %380 = vector.broadcast %5 : f32 to vector<16x16xf32>
    %381 = arith.mulf %380, %379 : vector<16x16xf32>
    %382 = arith.addf %374, %381 : vector<16x16xf32>
    %383 = vector.broadcast %41 : f32 to vector<16x16xf32>
    %384 = arith.mulf %383, %379 : vector<16x16xf32>
    %385 = arith.addf %377, %384 : vector<16x16xf32>
    %c1_166 = arith.constant 1 : index
    %c0_167 = arith.constant 0 : index
    %c0_168 = arith.constant 0 : index
    %c2_169 = arith.constant 2 : index
    %386 = vector.load %arg7[%c1_166, %c0_167, %c0_168, %c2_169] : memref<2x4x18x18xf32, #tpu.memory_space<vmem>>, vector<1x1x16x16xf32>
    %387 = vector.shape_cast %386 : vector<1x1x16x16xf32> to vector<16x16xf32>
    %388 = vector.broadcast %6 : f32 to vector<16x16xf32>
    %389 = arith.mulf %388, %387 : vector<16x16xf32>
    %390 = arith.addf %382, %389 : vector<16x16xf32>
    %391 = vector.broadcast %42 : f32 to vector<16x16xf32>
    %392 = arith.mulf %391, %387 : vector<16x16xf32>
    %393 = arith.addf %385, %392 : vector<16x16xf32>
    %c1_170 = arith.constant 1 : index
    %c0_171 = arith.constant 0 : index
    %c1_172 = arith.constant 1 : index
    %c0_173 = arith.constant 0 : index
    %394 = vector.load %arg7[%c1_170, %c0_171, %c1_172, %c0_173] : memref<2x4x18x18xf32, #tpu.memory_space<vmem>>, vector<1x1x16x16xf32>
    %395 = vector.shape_cast %394 : vector<1x1x16x16xf32> to vector<16x16xf32>
    %396 = vector.broadcast %7 : f32 to vector<16x16xf32>
    %397 = arith.mulf %396, %395 : vector<16x16xf32>
    %398 = arith.addf %390, %397 : vector<16x16xf32>
    %399 = vector.broadcast %43 : f32 to vector<16x16xf32>
    %400 = arith.mulf %399, %395 : vector<16x16xf32>
    %401 = arith.addf %393, %400 : vector<16x16xf32>
    %c1_174 = arith.constant 1 : index
    %c0_175 = arith.constant 0 : index
    %c1_176 = arith.constant 1 : index
    %c1_177 = arith.constant 1 : index
    %402 = vector.load %arg7[%c1_174, %c0_175, %c1_176, %c1_177] : memref<2x4x18x18xf32, #tpu.memory_space<vmem>>, vector<1x1x16x16xf32>
    %403 = vector.shape_cast %402 : vector<1x1x16x16xf32> to vector<16x16xf32>
    %404 = vector.broadcast %8 : f32 to vector<16x16xf32>
    %405 = arith.mulf %404, %403 : vector<16x16xf32>
    %406 = arith.addf %398, %405 : vector<16x16xf32>
    %407 = vector.broadcast %44 : f32 to vector<16x16xf32>
    %408 = arith.mulf %407, %403 : vector<16x16xf32>
    %409 = arith.addf %401, %408 : vector<16x16xf32>
    %c1_178 = arith.constant 1 : index
    %c0_179 = arith.constant 0 : index
    %c1_180 = arith.constant 1 : index
    %c2_181 = arith.constant 2 : index
    %410 = vector.load %arg7[%c1_178, %c0_179, %c1_180, %c2_181] : memref<2x4x18x18xf32, #tpu.memory_space<vmem>>, vector<1x1x16x16xf32>
    %411 = vector.shape_cast %410 : vector<1x1x16x16xf32> to vector<16x16xf32>
    %412 = vector.broadcast %9 : f32 to vector<16x16xf32>
    %413 = arith.mulf %412, %411 : vector<16x16xf32>
    %414 = arith.addf %406, %413 : vector<16x16xf32>
    %415 = vector.broadcast %45 : f32 to vector<16x16xf32>
    %416 = arith.mulf %415, %411 : vector<16x16xf32>
    %417 = arith.addf %409, %416 : vector<16x16xf32>
    %c1_182 = arith.constant 1 : index
    %c0_183 = arith.constant 0 : index
    %c2_184 = arith.constant 2 : index
    %c0_185 = arith.constant 0 : index
    %418 = vector.load %arg7[%c1_182, %c0_183, %c2_184, %c0_185] : memref<2x4x18x18xf32, #tpu.memory_space<vmem>>, vector<1x1x16x16xf32>
    %419 = vector.shape_cast %418 : vector<1x1x16x16xf32> to vector<16x16xf32>
    %420 = vector.broadcast %10 : f32 to vector<16x16xf32>
    %421 = arith.mulf %420, %419 : vector<16x16xf32>
    %422 = arith.addf %414, %421 : vector<16x16xf32>
    %423 = vector.broadcast %46 : f32 to vector<16x16xf32>
    %424 = arith.mulf %423, %419 : vector<16x16xf32>
    %425 = arith.addf %417, %424 : vector<16x16xf32>
    %c1_186 = arith.constant 1 : index
    %c0_187 = arith.constant 0 : index
    %c2_188 = arith.constant 2 : index
    %c1_189 = arith.constant 1 : index
    %426 = vector.load %arg7[%c1_186, %c0_187, %c2_188, %c1_189] : memref<2x4x18x18xf32, #tpu.memory_space<vmem>>, vector<1x1x16x16xf32>
    %427 = vector.shape_cast %426 : vector<1x1x16x16xf32> to vector<16x16xf32>
    %428 = vector.broadcast %11 : f32 to vector<16x16xf32>
    %429 = arith.mulf %428, %427 : vector<16x16xf32>
    %430 = arith.addf %422, %429 : vector<16x16xf32>
    %431 = vector.broadcast %47 : f32 to vector<16x16xf32>
    %432 = arith.mulf %431, %427 : vector<16x16xf32>
    %433 = arith.addf %425, %432 : vector<16x16xf32>
    %c1_190 = arith.constant 1 : index
    %c0_191 = arith.constant 0 : index
    %c2_192 = arith.constant 2 : index
    %c2_193 = arith.constant 2 : index
    %434 = vector.load %arg7[%c1_190, %c0_191, %c2_192, %c2_193] : memref<2x4x18x18xf32, #tpu.memory_space<vmem>>, vector<1x1x16x16xf32>
    %435 = vector.shape_cast %434 : vector<1x1x16x16xf32> to vector<16x16xf32>
    %436 = vector.broadcast %12 : f32 to vector<16x16xf32>
    %437 = arith.mulf %436, %435 : vector<16x16xf32>
    %438 = arith.addf %430, %437 : vector<16x16xf32>
    %439 = vector.broadcast %48 : f32 to vector<16x16xf32>
    %440 = arith.mulf %439, %435 : vector<16x16xf32>
    %441 = arith.addf %433, %440 : vector<16x16xf32>
    %c1_194 = arith.constant 1 : index
    %c1_195 = arith.constant 1 : index
    %c0_196 = arith.constant 0 : index
    %c0_197 = arith.constant 0 : index
    %442 = vector.load %arg7[%c1_194, %c1_195, %c0_196, %c0_197] : memref<2x4x18x18xf32, #tpu.memory_space<vmem>>, vector<1x1x16x16xf32>
    %443 = vector.shape_cast %442 : vector<1x1x16x16xf32> to vector<16x16xf32>
    %444 = vector.broadcast %13 : f32 to vector<16x16xf32>
    %445 = arith.mulf %444, %443 : vector<16x16xf32>
    %446 = arith.addf %438, %445 : vector<16x16xf32>
    %447 = vector.broadcast %49 : f32 to vector<16x16xf32>
    %448 = arith.mulf %447, %443 : vector<16x16xf32>
    %449 = arith.addf %441, %448 : vector<16x16xf32>
    %c1_198 = arith.constant 1 : index
    %c1_199 = arith.constant 1 : index
    %c0_200 = arith.constant 0 : index
    %c1_201 = arith.constant 1 : index
    %450 = vector.load %arg7[%c1_198, %c1_199, %c0_200, %c1_201] : memref<2x4x18x18xf32, #tpu.memory_space<vmem>>, vector<1x1x16x16xf32>
    %451 = vector.shape_cast %450 : vector<1x1x16x16xf32> to vector<16x16xf32>
    %452 = vector.broadcast %14 : f32 to vector<16x16xf32>
    %453 = arith.mulf %452, %451 : vector<16x16xf32>
    %454 = arith.addf %446, %453 : vector<16x16xf32>
    %455 = vector.broadcast %50 : f32 to vector<16x16xf32>
    %456 = arith.mulf %455, %451 : vector<16x16xf32>
    %457 = arith.addf %449, %456 : vector<16x16xf32>
    %c1_202 = arith.constant 1 : index
    %c1_203 = arith.constant 1 : index
    %c0_204 = arith.constant 0 : index
    %c2_205 = arith.constant 2 : index
    %458 = vector.load %arg7[%c1_202, %c1_203, %c0_204, %c2_205] : memref<2x4x18x18xf32, #tpu.memory_space<vmem>>, vector<1x1x16x16xf32>
    %459 = vector.shape_cast %458 : vector<1x1x16x16xf32> to vector<16x16xf32>
    %460 = vector.broadcast %15 : f32 to vector<16x16xf32>
    %461 = arith.mulf %460, %459 : vector<16x16xf32>
    %462 = arith.addf %454, %461 : vector<16x16xf32>
    %463 = vector.broadcast %51 : f32 to vector<16x16xf32>
    %464 = arith.mulf %463, %459 : vector<16x16xf32>
    %465 = arith.addf %457, %464 : vector<16x16xf32>
    %c1_206 = arith.constant 1 : index
    %c1_207 = arith.constant 1 : index
    %c1_208 = arith.constant 1 : index
    %c0_209 = arith.constant 0 : index
    %466 = vector.load %arg7[%c1_206, %c1_207, %c1_208, %c0_209] : memref<2x4x18x18xf32, #tpu.memory_space<vmem>>, vector<1x1x16x16xf32>
    %467 = vector.shape_cast %466 : vector<1x1x16x16xf32> to vector<16x16xf32>
    %468 = vector.broadcast %16 : f32 to vector<16x16xf32>
    %469 = arith.mulf %468, %467 : vector<16x16xf32>
    %470 = arith.addf %462, %469 : vector<16x16xf32>
    %471 = vector.broadcast %52 : f32 to vector<16x16xf32>
    %472 = arith.mulf %471, %467 : vector<16x16xf32>
    %473 = arith.addf %465, %472 : vector<16x16xf32>
    %c1_210 = arith.constant 1 : index
    %c1_211 = arith.constant 1 : index
    %c1_212 = arith.constant 1 : index
    %c1_213 = arith.constant 1 : index
    %474 = vector.load %arg7[%c1_210, %c1_211, %c1_212, %c1_213] : memref<2x4x18x18xf32, #tpu.memory_space<vmem>>, vector<1x1x16x16xf32>
    %475 = vector.shape_cast %474 : vector<1x1x16x16xf32> to vector<16x16xf32>
    %476 = vector.broadcast %17 : f32 to vector<16x16xf32>
    %477 = arith.mulf %476, %475 : vector<16x16xf32>
    %478 = arith.addf %470, %477 : vector<16x16xf32>
    %479 = vector.broadcast %53 : f32 to vector<16x16xf32>
    %480 = arith.mulf %479, %475 : vector<16x16xf32>
    %481 = arith.addf %473, %480 : vector<16x16xf32>
    %c1_214 = arith.constant 1 : index
    %c1_215 = arith.constant 1 : index
    %c1_216 = arith.constant 1 : index
    %c2_217 = arith.constant 2 : index
    %482 = vector.load %arg7[%c1_214, %c1_215, %c1_216, %c2_217] : memref<2x4x18x18xf32, #tpu.memory_space<vmem>>, vector<1x1x16x16xf32>
    %483 = vector.shape_cast %482 : vector<1x1x16x16xf32> to vector<16x16xf32>
    %484 = vector.broadcast %18 : f32 to vector<16x16xf32>
    %485 = arith.mulf %484, %483 : vector<16x16xf32>
    %486 = arith.addf %478, %485 : vector<16x16xf32>
    %487 = vector.broadcast %54 : f32 to vector<16x16xf32>
    %488 = arith.mulf %487, %483 : vector<16x16xf32>
    %489 = arith.addf %481, %488 : vector<16x16xf32>
    %c1_218 = arith.constant 1 : index
    %c1_219 = arith.constant 1 : index
    %c2_220 = arith.constant 2 : index
    %c0_221 = arith.constant 0 : index
    %490 = vector.load %arg7[%c1_218, %c1_219, %c2_220, %c0_221] : memref<2x4x18x18xf32, #tpu.memory_space<vmem>>, vector<1x1x16x16xf32>
    %491 = vector.shape_cast %490 : vector<1x1x16x16xf32> to vector<16x16xf32>
    %492 = vector.broadcast %19 : f32 to vector<16x16xf32>
    %493 = arith.mulf %492, %491 : vector<16x16xf32>
    %494 = arith.addf %486, %493 : vector<16x16xf32>
    %495 = vector.broadcast %55 : f32 to vector<16x16xf32>
    %496 = arith.mulf %495, %491 : vector<16x16xf32>
    %497 = arith.addf %489, %496 : vector<16x16xf32>
    %c1_222 = arith.constant 1 : index
    %c1_223 = arith.constant 1 : index
    %c2_224 = arith.constant 2 : index
    %c1_225 = arith.constant 1 : index
    %498 = vector.load %arg7[%c1_222, %c1_223, %c2_224, %c1_225] : memref<2x4x18x18xf32, #tpu.memory_space<vmem>>, vector<1x1x16x16xf32>
    %499 = vector.shape_cast %498 : vector<1x1x16x16xf32> to vector<16x16xf32>
    %500 = vector.broadcast %20 : f32 to vector<16x16xf32>
    %501 = arith.mulf %500, %499 : vector<16x16xf32>
    %502 = arith.addf %494, %501 : vector<16x16xf32>
    %503 = vector.broadcast %56 : f32 to vector<16x16xf32>
    %504 = arith.mulf %503, %499 : vector<16x16xf32>
    %505 = arith.addf %497, %504 : vector<16x16xf32>
    %c1_226 = arith.constant 1 : index
    %c1_227 = arith.constant 1 : index
    %c2_228 = arith.constant 2 : index
    %c2_229 = arith.constant 2 : index
    %506 = vector.load %arg7[%c1_226, %c1_227, %c2_228, %c2_229] : memref<2x4x18x18xf32, #tpu.memory_space<vmem>>, vector<1x1x16x16xf32>
    %507 = vector.shape_cast %506 : vector<1x1x16x16xf32> to vector<16x16xf32>
    %508 = vector.broadcast %21 : f32 to vector<16x16xf32>
    %509 = arith.mulf %508, %507 : vector<16x16xf32>
    %510 = arith.addf %502, %509 : vector<16x16xf32>
    %511 = vector.broadcast %57 : f32 to vector<16x16xf32>
    %512 = arith.mulf %511, %507 : vector<16x16xf32>
    %513 = arith.addf %505, %512 : vector<16x16xf32>
    %c1_230 = arith.constant 1 : index
    %c2_231 = arith.constant 2 : index
    %c0_232 = arith.constant 0 : index
    %c0_233 = arith.constant 0 : index
    %514 = vector.load %arg7[%c1_230, %c2_231, %c0_232, %c0_233] : memref<2x4x18x18xf32, #tpu.memory_space<vmem>>, vector<1x1x16x16xf32>
    %515 = vector.shape_cast %514 : vector<1x1x16x16xf32> to vector<16x16xf32>
    %516 = vector.broadcast %22 : f32 to vector<16x16xf32>
    %517 = arith.mulf %516, %515 : vector<16x16xf32>
    %518 = arith.addf %510, %517 : vector<16x16xf32>
    %519 = vector.broadcast %58 : f32 to vector<16x16xf32>
    %520 = arith.mulf %519, %515 : vector<16x16xf32>
    %521 = arith.addf %513, %520 : vector<16x16xf32>
    %c1_234 = arith.constant 1 : index
    %c2_235 = arith.constant 2 : index
    %c0_236 = arith.constant 0 : index
    %c1_237 = arith.constant 1 : index
    %522 = vector.load %arg7[%c1_234, %c2_235, %c0_236, %c1_237] : memref<2x4x18x18xf32, #tpu.memory_space<vmem>>, vector<1x1x16x16xf32>
    %523 = vector.shape_cast %522 : vector<1x1x16x16xf32> to vector<16x16xf32>
    %524 = vector.broadcast %23 : f32 to vector<16x16xf32>
    %525 = arith.mulf %524, %523 : vector<16x16xf32>
    %526 = arith.addf %518, %525 : vector<16x16xf32>
    %527 = vector.broadcast %59 : f32 to vector<16x16xf32>
    %528 = arith.mulf %527, %523 : vector<16x16xf32>
    %529 = arith.addf %521, %528 : vector<16x16xf32>
    %c1_238 = arith.constant 1 : index
    %c2_239 = arith.constant 2 : index
    %c0_240 = arith.constant 0 : index
    %c2_241 = arith.constant 2 : index
    %530 = vector.load %arg7[%c1_238, %c2_239, %c0_240, %c2_241] : memref<2x4x18x18xf32, #tpu.memory_space<vmem>>, vector<1x1x16x16xf32>
    %531 = vector.shape_cast %530 : vector<1x1x16x16xf32> to vector<16x16xf32>
    %532 = vector.broadcast %24 : f32 to vector<16x16xf32>
    %533 = arith.mulf %532, %531 : vector<16x16xf32>
    %534 = arith.addf %526, %533 : vector<16x16xf32>
    %535 = vector.broadcast %60 : f32 to vector<16x16xf32>
    %536 = arith.mulf %535, %531 : vector<16x16xf32>
    %537 = arith.addf %529, %536 : vector<16x16xf32>
    %c1_242 = arith.constant 1 : index
    %c2_243 = arith.constant 2 : index
    %c1_244 = arith.constant 1 : index
    %c0_245 = arith.constant 0 : index
    %538 = vector.load %arg7[%c1_242, %c2_243, %c1_244, %c0_245] : memref<2x4x18x18xf32, #tpu.memory_space<vmem>>, vector<1x1x16x16xf32>
    %539 = vector.shape_cast %538 : vector<1x1x16x16xf32> to vector<16x16xf32>
    %540 = vector.broadcast %25 : f32 to vector<16x16xf32>
    %541 = arith.mulf %540, %539 : vector<16x16xf32>
    %542 = arith.addf %534, %541 : vector<16x16xf32>
    %543 = vector.broadcast %61 : f32 to vector<16x16xf32>
    %544 = arith.mulf %543, %539 : vector<16x16xf32>
    %545 = arith.addf %537, %544 : vector<16x16xf32>
    %c1_246 = arith.constant 1 : index
    %c2_247 = arith.constant 2 : index
    %c1_248 = arith.constant 1 : index
    %c1_249 = arith.constant 1 : index
    %546 = vector.load %arg7[%c1_246, %c2_247, %c1_248, %c1_249] : memref<2x4x18x18xf32, #tpu.memory_space<vmem>>, vector<1x1x16x16xf32>
    %547 = vector.shape_cast %546 : vector<1x1x16x16xf32> to vector<16x16xf32>
    %548 = vector.broadcast %26 : f32 to vector<16x16xf32>
    %549 = arith.mulf %548, %547 : vector<16x16xf32>
    %550 = arith.addf %542, %549 : vector<16x16xf32>
    %551 = vector.broadcast %62 : f32 to vector<16x16xf32>
    %552 = arith.mulf %551, %547 : vector<16x16xf32>
    %553 = arith.addf %545, %552 : vector<16x16xf32>
    %c1_250 = arith.constant 1 : index
    %c2_251 = arith.constant 2 : index
    %c1_252 = arith.constant 1 : index
    %c2_253 = arith.constant 2 : index
    %554 = vector.load %arg7[%c1_250, %c2_251, %c1_252, %c2_253] : memref<2x4x18x18xf32, #tpu.memory_space<vmem>>, vector<1x1x16x16xf32>
    %555 = vector.shape_cast %554 : vector<1x1x16x16xf32> to vector<16x16xf32>
    %556 = vector.broadcast %27 : f32 to vector<16x16xf32>
    %557 = arith.mulf %556, %555 : vector<16x16xf32>
    %558 = arith.addf %550, %557 : vector<16x16xf32>
    %559 = vector.broadcast %63 : f32 to vector<16x16xf32>
    %560 = arith.mulf %559, %555 : vector<16x16xf32>
    %561 = arith.addf %553, %560 : vector<16x16xf32>
    %c1_254 = arith.constant 1 : index
    %c2_255 = arith.constant 2 : index
    %c2_256 = arith.constant 2 : index
    %c0_257 = arith.constant 0 : index
    %562 = vector.load %arg7[%c1_254, %c2_255, %c2_256, %c0_257] : memref<2x4x18x18xf32, #tpu.memory_space<vmem>>, vector<1x1x16x16xf32>
    %563 = vector.shape_cast %562 : vector<1x1x16x16xf32> to vector<16x16xf32>
    %564 = vector.broadcast %28 : f32 to vector<16x16xf32>
    %565 = arith.mulf %564, %563 : vector<16x16xf32>
    %566 = arith.addf %558, %565 : vector<16x16xf32>
    %567 = vector.broadcast %64 : f32 to vector<16x16xf32>
    %568 = arith.mulf %567, %563 : vector<16x16xf32>
    %569 = arith.addf %561, %568 : vector<16x16xf32>
    %c1_258 = arith.constant 1 : index
    %c2_259 = arith.constant 2 : index
    %c2_260 = arith.constant 2 : index
    %c1_261 = arith.constant 1 : index
    %570 = vector.load %arg7[%c1_258, %c2_259, %c2_260, %c1_261] : memref<2x4x18x18xf32, #tpu.memory_space<vmem>>, vector<1x1x16x16xf32>
    %571 = vector.shape_cast %570 : vector<1x1x16x16xf32> to vector<16x16xf32>
    %572 = vector.broadcast %29 : f32 to vector<16x16xf32>
    %573 = arith.mulf %572, %571 : vector<16x16xf32>
    %574 = arith.addf %566, %573 : vector<16x16xf32>
    %575 = vector.broadcast %65 : f32 to vector<16x16xf32>
    %576 = arith.mulf %575, %571 : vector<16x16xf32>
    %577 = arith.addf %569, %576 : vector<16x16xf32>
    %c1_262 = arith.constant 1 : index
    %c2_263 = arith.constant 2 : index
    %c2_264 = arith.constant 2 : index
    %c2_265 = arith.constant 2 : index
    %578 = vector.load %arg7[%c1_262, %c2_263, %c2_264, %c2_265] : memref<2x4x18x18xf32, #tpu.memory_space<vmem>>, vector<1x1x16x16xf32>
    %579 = vector.shape_cast %578 : vector<1x1x16x16xf32> to vector<16x16xf32>
    %580 = vector.broadcast %30 : f32 to vector<16x16xf32>
    %581 = arith.mulf %580, %579 : vector<16x16xf32>
    %582 = arith.addf %574, %581 : vector<16x16xf32>
    %583 = vector.broadcast %66 : f32 to vector<16x16xf32>
    %584 = arith.mulf %583, %579 : vector<16x16xf32>
    %585 = arith.addf %577, %584 : vector<16x16xf32>
    %c1_266 = arith.constant 1 : index
    %c3_267 = arith.constant 3 : index
    %c0_268 = arith.constant 0 : index
    %c0_269 = arith.constant 0 : index
    %586 = vector.load %arg7[%c1_266, %c3_267, %c0_268, %c0_269] : memref<2x4x18x18xf32, #tpu.memory_space<vmem>>, vector<1x1x16x16xf32>
    %587 = vector.shape_cast %586 : vector<1x1x16x16xf32> to vector<16x16xf32>
    %588 = vector.broadcast %31 : f32 to vector<16x16xf32>
    %589 = arith.mulf %588, %587 : vector<16x16xf32>
    %590 = arith.addf %582, %589 : vector<16x16xf32>
    %591 = vector.broadcast %67 : f32 to vector<16x16xf32>
    %592 = arith.mulf %591, %587 : vector<16x16xf32>
    %593 = arith.addf %585, %592 : vector<16x16xf32>
    %c1_270 = arith.constant 1 : index
    %c3_271 = arith.constant 3 : index
    %c0_272 = arith.constant 0 : index
    %c1_273 = arith.constant 1 : index
    %594 = vector.load %arg7[%c1_270, %c3_271, %c0_272, %c1_273] : memref<2x4x18x18xf32, #tpu.memory_space<vmem>>, vector<1x1x16x16xf32>
    %595 = vector.shape_cast %594 : vector<1x1x16x16xf32> to vector<16x16xf32>
    %596 = vector.broadcast %32 : f32 to vector<16x16xf32>
    %597 = arith.mulf %596, %595 : vector<16x16xf32>
    %598 = arith.addf %590, %597 : vector<16x16xf32>
    %599 = vector.broadcast %68 : f32 to vector<16x16xf32>
    %600 = arith.mulf %599, %595 : vector<16x16xf32>
    %601 = arith.addf %593, %600 : vector<16x16xf32>
    %c1_274 = arith.constant 1 : index
    %c3_275 = arith.constant 3 : index
    %c0_276 = arith.constant 0 : index
    %c2_277 = arith.constant 2 : index
    %602 = vector.load %arg7[%c1_274, %c3_275, %c0_276, %c2_277] : memref<2x4x18x18xf32, #tpu.memory_space<vmem>>, vector<1x1x16x16xf32>
    %603 = vector.shape_cast %602 : vector<1x1x16x16xf32> to vector<16x16xf32>
    %604 = vector.broadcast %33 : f32 to vector<16x16xf32>
    %605 = arith.mulf %604, %603 : vector<16x16xf32>
    %606 = arith.addf %598, %605 : vector<16x16xf32>
    %607 = vector.broadcast %69 : f32 to vector<16x16xf32>
    %608 = arith.mulf %607, %603 : vector<16x16xf32>
    %609 = arith.addf %601, %608 : vector<16x16xf32>
    %c1_278 = arith.constant 1 : index
    %c3_279 = arith.constant 3 : index
    %c1_280 = arith.constant 1 : index
    %c0_281 = arith.constant 0 : index
    %610 = vector.load %arg7[%c1_278, %c3_279, %c1_280, %c0_281] : memref<2x4x18x18xf32, #tpu.memory_space<vmem>>, vector<1x1x16x16xf32>
    %611 = vector.shape_cast %610 : vector<1x1x16x16xf32> to vector<16x16xf32>
    %612 = vector.broadcast %34 : f32 to vector<16x16xf32>
    %613 = arith.mulf %612, %611 : vector<16x16xf32>
    %614 = arith.addf %606, %613 : vector<16x16xf32>
    %615 = vector.broadcast %70 : f32 to vector<16x16xf32>
    %616 = arith.mulf %615, %611 : vector<16x16xf32>
    %617 = arith.addf %609, %616 : vector<16x16xf32>
    %c1_282 = arith.constant 1 : index
    %c3_283 = arith.constant 3 : index
    %c1_284 = arith.constant 1 : index
    %c1_285 = arith.constant 1 : index
    %618 = vector.load %arg7[%c1_282, %c3_283, %c1_284, %c1_285] : memref<2x4x18x18xf32, #tpu.memory_space<vmem>>, vector<1x1x16x16xf32>
    %619 = vector.shape_cast %618 : vector<1x1x16x16xf32> to vector<16x16xf32>
    %620 = vector.broadcast %35 : f32 to vector<16x16xf32>
    %621 = arith.mulf %620, %619 : vector<16x16xf32>
    %622 = arith.addf %614, %621 : vector<16x16xf32>
    %623 = vector.broadcast %71 : f32 to vector<16x16xf32>
    %624 = arith.mulf %623, %619 : vector<16x16xf32>
    %625 = arith.addf %617, %624 : vector<16x16xf32>
    %c1_286 = arith.constant 1 : index
    %c3_287 = arith.constant 3 : index
    %c1_288 = arith.constant 1 : index
    %c2_289 = arith.constant 2 : index
    %626 = vector.load %arg7[%c1_286, %c3_287, %c1_288, %c2_289] : memref<2x4x18x18xf32, #tpu.memory_space<vmem>>, vector<1x1x16x16xf32>
    %627 = vector.shape_cast %626 : vector<1x1x16x16xf32> to vector<16x16xf32>
    %628 = vector.broadcast %36 : f32 to vector<16x16xf32>
    %629 = arith.mulf %628, %627 : vector<16x16xf32>
    %630 = arith.addf %622, %629 : vector<16x16xf32>
    %631 = vector.broadcast %72 : f32 to vector<16x16xf32>
    %632 = arith.mulf %631, %627 : vector<16x16xf32>
    %633 = arith.addf %625, %632 : vector<16x16xf32>
    %c1_290 = arith.constant 1 : index
    %c3_291 = arith.constant 3 : index
    %c2_292 = arith.constant 2 : index
    %c0_293 = arith.constant 0 : index
    %634 = vector.load %arg7[%c1_290, %c3_291, %c2_292, %c0_293] : memref<2x4x18x18xf32, #tpu.memory_space<vmem>>, vector<1x1x16x16xf32>
    %635 = vector.shape_cast %634 : vector<1x1x16x16xf32> to vector<16x16xf32>
    %636 = vector.broadcast %37 : f32 to vector<16x16xf32>
    %637 = arith.mulf %636, %635 : vector<16x16xf32>
    %638 = arith.addf %630, %637 : vector<16x16xf32>
    %639 = vector.broadcast %73 : f32 to vector<16x16xf32>
    %640 = arith.mulf %639, %635 : vector<16x16xf32>
    %641 = arith.addf %633, %640 : vector<16x16xf32>
    %c1_294 = arith.constant 1 : index
    %c3_295 = arith.constant 3 : index
    %c2_296 = arith.constant 2 : index
    %c1_297 = arith.constant 1 : index
    %642 = vector.load %arg7[%c1_294, %c3_295, %c2_296, %c1_297] : memref<2x4x18x18xf32, #tpu.memory_space<vmem>>, vector<1x1x16x16xf32>
    %643 = vector.shape_cast %642 : vector<1x1x16x16xf32> to vector<16x16xf32>
    %644 = vector.broadcast %38 : f32 to vector<16x16xf32>
    %645 = arith.mulf %644, %643 : vector<16x16xf32>
    %646 = arith.addf %638, %645 : vector<16x16xf32>
    %647 = vector.broadcast %74 : f32 to vector<16x16xf32>
    %648 = arith.mulf %647, %643 : vector<16x16xf32>
    %649 = arith.addf %641, %648 : vector<16x16xf32>
    %c1_298 = arith.constant 1 : index
    %c3_299 = arith.constant 3 : index
    %c2_300 = arith.constant 2 : index
    %c2_301 = arith.constant 2 : index
    %650 = vector.load %arg7[%c1_298, %c3_299, %c2_300, %c2_301] : memref<2x4x18x18xf32, #tpu.memory_space<vmem>>, vector<1x1x16x16xf32>
    %651 = vector.shape_cast %650 : vector<1x1x16x16xf32> to vector<16x16xf32>
    %652 = vector.broadcast %39 : f32 to vector<16x16xf32>
    %653 = arith.mulf %652, %651 : vector<16x16xf32>
    %654 = arith.addf %646, %653 : vector<16x16xf32>
    %655 = vector.broadcast %75 : f32 to vector<16x16xf32>
    %656 = arith.mulf %655, %651 : vector<16x16xf32>
    %657 = arith.addf %649, %656 : vector<16x16xf32>
    %658 = tpu.concatenate %366, %369, %654, %657 in 1 : vector<16x16xf32>, vector<16x16xf32>, vector<16x16xf32>, vector<16x16xf32> -> vector<16x64xf32>
    %659 = arith.truncf %658 : vector<16x64xf32> to vector<16x64xbf16>
    %c0_302 = arith.constant 0 : index
    %c0_303 = arith.constant 0 : index
    %660 = vector.load %arg4[%c0_302, %c0_303] : memref<64x128xbf16, #tpu.memory_space<vmem>>, vector<64x128xbf16>
    %cst_304 = arith.constant dense<0.000000e+00> : vector<16x128xf32>
    %661 = tpu.matmul %659, %660, %cst_304 {dimension_numbers = #tpu.dot_dimension_numbers<[1], [0], [0], [1], [0, 0, 1, 1], [], []>} : vector<16x64xbf16>, vector<64x128xbf16>, vector<16x128xf32> -> vector<16x128xf32>
    %c0_305 = arith.constant 0 : index
    %c0_306 = arith.constant 0 : index
    %662 = vector.load %arg5[%c0_305, %c0_306] : memref<32x16xbf16, #tpu.memory_space<vmem>>, vector<32x16xbf16>
    %663 = arith.truncf %661 : vector<16x128xf32> to vector<16x128xbf16>
    %cst_307 = arith.constant dense<0.000000e+00> : vector<32x128xf32>
    %664 = tpu.matmul %662, %663, %cst_307 {dimension_numbers = #tpu.dot_dimension_numbers<[1], [0], [0], [1], [0, 0, 1, 1], [], []>} : vector<32x16xbf16>, vector<16x128xbf16>, vector<32x128xf32> -> vector<32x128xf32>
    %c0_308 = arith.constant 0 : index
    %c0_309 = arith.constant 0 : index
    %c0_310 = arith.constant 0 : index
    %665 = vector.load %arg6[%c0_308, %c0_309, %c0_310] : memref<1x32x128xf32, #tpu.memory_space<vmem>>, vector<1x32x128xf32>
    %666 = vector.shape_cast %665 : vector<1x32x128xf32> to vector<32x128xf32>
    %667 = vector.shape_cast %664 : vector<32x128xf32> to vector<1x32x128xf32>
    tpu.vector_store %arg6[%c0_308, %c0_309, %c0_310], %667 {strides = array<i32>} : memref<1x32x128xf32, #tpu.memory_space<vmem>>, vector<1x32x128xf32>,
    return
  }
  func.func @transform_0(%arg0: i32) -> i32 {
    %c0_i32 = arith.constant 0 : i32
    %c0_i32_0 = arith.constant 0 : i32
    return %c0_i32 : i32
  }
  func.func @transform_1(%arg0: i32) -> i32 {
    %c0_i32 = arith.constant 0 : i32
    %c0_i32_0 = arith.constant 0 : i32
    return %c0_i32 : i32
  }
  func.func @transform_2(%arg0: i32) -> (i32, i32, i32, i32) {
    %c0_i32 = arith.constant 0 : i32
    %c0_i32_0 = arith.constant 0 : i32
    %c0_i32_1 = arith.constant 0 : i32
    %c0_i32_2 = arith.constant 0 : i32
    return %arg0, %c0_i32, %c0_i32_0, %c0_i32_1 : i32, i32, i32, i32
  }
  func.func @transform_3(%arg0: i32) -> (i32, i32) {
    %c0_i32 = arith.constant 0 : i32
    %c0_i32_0 = arith.constant 0 : i32
    %c0_i32_1 = arith.constant 0 : i32
    return %c0_i32, %c0_i32_0 : i32, i32
  }
  func.func @transform_4(%arg0: i32) -> (i32, i32) {
    %c0_i32 = arith.constant 0 : i32
    %c0_i32_0 = arith.constant 0 : i32
    %c0_i32_1 = arith.constant 0 : i32
    return %c0_i32, %c0_i32_0 : i32, i32
  }
  func.func @transform_5(%arg0: i32) -> (i32, i32, i32) {
    %c0_i32 = arith.constant 0 : i32
    %c0_i32_0 = arith.constant 0 : i32
    %c0_i32_1 = arith.constant 0 : i32
    return %arg0, %c0_i32, %c0_i32_0 : i32, i32, i32
  }
}

</mosaic_0001>

<bundles_post_ra>
// kernel: tpu_custom_call.1
= control target key start
LH: loop header
LB: loop body
LE: loop exit
PB: predicated region body
PF: predicated region fallthrough
CT: control target
= control target key end

     0   :  { %10 = vsyncpa [#allocation6], 0  ;;  %s3508_s0 = inlined_call_operand.vmem [shape: f32[72], index: 0, kind: input, shape index: {}]   ;;  %s3509_s1 = inlined_call_operand.vmem [shape: f32[2], index: 1, kind: input, shape index: {}]   ;;  %s3510_s2 = inlined_call_operand.hbm [shape: f32[2,4,16,16], index: 2, kind: input, shape index: {}]   ;;  %s3511_s3 = inlined_call_operand.vmem [shape: bf16[64,128], index: 3, kind: input, shape index: {}]   ;;  %s3512_s4 = inlined_call_operand.vmem [shape: bf16[32,16], index: 4, kind: input, shape index: {}]   ;;  %s3513_s5 = inlined_call_operand.hbm [shape: f32[1,32,128], index: 5, kind: output, shape index: {}]  }
   0x1   :  { %11 = vsyncpa [#allocation8], 0 }
   0x2   :  { %12 = vsyncpa [#allocation4], 0 }
   0x3   :  { %13 = vsyncpa [#allocation5], 0  ;;  %s20_s20 = sshll.u32 %s3508_s0, 4  ;;  %s30_s23 = sshll.u32 %s3509_s1, 4  ;;  %s21_s20 = int_to_ptr.vmem [resolvable:$true] %s20_s20  ;;  %s31_s23 = int_to_ptr.vmem [resolvable:$true] %s30_s23 }
   0x4   :  { %s2101_s24 = scalar_lea.vmem %s21_s20, 16  ;;  %p2106_p1 = scmp.lt.s32.totalorder %s21_s20, %s21_s20 }
   0x5   :  { %p2102_p0 = scmp.ne.s32.totalorder %s21_s20, %s2101_s24  ;;  %p2107_p2 = scmp.lt.s32.totalorder %s2101_s24, %s2101_s24 }
   0x7   :  { %p2108_p3 = por %p2107_p2, %p2106_p1 }
   0x9   :  { %p2109_p4 = pnand %p2108_p3, %p2102_p0 }
   0xb   :  { %2112 = shalt.err (!%p2109_p4)
}
   0xc   :  { %s2177_s25 = smov [#allocation3]   ;;  %s2113_s26 = scalar_lea.vmem %s31_s23, 16 }
   0xd   :  { %23 = dma.vmem_to_smem %s21_s20, 16, %s2177_s25, [#allocation6]  }
   0xe   :  { %p2114_p5 = scmp.ne.s32.totalorder %s31_s23, %s2113_s26  ;;  %p2118_p6 = scmp.lt.s32.totalorder %s31_s23, %s31_s23 }
   0xf   :  { %p2119_p7 = scmp.lt.s32.totalorder %s2113_s26, %s2113_s26 }
  0x11   :  { %p2120_p8 = por %p2119_p7, %p2118_p6 }
  0x13   :  { %p2121_p9 = pnand %p2120_p8, %p2114_p5 }
  0x15   :  { %2124 = shalt.err (!%p2121_p9)
}
  0x16   :  { %s2178_s0 = smov [#allocation7]   ;;  %s2179_s1 = smov [#allocation9]  }
  0x17   :  { %33 = dma.vmem_to_smem %s31_s23, 16, %s2178_s0, [#allocation8]  }
  0x18   :  { %s39_s27 = sshll.u32 %s2179_s1, 4  ;;  %s2125_s30 = scalar_lea.hbm %s3510_s2, 2048  ;;  %s40_s27 = int_to_ptr.vmem [resolvable:$true] %s39_s27 }
  0x19   :  { %p2126_p10 = scmp.ne.s32.totalorder %s3510_s2, %s2125_s30  ;;  %p2129_p11 = scmp.lt.u32.totalorder %s2125_s30, %s3510_s2 }
  0x1b   :  { %p2131_p12 = pnand %p2129_p11, %p2126_p10 }
  0x1d   :  { %2134 = shalt.err (!%p2131_p12)
}
  0x1e   :  { %s2135_s10 = scalar_lea.vmem %s40_s27, 2048  ;;  %p2140_p0 = scmp.lt.s32.totalorder %s40_s27, %s40_s27 }
  0x1f   :  { %p2136_p13 = scmp.ne.s32.totalorder %s40_s27, %s2135_s10  ;;  %p2141_p1 = scmp.lt.s32.totalorder %s2135_s10, %s2135_s10 }
  0x21   :  { %p2142_p2 = por %p2141_p1, %p2140_p0 }
  0x23   :  { %p2143_p3 = pnand %p2142_p2, %p2136_p13 }
  0x25   :  { %2146 = shalt.err (!%p2143_p3)
}
  0x26   :  { %s2180_s11 = smov 128   ;;  %s2181_s12 = smov 8  }
  0x27   :  { %45 = dma.hbm_to_vmem [thread:$0]  %s3510_s2, 2048, %s40_s27, [#allocation4], %s2180_s11, %s2180_s11, %s2181_s12  }
  0x28   :  { %2169 = dma.done.wait [#allocation6], 16  }
  0x29   :  { %2170 = vsyncadd [#allocation6], 4294967280 }
  0x2a   :  { %2171 = dma.done.wait [#allocation8], 16  }
  0x2b   :  { %2172 = vsyncadd [#allocation8], 4294967280 }
  0x2c   :  { %2173 = dma.done.wait [#allocation4], 2048  }
  0x2d   :  { %2174 = vsyncadd [#allocation4], 4294965248 }
  0x2e   :  { %59 = sfence }
  0x2f   :  { %v95_v0 = vld [vmem:[#allocation9 + $0x40] sm:$0xff]  ;;  %vm61_vm0 = vcmask 146432   ;;  %s2182_s15 = smov 1   ;;  %vm64_vm1 = vcmask 140288   ;;  %v96_v2 = vld [vmem:[#allocation9 + $0x48] sm:$0xff]  ;;  %v3514_v4 = vmov 0.0  }
  0x30   :  { %v87_v1 = vld [vmem:[#allocation9] sm:$0xff]  ;;  %135 = vrot.lane.b32.xlu1 %v95_v0, %s2182_s15  ;;  %v88_v3 = vld [vmem:[#allocation9 + $0x8] sm:$0xff]  ;;  %75 = vst.msk [vmem:[#allocation2 + $0x60] sm:$0xff] %vm61_vm0, %v3514_v4  ;;  %76 = vst.msk [vmem:[#allocation2 + $0x68] sm:$0xff] %vm61_vm0, %v3514_v4  ;;  %2024 = vmatprep.subr.bf16.mxu0 %v3514_v4  ;;  %vm167_vm2 = vcmask 138248   ;;  %s1971_s2 = sld [smem:[#allocation3 + $0x25]] }
  0x31   :  { %119 = vrot.lane.b32.xlu0 %v87_v1, %s2182_s15  ;;  %62 = vst.msk [vmem:[#allocation2] sm:$0xff] %vm61_vm0, %v3514_v4  ;;  %63 = vst.msk [vmem:[#allocation2 + $0x8] sm:$0xff] %vm61_vm0, %v3514_v4  ;;  %v89_v5 = vld [vmem:[#allocation9 + $0x10] sm:$0xff]  ;;  %v90_v6 = vld [vmem:[#allocation9 + $0x18] sm:$0xff]  ;;  %s1935_s16 = sld [smem:[#allocation3 + $0x1]]  ;;  %s1972_s17 = sld [smem:[#allocation3 + $0x26]] }
  0x32   :  { %66 = vst.msk [vmem:[#allocation2 + $0x18] sm:$0xff] %vm61_vm0, %v3514_v4  ;;  %67 = vst.msk [vmem:[#allocation2 + $0x20] sm:$0xff] %vm61_vm0, %v3514_v4  ;;  %v97_v7 = vld [vmem:[#allocation9 + $0x50] sm:$0xff]  ;;  %v98_v8 = vld [vmem:[#allocation9 + $0x58] sm:$0xff]  ;;  %s2184_s18 = smov 127   ;;  %s1936_s19 = sld [smem:[#allocation3 + $0x2]] }
  0x33   :  { %69 = vst.msk [vmem:[#allocation2 + $0x30] sm:$0xff] %vm61_vm0, %v3514_v4  ;;  %70 = vst.msk [vmem:[#allocation2 + $0x38] sm:$0xff] %vm61_vm0, %v3514_v4  ;;  %v91_v9 = vld [vmem:[#allocation9 + $0x20] sm:$0xff]  ;;  %v92_v10 = vld [vmem:[#allocation9 + $0x28] sm:$0xff]  ;;  %s2185_s20 = smov 126   ;;  %s1974_s21 = sld [smem:[#allocation3 + $0x28]] }
  0x34   :  { %72 = vst.msk [vmem:[#allocation2 + $0x48] sm:$0xff] %vm61_vm0, %v3514_v4  ;;  %73 = vst.msk [vmem:[#allocation2 + $0x50] sm:$0xff] %vm61_vm0, %v3514_v4  ;;  %137 = vrot.lane.b32.xlu1 %v96_v2, %s2182_s15  ;;  %v99_v11 = vld [vmem:[#allocation9 + $0x60] sm:$0xff]  ;;  %v100_v12 = vld [vmem:[#allocation9 + $0x68] sm:$0xff]  ;;  %s1938_s22 = sld [smem:[#allocation3 + $0x4]]  ;;  %s1975_s23 = sld [smem:[#allocation3 + $0x29]] }
  0x35   :  { %78 = vst.msk [vmem:[#allocation2 + $0x78] sm:$0xff] %vm61_vm0, %v3514_v4  ;;  %79 = vst.msk [vmem:[#allocation2 + $0x80] sm:$0xff] %vm61_vm0, %v3514_v4  ;;  %121 = vrot.lane.b32.xlu0 %v88_v3, %s2182_s15  ;;  %v93_v13 = vld [vmem:[#allocation9 + $0x30] sm:$0xff]  ;;  %v94_v14 = vld [vmem:[#allocation9 + $0x38] sm:$0xff]  ;;  %s1939_s24 = sld [smem:[#allocation3 + $0x5]]  ;;  %s1977_s25 = sld [smem:[#allocation3 + $0x2b]] }
  0x36   :  { %81 = vst.msk [vmem:[#allocation2 + $0x90] sm:$0xff] %vm61_vm0, %v3514_v4  ;;  %82 = vst.msk [vmem:[#allocation2 + $0x98] sm:$0xff] %vm61_vm0, %v3514_v4  ;;  %v101_v15 = vld [vmem:[#allocation9 + $0x70] sm:$0xff]  ;;  %v102_v16 = vld [vmem:[#allocation9 + $0x78] sm:$0xff]  ;;  %v285_v21 = vstv %s1971_s2  ;;  %s1941_s26 = sld [smem:[#allocation3 + $0x7]]  ;;  %s1978_s0 = sld [smem:[#allocation3 + $0x2c]] }
  0x37   :  { %84 = vst.msk [vmem:[#allocation2 + $0xa8] sm:$0xff] %vm61_vm0, %v3514_v4  ;;  %85 = vst.msk [vmem:[#allocation2 + $0xb0] sm:$0xff] %vm61_vm0, %v3514_v4  ;;  %v2315_v27 = vstv %s1935_s16  ;;  %v311_v34 = vstv %s1972_s17  ;;  %s1950_s1 = sld [smem:[#allocation3 + $0x10]]  ;;  %s1951_s28 = sld [smem:[#allocation3 + $0x11]]  ;;  %vm2187_vm3 = vmmov 0   ;;  %vm1755_vm4 = vcmask 130048  }
  0x38   :  { %77 = vst.msk [vmem:[#allocation2 + $0x70] sm:$0x3] %vm64_vm1, %v3514_v4  ;;  %65 = vst.msk [vmem:[#allocation2 + $0x10] sm:$0x3] %vm64_vm1, %v3514_v4  ;;  %125 = vrot.lane.b32.xlu1 %v90_v6, %s2182_s15  ;;  %v2337_v43 = vstv %s1936_s19  ;;  %s1942_s27 = sld [smem:[#allocation3 + $0x8]]  ;;  %s1953_s29 = sld [smem:[#allocation3 + $0x13]] }
  0x39   :  { %68 = vst.msk [vmem:[#allocation2 + $0x28] sm:$0x3] %vm64_vm1, %v3514_v4  ;;  %71 = vst.msk [vmem:[#allocation2 + $0x40] sm:$0x3] %vm64_vm1, %v3514_v4  ;;  %123 = vrot.lane.b32.xlu0 %v89_v5, %s2182_s15  ;;  %v349_v53 = vstv %s1974_s21  ;;  %s1980_s30 = sld [smem:[#allocation3 + $0x2e]]  ;;  %s1954_s6 = sld [smem:[#allocation3 + $0x14]] }
  0x3a   :  { %74 = vst.msk [vmem:[#allocation2 + $0x58] sm:$0x3] %vm64_vm1, %v3514_v4  ;;  %80 = vst.msk [vmem:[#allocation2 + $0x88] sm:$0x3] %vm64_vm1, %v3514_v4  ;;  %v2363_v58 = vstv %s1938_s22  ;;  %v375_v62 = vstv %s1975_s23  ;;  %s1956_s7 = sld [smem:[#allocation3 + $0x16]]  ;;  %s2418_s8 = sld [smem:[#allocation3 + $0x17]] }
  0x3b   :  { %83 = vst.msk [vmem:[#allocation2 + $0xa0] sm:$0x3] %vm64_vm1, %v3514_v4  ;;  %86 = vst.msk [vmem:[#allocation2 + $0xb8] sm:$0x3] %vm64_vm1, %v3514_v4  ;;  %v2381_v3 = vstv %s1939_s24  ;;  %s2422_s9 = sld [smem:[#allocation3 + $0x19]]  ;;  %s2424_s10 = sld [smem:[#allocation3 + $0x1a]] }
  0x3c   :  { %141 = vrot.lane.b32.xlu1 %v98_v8, %s2182_s15  ;;  %3575 = vst [vmem:[#allocation15_spill] sm:$0xff] %v2315_v27  ;;  %3576 = vst [vmem:[#allocation16_spill] sm:$0xff] %v2337_v43  ;;  %s2426_s13 = sld [smem:[#allocation3 + $0x1c]]  ;;  %s2435_s14 = sld [smem:[#allocation3 + $0x1d]]  ;;  %vm1758_vm5 = vcmask 261120   ;;  %vm1761_vm6 = vcmask 392192  }
  0x3d   :  { %139 = vrot.lane.b32.xlu0 %v97_v7, %s2182_s15  ;;  %3577 = vst [vmem:[#allocation17_spill] sm:$0xff] %v2363_v58  ;;  %3578 = vst [vmem:[#allocation18_spill] sm:$0xff] %v2381_v3  ;;  %s2453_s2 = sld [smem:[#allocation3 + $0x20]]  ;;  %s2458_s16 = sld [smem:[#allocation3 + $0xa]]  ;;  %vm1797_vm7 = vcmask 523264  }
  0x3e   :  { %s2462_s17 = sld [smem:[#allocation3 + $0x22]]  ;;  %s2474_s19 = sld [smem:[#allocation3 + $0x23]] }
  0x3f   :  { %s2536_s21 = sld [smem:[#allocation3 + $0x2f]]  ;;  %s2562_s23 = sld [smem:[#allocation3 + $0x12]] }
  0x40   :  { %129 = vrot.lane.b32.xlu1 %v92_v10, %s2182_s15  ;;  %v413_v10 = vstv %s1977_s25  ;;  %s2543_s22 = sld [smem:[#allocation3 + $0xf]]  ;;  %s2564_s24 = sld [smem:[#allocation3 + $0x15]] }
  0x41   :  { %127 = vrot.lane.b32.xlu0 %v91_v9, %s2182_s15  ;;  %s2587_s25 = sld [smem:[#allocation3 + $0x18]] }
  0x44   :  { %145 = vrot.lane.b32.xlu1 %v100_v12, %s2182_s15 }
  0x45   :  { %143 = vrot.lane.b32.xlu0 %v99_v11, %s2182_s15 }
  0x48   :  { %133 = vrot.lane.b32.xlu1 %v94_v14, %s2182_s15  ;;  %v2399_v14 = vstv %s1941_s26  ;;  %s2589_s26 = sld [smem:[#allocation3 + $0x1b]] }
  0x49   :  { %131 = vrot.lane.b32.xlu0 %v93_v13, %s2182_s15  ;;  %3579 = vst [vmem:[#allocation19_spill] sm:$0xff] %v2399_v14 }
  0x4c   :  { %149 = vrot.lane.b32.xlu1 %v102_v16, %s2182_s15 }
  0x4d   :  { %147 = vrot.lane.b32.xlu0 %v101_v15, %s2182_s15  ;;  %s2443_s15 = sld [smem:[#allocation3 + $0x1f]] }
  0xa2   :  { %v136_v17 = vpop.permute.xlu1 %135 }
  0xa3   :  { %v120_v18 = vpop.permute.xlu0 %119  ;;  %176 = vst.msk [vmem:[#allocation2 + $0x61] sm:$0xff] %vm167_vm2, %v136_v17 }
  0xa4   :  { %168 = vst.msk [vmem:[#allocation2 + $0x1] sm:$0xff] %vm167_vm2, %v120_v18 }
  0xa6   :  { %v138_v19 = vpop.permute.xlu1 %137 }
  0xa7   :  { %v122_v20 = vpop.permute.xlu0 %121  ;;  %177 = vst.msk [vmem:[#allocation2 + $0x69] sm:$0xff] %vm167_vm2, %v138_v19  ;;  %v2410_v19 = vstv %s1978_s0  ;;  %s1964_s0 = sld [smem:[#allocation3 + $0x1e]] }
  0xa8   :  { %169 = vst.msk [vmem:[#allocation2 + $0x9] sm:$0xff] %vm167_vm2, %v122_v20 }
  0xaa   :  { %v2311_v23 = vld [vmem:[#allocation2 + $0x60] sm:$0xff]  ;;  %v126_v25 = vpop.permute.xlu1 %125 }
  0xab   :  { %v260_v22 = vld [vmem:[#allocation2] sm:$0xff]  ;;  %v124_v24 = vpop.permute.xlu0 %123  ;;  %171 = vst.msk [vmem:[#allocation2 + $0x21] sm:$0xff] %vm167_vm2, %v126_v25  ;;  %v1042_v28 = vmul.f32 %v2311_v23, %v2315_v27  ;;  %v1054_v42 = vmul.f32 %v2311_v23, %v285_v21  ;;  %v1066_v47 = vmul.f32 %v2311_v23, %v2337_v43  ;;  %v1078_v51 = vmul.f32 %v2311_v23, %v311_v34 }
  0xac   :  { %v286_v26 = vmul.f32 %v285_v21, %v260_v22  ;;  %170 = vst.msk [vmem:[#allocation2 + $0x19] sm:$0xff] %vm167_vm2, %v124_v24  ;;  %v312_v38 = vmul.f32 %v311_v34, %v260_v22  ;;  %v2351_v52 = vld [vmem:[#allocation2 + $0x1] sm:$0xff] }
  0xad   :  { %v350_v55 = vmul.f32 %v349_v53, %v2351_v52  ;;  %v2359_v57 = vld [vmem:[#allocation2 + $0x61] sm:$0xff]  ;;  %v376_v0 = vmul.f32 %v375_v62, %v2351_v52 }
  0xae   :  { %290 = vrot.lane.b32.xlu0 %v286_v26, %s2184_s18  ;;  %v142_v31 = vpop.permute.xlu1 %141  ;;  %v2322_v33 = vld [vmem:[#allocation2 + $0x68] sm:$0xff]  ;;  %v1100_v60 = vmul.f32 %v2359_v57, %v2363_v58  ;;  %v1112_v2 = vmul.f32 %v2359_v57, %v349_v53  ;;  %v1124_v6 = vmul.f32 %v2359_v57, %v2381_v3  ;;  %v1136_v8 = vmul.f32 %v2359_v57, %v375_v62 }
  0xaf   :  { %v261_v29 = vld [vmem:[#allocation2 + $0x8] sm:$0xff]  ;;  %v140_v30 = vpop.permute.xlu0 %139  ;;  %179 = vst.msk [vmem:[#allocation2 + $0x81] sm:$0xff] %vm167_vm2, %v142_v31  ;;  %v1043_v37 = vmul.f32 %v2322_v33, %v2315_v27  ;;  %v1055_v46 = vmul.f32 %v2322_v33, %v285_v21  ;;  %v1067_v50 = vmul.f32 %v2322_v33, %v2337_v43  ;;  %v1079_v54 = vmul.f32 %v2322_v33, %v311_v34 }
  0xb0   :  { %v287_v32 = vmul.f32 %v285_v21, %v261_v29  ;;  %178 = vst.msk [vmem:[#allocation2 + $0x79] sm:$0xff] %vm167_vm2, %v140_v30  ;;  %v313_v41 = vmul.f32 %v311_v34, %v261_v29  ;;  %v2357_v56 = vld [vmem:[#allocation2 + $0x9] sm:$0xff]  ;;  %v2433_v26 = vstv %s1950_s1  ;;  %v2441_v30 = vstv %s1951_s28  ;;  %s1967_s1 = sld [smem:[#allocation3 + $0x21]] }
  0xb1   :  { %v351_v59 = vmul.f32 %v349_v53, %v2357_v56  ;;  %v2368_v61 = vld [vmem:[#allocation2 + $0x69] sm:$0xff]  ;;  %v377_v1 = vmul.f32 %v375_v62, %v2357_v56  ;;  %v2451_v34 = vstv %s1953_s29  ;;  %s1983_s28 = sld [smem:[#allocation3 + $0x31]]  ;;  %s1947_s29 = sld [smem:[#allocation3 + $0xd]] }
  0xb2   :  { %292 = vrot.lane.b32.xlu1 %v287_v32, %s2184_s18  ;;  %1046 = vrot.lane.b32.xlu0 %v1042_v28, %s2184_s18  ;;  %v130_v36 = vpop.permute.xlu1 %129  ;;  %v1101_v63 = vmul.f32 %v2368_v61, %v2363_v58  ;;  %v1113_v5 = vmul.f32 %v2368_v61, %v349_v53  ;;  %v1125_v7 = vmul.f32 %v2368_v61, %v2381_v3  ;;  %v2391_v9 = vld [vmem:[#allocation2 + $0x2] sm:$0xff]  ;;  %v2397_v13 = vld [vmem:[#allocation2 + $0xa] sm:$0xff]  ;;  %v2437_v28 = vstv %s1942_s27  ;;  %s1945_s27 = sld [smem:[#allocation3 + $0xb]] }
  0xb3   :  { %v128_v35 = vpop.permute.xlu0 %127  ;;  %173 = vst.msk [vmem:[#allocation2 + $0x39] sm:$0xff] %vm167_vm2, %v130_v36  ;;  %v1137_v11 = vmul.f32 %v2368_v61, %v375_v62  ;;  %v414_v12 = vmul.f32 %v413_v10, %v2391_v9  ;;  %v2401_v15 = vld [vmem:[#allocation2 + $0x62] sm:$0xff]  ;;  %v415_v16 = vmul.f32 %v413_v10, %v2397_v13  ;;  %v2408_v18 = vld [vmem:[#allocation2 + $0x6a] sm:$0xff]  ;;  %v440_v21 = vmul.f32 %v2410_v19, %v2391_v9  ;;  %v2431_v25 = vld [vmem:[#allocation2 + $0x1a] sm:$0xff] }
  0xb4   :  { %172 = vst.msk [vmem:[#allocation2 + $0x31] sm:$0xff] %vm167_vm2, %v128_v35  ;;  %v1158_v17 = vmul.f32 %v2401_v15, %v2399_v14  ;;  %v1159_v20 = vmul.f32 %v2408_v18, %v2399_v14  ;;  %v441_v22 = vmul.f32 %v2410_v19, %v2397_v13  ;;  %v1170_v24 = vmul.f32 %v2401_v15, %v413_v10  ;;  %v2439_v29 = vld [vmem:[#allocation2 + $0x22] sm:$0xff]  ;;  %v2521_v62 = vld [vmem:[#allocation2 + $0x18] sm:$0xff] }
  0xb5   :  { %3580 = vst [vmem:[#allocation20_spill] sm:$0xff] %v2437_v28  ;;  %v1171_v35 = vmul.f32 %v2408_v18, %v413_v10  ;;  %v2456_v36 = vstv %s1980_s30  ;;  %s1984_s30 = sld [smem:[#allocation3 + $0x32]] }
  0xb6   :  { %1048 = vrot.lane.b32.xlu1 %v1043_v37, %s2184_s18  ;;  %316 = vrot.lane.b32.xlu0 %v312_v38, %s2185_s20  ;;  %v146_v40 = vpop.permute.xlu1 %145  ;;  %v2460_v37 = vstv %s1954_s6  ;;  %v2466_v38 = vmul.f32 %v2433_v26, %v2431_v25  ;;  %s1948_s6 = sld [smem:[#allocation3 + $0xe]] }
  0xb7   :  { %v144_v39 = vpop.permute.xlu0 %143  ;;  %181 = vst.msk [vmem:[#allocation2 + $0x99] sm:$0xff] %vm167_vm2, %v146_v40  ;;  %v2602_v4 = vld [vmem:[#allocation2 + $0x78] sm:$0xff] }
  0xb8   :  { %180 = vst.msk [vmem:[#allocation2 + $0x91] sm:$0xff] %vm167_vm2, %v144_v39  ;;  %3581 = vst [vmem:[#allocation21_spill] sm:$0xff] %v2466_v38  ;;  %v1182_v39 = vmul.f32 %v2401_v15, %v2437_v28 }
  0xba   :  { %318 = vrot.lane.b32.xlu1 %v313_v41, %s2185_s20  ;;  %1058 = vrot.lane.b32.xlu0 %v1054_v42, %s2184_s18  ;;  %v134_v45 = vpop.permute.xlu1 %133  ;;  %v2472_v41 = vstv %s1956_s7  ;;  %v2478_v42 = vmul.f32 %v2433_v26, %v2439_v29  ;;  %v2507_v53 = vld [vmem:[#allocation2 + $0x3a] sm:$0xff]  ;;  %s1986_s7 = sld [smem:[#allocation3 + $0x34]] }
  0xbb   :  { %v132_v44 = vpop.permute.xlu0 %131  ;;  %175 = vst.msk [vmem:[#allocation2 + $0x51] sm:$0xff] %vm167_vm2, %v134_v45  ;;  %v2447_v31 = vld [vmem:[#allocation2 + $0x30] sm:$0xff]  ;;  %v2449_v32 = vld [vmem:[#allocation2 + $0x38] sm:$0xff] }
  0xbc   :  { %174 = vst.msk [vmem:[#allocation2 + $0x49] sm:$0xff] %vm167_vm2, %v132_v44  ;;  %v2470_v40 = vld [vmem:[#allocation2 + $0x31] sm:$0xff]  ;;  %3582 = vst [vmem:[#allocation22_spill] sm:$0xff] %v2478_v42  ;;  %v2482_v44 = vmul.f32 %v2441_v30, %v2431_v25  ;;  %v2484_v45 = vld [vmem:[#allocation2 + $0x39] sm:$0xff] }
  0xbe   :  { %1060 = vrot.lane.b32.xlu1 %v1055_v46, %s2184_s18  ;;  %1070 = vrot.lane.b32.xlu0 %v1066_v47, %s2185_s20  ;;  %v150_v49 = vpop.permute.xlu1 %149  ;;  %3583 = vst [vmem:[#allocation23_spill] sm:$0xff] %v2482_v44  ;;  %v2487_v46 = vstv %s2418_s8  ;;  %v2491_v47 = vmul.f32 %v2441_v30, %v2439_v29  ;;  %v2681_v44 = vstv %s1967_s1  ;;  %s184_s8 = sld [smem:[#allocation3]]  ;;  %s1946_s1 = sld [smem:[#allocation3 + $0xc]] }
  0xbf   :  { %v148_v48 = vpop.permute.xlu0 %147  ;;  %183 = vst.msk [vmem:[#allocation2 + $0xb1] sm:$0xff] %vm167_vm2, %v150_v49  ;;  %v2499_v49 = vmul.f32 %v2451_v34, %v2449_v32  ;;  %v2555_v10 = vmul.f32 %v2487_v46, %v2484_v45  ;;  %3620 = vst [vmem:[#allocation60_spill] sm:$0xff] %v2681_v44 }
  0xc0   :  { %182 = vst.msk [vmem:[#allocation2 + $0xa9] sm:$0xff] %vm167_vm2, %v148_v48  ;;  %3584 = vst [vmem:[#allocation24_spill] sm:$0xff] %v2491_v47  ;;  %v2495_v48 = vmul.f32 %v2451_v34, %v2447_v31  ;;  %v2679_v47 = vstv %s1964_s0  ;;  %s1996_s0 = sld [smem:[#allocation3 + $0x3e]] }
  0xc1   :  { %3586 = vst [vmem:[#allocation26_spill] sm:$0xff] %v2499_v49  ;;  %3593 = vst [vmem:[#allocation33_spill] sm:$0xff] %v2555_v10  ;;  %v2660_v49 = vstv %s2543_s22  ;;  %s1992_s22 = sld [smem:[#allocation3 + $0x3a]] }
  0xc2   :  { %1072 = vrot.lane.b32.xlu1 %v1067_v50, %s2185_s20  ;;  %1082 = vrot.lane.b32.xlu0 %v1078_v51, %s2185_s20  ;;  %3585 = vst [vmem:[#allocation25_spill] sm:$0xff] %v2495_v48  ;;  %v1183_v50 = vmul.f32 %v2408_v18, %v2437_v28  ;;  %v2505_v51 = vld [vmem:[#allocation2 + $0x32] sm:$0xff]  ;;  %v2663_v48 = vstv %s2562_s23  ;;  %3619 = vst [vmem:[#allocation59_spill] sm:$0xff] %v2679_v47  ;;  %v2685_v42 = vmul.f32 %v2660_v49, %v2431_v25  ;;  %s1993_s23 = sld [smem:[#allocation3 + $0x3b]] }
  0xc3   :  { %3615 = vst [vmem:[#allocation55_spill] sm:$0xff] %v2663_v48  ;;  %v2697_v38 = vmul.f32 %v2663_v48, %v2449_v32 }
  0xc4   :  { %3621 = vst [vmem:[#allocation61_spill] sm:$0xff] %v2685_v42 }
  0xc5   :  { %3624 = vst [vmem:[#allocation64_spill] sm:$0xff] %v2697_v38 }
  0xc6   :  { %1084 = vrot.lane.b32.xlu1 %v1079_v54, %s2185_s20  ;;  %354 = vrot.lane.b32.xlu0 %v350_v55, %s2184_s18  ;;  %v2510_v54 = vstv %s2422_s9  ;;  %v2513_v55 = vstv %s2424_s10  ;;  %s1987_s9 = sld [smem:[#allocation3 + $0x35]]  ;;  %s1970_s10 = sld [smem:[#allocation3 + $0x24]] }
  0xca   :  { %356 = vrot.lane.b32.xlu1 %v351_v59, %s2184_s18  ;;  %1104 = vrot.lane.b32.xlu0 %v1100_v60, %s2184_s18  ;;  %v2517_v59 = vmul.f32 %v2460_v37, %v2447_v31  ;;  %v1194_v60 = vmul.f32 %v2401_v15, %v2410_v19 }
  0xcc   :  { %3587 = vst [vmem:[#allocation27_spill] sm:$0xff] %v2517_v59 }
  0xce   :  { %1106 = vrot.lane.b32.xlu1 %v1101_v63, %s2184_s18  ;;  %380 = vrot.lane.b32.xlu0 %v376_v0, %s2185_s20  ;;  %v2523_v63 = vld [vmem:[#allocation2 + $0x48] sm:$0xff]  ;;  %v2526_v0 = vstv %s2426_s13  ;;  %s256_s13 = sld [smem:[#allocation7]] }
  0xd2   :  { %382 = vrot.lane.b32.xlu1 %v377_v1, %s2185_s20  ;;  %1116 = vrot.lane.b32.xlu0 %v1112_v2, %s2184_s18  ;;  %v2530_v1 = vmul.f32 %v2460_v37, %v2449_v32  ;;  %v2534_v2 = vmul.f32 %v2472_v41, %v2470_v40 }
  0xd4   :  { %3588 = vst [vmem:[#allocation28_spill] sm:$0xff] %v2530_v1  ;;  %3589 = vst [vmem:[#allocation29_spill] sm:$0xff] %v2534_v2  ;;  %v2821_v14 = vstv %s256_s13  ;;  %s2005_s13 = sld [smem:[#allocation3 + $0x47]] }
  0xd5   :  { %3641 = vst [vmem:[#allocation81_spill] sm:$0xff] %v2821_v14 }
  0xd6   :  { %1118 = vrot.lane.b32.xlu1 %v1113_v5, %s2184_s18  ;;  %1128 = vrot.lane.b32.xlu0 %v1124_v6, %s2185_s20  ;;  %v2538_v5 = vld [vmem:[#allocation2 + $0x50] sm:$0xff]  ;;  %v2541_v6 = vstv %s2435_s14  ;;  %s2006_s14 = sld [smem:[#allocation7 + $0x1]] }
  0xd7   :  { %3590 = vst [vmem:[#allocation30_spill] sm:$0xff] %v2541_v6  ;;  %v2613_v10 = vmul.f32 %v2541_v6, %v2523_v63 }
  0xd9   :  { %3604 = vst [vmem:[#allocation44_spill] sm:$0xff] %v2613_v10 }
  0xda   :  { %1130 = vrot.lane.b32.xlu1 %v1125_v7, %s2185_s20  ;;  %1140 = vrot.lane.b32.xlu0 %v1136_v8, %s2185_s20  ;;  %v2547_v7 = vmul.f32 %v2472_v41, %v2484_v45  ;;  %v2551_v8 = vmul.f32 %v2487_v46, %v2470_v40 }
  0xdc   :  { %3591 = vst [vmem:[#allocation31_spill] sm:$0xff] %v2547_v7  ;;  %3592 = vst [vmem:[#allocation32_spill] sm:$0xff] %v2551_v8  ;;  %v2618_v8 = vstv %s2474_s19  ;;  %v2622_v7 = vmul.f32 %v2541_v6, %v2538_v5  ;;  %s1940_s19 = sld [smem:[#allocation3 + $0x6]] }
  0xdd   :  { %3605 = vst [vmem:[#allocation45_spill] sm:$0xff] %v2618_v8 }
  0xde   :  { %1142 = vrot.lane.b32.xlu1 %v1137_v11, %s2185_s20  ;;  %418 = vrot.lane.b32.xlu0 %v414_v12, %s2184_s18  ;;  %v2557_v11 = vld [vmem:[#allocation2 + $0x49] sm:$0xff]  ;;  %v2560_v12 = vstv %s2443_s15  ;;  %3606 = vst [vmem:[#allocation46_spill] sm:$0xff] %v2622_v7  ;;  %s1937_s15 = sld [smem:[#allocation3 + $0x3]] }
  0xdf   :  { %3594 = vst [vmem:[#allocation34_spill] sm:$0xff] %v2560_v12 }
  0xe2   :  { %420 = vrot.lane.b32.xlu1 %v415_v16, %s2184_s18  ;;  %1162 = vrot.lane.b32.xlu0 %v1158_v17, %s2184_s18  ;;  %v2568_v16 = vmul.f32 %v2510_v54, %v2505_v51  ;;  %v2572_v17 = vmul.f32 %v2510_v54, %v2507_v53 }
  0xe4   :  { %3595 = vst [vmem:[#allocation35_spill] sm:$0xff] %v2568_v16  ;;  %3596 = vst [vmem:[#allocation36_spill] sm:$0xff] %v2572_v17  ;;  %v2605_v17 = vstv %s2462_s17  ;;  %v2609_v16 = vmul.f32 %v2526_v0, %v2538_v5  ;;  %s1990_s17 = sld [smem:[#allocation3 + $0x38]] }
  0xe5   :  { %3602 = vst [vmem:[#allocation42_spill] sm:$0xff] %v2605_v17 }
  0xe6   :  { %1164 = vrot.lane.b32.xlu1 %v1159_v20, %s2184_s18  ;;  %444 = vrot.lane.b32.xlu0 %v440_v21, %s2185_s20  ;;  %v2576_v20 = vmul.f32 %v2513_v55, %v2505_v51  ;;  %v479_v21 = vmul.f32 %v2456_v36, %v2521_v62  ;;  %3603 = vst [vmem:[#allocation43_spill] sm:$0xff] %v2609_v16 }
  0xe7   :  { %v2626_v16 = vmul.f32 %v2560_v12, %v2557_v11 }
  0xe8   :  { %3597 = vst [vmem:[#allocation37_spill] sm:$0xff] %v2576_v20  ;;  %v967_v20 = vld [vmem:[#allocation2 + $0x4a] sm:$0xff] }
  0xe9   :  { %3607 = vst [vmem:[#allocation47_spill] sm:$0xff] %v2626_v16  ;;  %v2645_v1 = vmul.f32 %v2605_v17, %v967_v20 }
  0xea   :  { %446 = vrot.lane.b32.xlu1 %v441_v22, %s2185_s20  ;;  %1174 = vrot.lane.b32.xlu0 %v1170_v24, %s2184_s18  ;;  %v2582_v22 = vld [vmem:[#allocation2 + $0x20] sm:$0xff]  ;;  %v904_v24 = vld [vmem:[#allocation2 + $0x51] sm:$0xff] }
  0xeb   :  { %v480_v10 = vmul.f32 %v2456_v36, %v2582_v22  ;;  %3611 = vst [vmem:[#allocation51_spill] sm:$0xff] %v2645_v1  ;;  %v2673_v1 = vstv %s2587_s25  ;;  %s1979_s25 = sld [smem:[#allocation3 + $0x2d]] }
  0xec   :  { %3617 = vst [vmem:[#allocation57_spill] sm:$0xff] %v2673_v1  ;;  %v2709_v42 = vmul.f32 %v2673_v1, %v2505_v51 }
  0xee   :  { %1176 = vrot.lane.b32.xlu1 %v1171_v35, %s2184_s18  ;;  %1186 = vrot.lane.b32.xlu0 %v1182_v39, %s2185_s20  ;;  %v2585_v35 = vstv %s2453_s2  ;;  %v2593_v39 = vmul.f32 %v2513_v55, %v2507_v53  ;;  %3627 = vst [vmem:[#allocation67_spill] sm:$0xff] %v2709_v42  ;;  %v2730_v42 = vmul.f32 %v2679_v47, %v904_v24  ;;  %s1973_s2 = sld [smem:[#allocation3 + $0x27]] }
  0xef   :  { %3598 = vst [vmem:[#allocation38_spill] sm:$0xff] %v2585_v35  ;;  %v2635_v2 = vmul.f32 %v2585_v35, %v2557_v11  ;;  %v2642_v7 = vmul.f32 %v2585_v35, %v904_v24  ;;  %v2835_v35 = vstv %s2006_s14  ;;  %s1994_s14 = sld [smem:[#allocation3 + $0x3c]] }
  0xf0   :  { %3599 = vst [vmem:[#allocation39_spill] sm:$0xff] %v2593_v39  ;;  %v968_v39 = vld [vmem:[#allocation2 + $0x52] sm:$0xff]  ;;  %3632 = vst [vmem:[#allocation72_spill] sm:$0xff] %v2730_v42  ;;  %v2766_v42 = vstv %s1947_s29  ;;  %s1999_s29 = sld [smem:[#allocation3 + $0x41]] }
  0xf1   :  { %3609 = vst [vmem:[#allocation49_spill] sm:$0xff] %v2635_v2  ;;  %3610 = vst [vmem:[#allocation50_spill] sm:$0xff] %v2642_v7  ;;  %v2650_v59 = vmul.f32 %v2605_v17, %v968_v39  ;;  %v504_v2 = vstv %s2536_s21  ;;  %v2666_v7 = vstv %s2564_s24  ;;  %s1976_s21 = sld [smem:[#allocation3 + $0x2a]]  ;;  %s1943_s24 = sld [smem:[#allocation3 + $0x9]] }
  0xf2   :  { %1188 = vrot.lane.b32.xlu1 %v1183_v50, %s2185_s20  ;;  %1198 = vrot.lane.b32.xlu0 %v1194_v60, %s2185_s20  ;;  %v2597_v50 = vmul.f32 %v2526_v0, %v2523_v63  ;;  %v2600_v60 = vstv %s2458_s16  ;;  %3616 = vst [vmem:[#allocation56_spill] sm:$0xff] %v2666_v7  ;;  %v2705_v28 = vmul.f32 %v2666_v7, %v2484_v45  ;;  %3637 = vst [vmem:[#allocation77_spill] sm:$0xff] %v2766_v42  ;;  %s1989_s16 = sld [smem:[#allocation3 + $0x37]] }
  0xf3   :  { %3601 = vst [vmem:[#allocation41_spill] sm:$0xff] %v2600_v60  ;;  %v1217_v16 = vmul.f32 %v2602_v4, %v2600_v60  ;;  %3612 = vst [vmem:[#allocation52_spill] sm:$0xff] %v2650_v59 }
  0xf4   :  { %3600 = vst [vmem:[#allocation40_spill] sm:$0xff] %v2597_v50  ;;  %v1195_v50 = vmul.f32 %v2408_v18, %v2410_v19  ;;  %v2631_v19 = vmul.f32 %v2560_v12, %v904_v24  ;;  %3626 = vst [vmem:[#allocation66_spill] sm:$0xff] %v2705_v28  ;;  %v2727_v28 = vmul.f32 %v2679_v47, %v2557_v11  ;;  %v2743_v11 = vstv %s1945_s27  ;;  %s1982_s27 = sld [smem:[#allocation3 + $0x30]] }
  0xf5   :  { %3635 = vst [vmem:[#allocation75_spill] sm:$0xff] %v2743_v11 }
  0xf6   :  { %3608 = vst [vmem:[#allocation48_spill] sm:$0xff] %v2631_v19  ;;  %1200 = vrot.lane.b32.xlu1 %v1195_v50, %s2185_s20  ;;  %483 = vrot.lane.b32.xlu0 %v479_v21, %s2184_s18  ;;  %v2647_v19 = vld [vmem:[#allocation2 + $0x80] sm:$0xff]  ;;  %v2653_v50 = vmul.f32 %v2618_v8, %v967_v20  ;;  %v2656_v21 = vmul.f32 %v2618_v8, %v968_v39  ;;  %3631 = vst [vmem:[#allocation71_spill] sm:$0xff] %v2727_v28 }
  0xf7   :  { %v1218_v59 = vmul.f32 %v2647_v19, %v2600_v60  ;;  %v2701_v60 = vmul.f32 %v2666_v7, %v2470_v40  ;;  %v1230_v24 = vmul.f32 %v2647_v19, %v2456_v36 }
  0xf8   :  { %3613 = vst [vmem:[#allocation53_spill] sm:$0xff] %v2653_v50  ;;  %3614 = vst [vmem:[#allocation54_spill] sm:$0xff] %v2656_v21  ;;  %v2676_v50 = vstv %s2589_s26  ;;  %v505_v21 = vmul.f32 %v504_v2, %v2521_v62  ;;  %s1995_s26 = sld [smem:[#allocation3 + $0x3d]] }
  0xf9   :  { %3618 = vst [vmem:[#allocation58_spill] sm:$0xff] %v2676_v50  ;;  %3625 = vst [vmem:[#allocation65_spill] sm:$0xff] %v2701_v60  ;;  %v2723_v60 = vmul.f32 %v2676_v50, %v2538_v5 }
  0xfa   :  { %485 = vrot.lane.b32.xlu1 %v480_v10, %s2184_s18  ;;  %1221 = vrot.lane.b32.xlu0 %v1217_v16, %s2184_s18  ;;  %v2689_v10 = vmul.f32 %v2660_v49, %v2439_v29  ;;  %v2693_v16 = vmul.f32 %v2663_v48, %v2447_v31 }
  0xfb   :  { %3630 = vst [vmem:[#allocation70_spill] sm:$0xff] %v2723_v60 }
  0xfc   :  { %3622 = vst [vmem:[#allocation62_spill] sm:$0xff] %v2689_v10  ;;  %3623 = vst [vmem:[#allocation63_spill] sm:$0xff] %v2693_v16  ;;  %v2713_v10 = vmul.f32 %v2673_v1, %v2507_v53  ;;  %v2717_v16 = vmul.f32 %v2676_v50, %v2523_v63  ;;  %v2802_v50 = vld [vmem:[#allocation2 + $0x7a] sm:$0xff]  ;;  %v2815_v1 = vld [vmem:[#allocation2 + $0x82] sm:$0xff] }
  0xfd   :  { %3640 = vst [vmem:[#allocation80_spill] sm:$0xff] %v2815_v1  ;;  %v1334_v7 = vmul.f32 %v2815_v1, %v2433_v26 }
  0xfe   :  { %3628 = vst [vmem:[#allocation68_spill] sm:$0xff] %v2713_v10  ;;  %3629 = vst [vmem:[#allocation69_spill] sm:$0xff] %v2717_v16  ;;  %1223 = vrot.lane.b32.xlu1 %v1218_v59, %s2184_s18  ;;  %509 = vrot.lane.b32.xlu0 %v505_v21, %s2185_s20  ;;  %v2733_v10 = vmul.f32 %v2681_v44, %v967_v20  ;;  %v2736_v16 = vmul.f32 %v2681_v44, %v968_v39 }
  0xff   :  { %v506_v59 = vmul.f32 %v504_v2, %v2582_v22  ;;  %v1229_v21 = vmul.f32 %v2602_v4, %v2456_v36  ;;  %v1241_v20 = vmul.f32 %v2602_v4, %v2743_v11  ;;  %v1242_v39 = vmul.f32 %v2647_v19, %v2743_v11 }
 0x100   :  { %3633 = vst [vmem:[#allocation73_spill] sm:$0xff] %v2733_v10  ;;  %3634 = vst [vmem:[#allocation74_spill] sm:$0xff] %v2736_v16  ;;  %v2754_v16 = vld [vmem:[#allocation2 + $0x19] sm:$0xff]  ;;  %v1254_v36 = vmul.f32 %v2647_v19, %v504_v2  ;;  %v2760_v10 = vld [vmem:[#allocation2 + $0x21] sm:$0xff]  ;;  %v1333_v11 = vmul.f32 %v2802_v50, %v2433_v26 }
 0x101   :  { %3636 = vst [vmem:[#allocation76_spill] sm:$0xff] %v2760_v10 }
 0x102   :  { %511 = vrot.lane.b32.xlu1 %v506_v59, %s2185_s20  ;;  %1233 = vrot.lane.b32.xlu0 %v1229_v21, %s2184_s18  ;;  %v1253_v59 = vmul.f32 %v2602_v4, %v504_v2  ;;  %v542_v21 = vstv %s1983_s28  ;;  %v568_v2 = vstv %s1984_s30  ;;  %s3018_s28 = sld [smem:[#allocation3 + $0x40]]  ;;  %s1985_s30 = sld [smem:[#allocation3 + $0x33]] }
 0x103   :  { %v544_v28 = vmul.f32 %v542_v21, %v2760_v10  ;;  %v570_v60 = vmul.f32 %v568_v2, %v2760_v10 }
 0x106   :  { %1235 = vrot.lane.b32.xlu1 %v1230_v24, %s2184_s18  ;;  %1245 = vrot.lane.b32.xlu0 %v1241_v20, %s2185_s20  ;;  %v543_v24 = vmul.f32 %v542_v21, %v2754_v16  ;;  %v2762_v20 = vld [vmem:[#allocation2 + $0x79] sm:$0xff] }
 0x107   :  { %v1287_v38 = vmul.f32 %v2762_v20, %v542_v21 }
 0x10a   :  { %1247 = vrot.lane.b32.xlu1 %v1242_v39, %s2185_s20  ;;  %1257 = vrot.lane.b32.xlu0 %v1253_v59, %s2185_s20  ;;  %v1275_v39 = vmul.f32 %v2762_v20, %v2766_v42  ;;  %v2771_v59 = vld [vmem:[#allocation2 + $0x81] sm:$0xff] }
 0x10e   :  { %1259 = vrot.lane.b32.xlu1 %v1254_v36, %s2185_s20  ;;  %547 = vrot.lane.b32.xlu0 %v543_v24, %s2184_s18  ;;  %v1276_v36 = vmul.f32 %v2771_v59, %v2766_v42  ;;  %v569_v24 = vmul.f32 %v568_v2, %v2754_v16 }
 0x112   :  { %549 = vrot.lane.b32.xlu1 %v544_v28, %s2184_s18  ;;  %1279 = vrot.lane.b32.xlu0 %v1275_v39, %s2184_s18  ;;  %v2784_v28 = vstv %s1948_s6  ;;  %v1288_v39 = vmul.f32 %v2771_v59, %v542_v21  ;;  %s1988_s6 = sld [smem:[#allocation3 + $0x36]] }
 0x113   :  { %3638 = vst [vmem:[#allocation78_spill] sm:$0xff] %v2784_v28  ;;  %v1299_v44 = vmul.f32 %v2762_v20, %v2784_v28 }
 0x116   :  { %1281 = vrot.lane.b32.xlu1 %v1276_v36, %s2184_s18  ;;  %573 = vrot.lane.b32.xlu0 %v569_v24, %s2185_s20  ;;  %v1300_v24 = vmul.f32 %v2771_v59, %v2784_v28  ;;  %v2806_v28 = vstv %s184_s8  ;;  %s2002_s8 = sld [smem:[#allocation3 + $0x44]] }
 0x117   :  { %3639 = vst [vmem:[#allocation79_spill] sm:$0xff] %v2806_v28 }
 0x11a   :  { %575 = vrot.lane.b32.xlu1 %v570_v60, %s2185_s20  ;;  %1291 = vrot.lane.b32.xlu0 %v1287_v38, %s2184_s18  ;;  %v1311_v60 = vmul.f32 %v2762_v20, %v568_v2  ;;  %v606_v38 = vstv %s1986_s7  ;;  %s2001_s7 = sld [smem:[#allocation3 + $0x43]] }
 0x11b   :  { %v607_v47 = vmul.f32 %v606_v38, %v2431_v25  ;;  %v608_v42 = vmul.f32 %v606_v38, %v2439_v29  ;;  %v1345_v43 = vmul.f32 %v2802_v50, %v606_v38 }
 0x11e   :  { %1293 = vrot.lane.b32.xlu1 %v1288_v39, %s2184_s18  ;;  %1303 = vrot.lane.b32.xlu0 %v1299_v44, %s2185_s20  ;;  %v1312_v44 = vmul.f32 %v2771_v59, %v568_v2  ;;  %v1034_v2 = vmul.f32 %v2311_v23, %v2806_v28 }
 0x120   :  { %v2791_v36 = vpop.permute.xlu0 %290  ;;  %v1036_v58 = vadd.f32 %v1034_v2, %v2821_v14 }
 0x122   :  { %1305 = vrot.lane.b32.xlu1 %v1300_v24, %s2185_s20  ;;  %1315 = vrot.lane.b32.xlu0 %v1311_v60, %s2185_s20 }
 0x124   :  { %v2798_v21 = vpop.permute.xlu1 %292  ;;  %v1047_v39 = vpop.permute.xlu0 %1046 }
 0x125   :  { %v1052_v48 = vadd.f32 %v1047_v39, %v1036_v58 }
 0x126   :  { %1317 = vrot.lane.b32.xlu1 %v1312_v44, %s2185_s20  ;;  %611 = vrot.lane.b32.xlu0 %v607_v47, %s2184_s18  ;;  %v632_v44 = vstv %s1987_s9  ;;  %v2819_v47 = vstv %s1970_s10  ;;  %s1991_s9 = sld [smem:[#allocation3 + $0x39]]  ;;  %s2004_s10 = sld [smem:[#allocation3 + $0x46]] }
 0x127   :  { %v633_v3 = vmul.f32 %v632_v44, %v2431_v25  ;;  %v1039_v26 = vmul.f32 %v2322_v33, %v2819_v47  ;;  %v634_v2 = vmul.f32 %v632_v44, %v2439_v29 }
 0x128   :  { %v1049_v24 = vpop.permute.xlu1 %1048  ;;  %v2808_v60 = vpop.permute.xlu0 %316 }
 0x129   :  { %v1041_v39 = vadd.f32 %v1039_v26, %v2835_v35 }
 0x12a   :  { %613 = vrot.lane.b32.xlu1 %v608_v42, %s2184_s18  ;;  %1337 = vrot.lane.b32.xlu0 %v1333_v11, %s2184_s18  ;;  %v1035_v42 = vmul.f32 %v2322_v33, %v2806_v28  ;;  %v1038_v11 = vmul.f32 %v2311_v23, %v2819_v47  ;;  %v2841_v28 = vstv %s1937_s15  ;;  %s1997_s15 = sld [smem:[#allocation3 + $0x3f]] }
 0x12b   :  { %3642 = vst [vmem:[#allocation82_spill] sm:$0xff] %v2841_v28 }
 0x12c   :  { %v2823_v8 = vpop.permute.xlu1 %318  ;;  %v1059_v17 = vpop.permute.xlu0 %1058  ;;  %v1037_v23 = vadd.f32 %v1035_v42, %v2821_v14  ;;  %v1346_v42 = vmul.f32 %v2815_v1, %v606_v38 }
 0x12e   :  { %1339 = vrot.lane.b32.xlu1 %v1334_v7, %s2184_s18  ;;  %637 = vrot.lane.b32.xlu0 %v633_v3, %s2185_s20  ;;  %v1040_v7 = vadd.f32 %v1038_v11, %v2835_v35  ;;  %v1092_v3 = vmul.f32 %v2359_v57, %v2841_v28  ;;  %v1053_v33 = vadd.f32 %v1049_v24, %v1037_v23 }
 0x130   :  { %v1061_v25 = vpop.permute.xlu1 %1060  ;;  %v1071_v12 = vpop.permute.xlu0 %1070  ;;  %v1064_v58 = vadd.f32 %v1059_v17, %v1040_v7  ;;  %v671_v7 = vstv %s1989_s16  ;;  %s2003_s16 = sld [smem:[#allocation3 + $0x45]] }
 0x131   :  { %v1076_v27 = vadd.f32 %v1071_v12, %v1052_v48  ;;  %v1357_v48 = vmul.f32 %v2802_v50, %v2441_v30  ;;  %v2853_v12 = vstv %s1973_s2  ;;  %s2000_s2 = sld [smem:[#allocation3 + $0x42]] }
 0x132   :  { %639 = vrot.lane.b32.xlu1 %v634_v2, %s2185_s20  ;;  %1349 = vrot.lane.b32.xlu0 %v1345_v43, %s2184_s18  ;;  %v1093_v2 = vmul.f32 %v2368_v61, %v2841_v28  ;;  %v1096_v43 = vmul.f32 %v2359_v57, %v2853_v12  ;;  %v1097_v57 = vmul.f32 %v2368_v61, %v2853_v12 }
 0x133   :  { %v1094_v29 = vadd.f32 %v1092_v3, %v1076_v27  ;;  %v1065_v27 = vadd.f32 %v1061_v25, %v1041_v39 }
 0x134   :  { %v1073_v10 = vpop.permute.xlu1 %1072  ;;  %v1083_v6 = vpop.permute.xlu0 %1082 }
 0x135   :  { %v1077_v11 = vadd.f32 %v1073_v10, %v1053_v33  ;;  %v1088_v14 = vadd.f32 %v1083_v6, %v1064_v58  ;;  %v1358_v10 = vmul.f32 %v2815_v1, %v2441_v30  ;;  %v1369_v6 = vmul.f32 %v2802_v50, %v632_v44  ;;  %v2874_v58 = vld [vmem:[#allocation2 + $0x90] sm:$0xff] }
 0x136   :  { %1351 = vrot.lane.b32.xlu1 %v1346_v42, %s2184_s18  ;;  %1361 = vrot.lane.b32.xlu0 %v1357_v48, %s2185_s20  ;;  %v1370_v33 = vmul.f32 %v2815_v1, %v632_v44  ;;  %v672_v30 = vmul.f32 %v671_v7, %v2447_v31  ;;  %v673_v42 = vmul.f32 %v671_v7, %v2449_v32  ;;  %v697_v44 = vstv %s1990_s17 }
 0x137   :  { %v1095_v17 = vadd.f32 %v1093_v2, %v1077_v11  ;;  %v1098_v38 = vadd.f32 %v1096_v43, %v1088_v14  ;;  %v1392_v48 = vmul.f32 %v2874_v58, %v2451_v34  ;;  %v2883_v11 = vld [vmem:[#allocation2 + $0x98] sm:$0xff] }
 0x138   :  { %v1085_v24 = vpop.permute.xlu1 %1084  ;;  %v2861_v26 = vpop.permute.xlu0 %354  ;;  %3643 = vst [vmem:[#allocation83_spill] sm:$0xff] %v2883_v11 }
 0x139   :  { %v1089_v23 = vadd.f32 %v1085_v24, %v1065_v27  ;;  %v1393_v27 = vmul.f32 %v2883_v11, %v2451_v34  ;;  %v698_v24 = vmul.f32 %v697_v44, %v2447_v31  ;;  %v2902_v31 = vstv %s1976_s21 }
 0x13a   :  { %1363 = vrot.lane.b32.xlu1 %v1358_v10, %s2185_s20  ;;  %1373 = vrot.lane.b32.xlu0 %v1369_v6, %s2185_s20  ;;  %v2894_v10 = vstv %s1940_s19 }
 0x13b   :  { %v1099_v25 = vadd.f32 %v1097_v57, %v1089_v23  ;;  %3644 = vst [vmem:[#allocation84_spill] sm:$0xff] %v2894_v10  ;;  %v1151_v1 = vmul.f32 %v2408_v18, %v2894_v10 }
 0x13c   :  { %v2870_v14 = vpop.permute.xlu1 %356  ;;  %v1105_v3 = vpop.permute.xlu0 %1104 }
 0x13d   :  { %v1110_v6 = vadd.f32 %v1105_v3, %v1094_v29 }
 0x13e   :  { %1375 = vrot.lane.b32.xlu1 %v1370_v33, %s2185_s20  ;;  %676 = vrot.lane.b32.xlu0 %v672_v30, %s2184_s18  ;;  %v699_v33 = vmul.f32 %v697_v44, %v2449_v32  ;;  %v1404_v30 = vmul.f32 %v2874_v58, %v671_v7  ;;  %v1405_v32 = vmul.f32 %v2883_v11, %v671_v7 }
 0x140   :  { %v1107_v61 = vpop.permute.xlu1 %1106  ;;  %v2878_v39 = vpop.permute.xlu0 %380 }
 0x141   :  { %v1111_v34 = vadd.f32 %v1107_v61, %v1095_v17 }
 0x142   :  { %678 = vrot.lane.b32.xlu1 %v673_v42, %s2184_s18  ;;  %1396 = vrot.lane.b32.xlu0 %v1392_v48, %s2184_s18  ;;  %v1150_v48 = vmul.f32 %v2401_v15, %v2894_v10  ;;  %v2957_v10 = vstv %s1979_s25 }
 0x144   :  { %v2887_v2 = vpop.permute.xlu1 %382  ;;  %v1117_v43 = vpop.permute.xlu0 %1116 }
 0x146   :  { %1398 = vrot.lane.b32.xlu1 %v1393_v27, %s2184_s18  ;;  %702 = vrot.lane.b32.xlu0 %v698_v24, %s2185_s20  ;;  %v1122_v27 = vadd.f32 %v1117_v43, %v1098_v38 }
 0x148   :  { %v1119_v23 = vpop.permute.xlu1 %1118  ;;  %v1129_v57 = vpop.permute.xlu0 %1128 }
 0x149   :  { %v1134_v42 = vadd.f32 %v1129_v57, %v1110_v6  ;;  %v1416_v6 = vmul.f32 %v2874_v58, %v2460_v37  ;;  %v1123_v17 = vadd.f32 %v1119_v23, %v1099_v25  ;;  %v1429_v23 = vmul.f32 %v2883_v11, %v697_v44 }
 0x14a   :  { %704 = vrot.lane.b32.xlu1 %v699_v33, %s2185_s20  ;;  %1408 = vrot.lane.b32.xlu0 %v1404_v30, %s2184_s18  ;;  %v1154_v33 = vmul.f32 %v2401_v15, %v2902_v31  ;;  %v1417_v30 = vmul.f32 %v2883_v11, %v2460_v37  ;;  %v1155_v15 = vmul.f32 %v2408_v18, %v2902_v31 }
 0x14b   :  { %v1152_v29 = vadd.f32 %v1150_v48, %v1134_v42  ;;  %v1428_v42 = vmul.f32 %v2874_v58, %v697_v44  ;;  %v761_v44 = vstv %s1993_s23  ;;  %s2186_s23 = smov 16  }
 0x14c   :  { %v1131_v3 = vpop.permute.xlu1 %1130  ;;  %v1141_v24 = vpop.permute.xlu0 %1140 }
 0x14d   :  { %v1135_v57 = vadd.f32 %v1131_v3, %v1111_v34  ;;  %v1146_v28 = vadd.f32 %v1141_v24, %v1122_v27  ;;  %v735_v34 = vstv %s1992_s22  ;;  %v2926_v27 = vld [vmem:[#allocation2 + $0x91] sm:$0xff] }
 0x14e   :  { %1410 = vrot.lane.b32.xlu1 %v1405_v32, %s2184_s18  ;;  %1420 = vrot.lane.b32.xlu0 %v1416_v6, %s2185_s20  ;;  %v736_v37 = vmul.f32 %v735_v34, %v2470_v40  ;;  %v737_v24 = vmul.f32 %v735_v34, %v2484_v45  ;;  %v1450_v32 = vmul.f32 %v2926_v27, %v2472_v41  ;;  %v2935_v6 = vld [vmem:[#allocation2 + $0x99] sm:$0xff] }
 0x14f   :  { %v1153_v38 = vadd.f32 %v1151_v1, %v1135_v57  ;;  %v1156_v61 = vadd.f32 %v1154_v33, %v1146_v28  ;;  %3645 = vst [vmem:[#allocation85_spill] sm:$0xff] %v2935_v6 }
 0x150   :  { %v1143_v43 = vpop.permute.xlu1 %1142  ;;  %v2913_v7 = vpop.permute.xlu0 %418 }
 0x151   :  { %v1147_v48 = vadd.f32 %v1143_v43, %v1123_v17  ;;  %v1451_v17 = vmul.f32 %v2935_v6, %v2472_v41  ;;  %v762_v43 = vmul.f32 %v761_v44, %v2470_v40 }
 0x152   :  { %1422 = vrot.lane.b32.xlu1 %v1417_v30, %s2185_s20  ;;  %1432 = vrot.lane.b32.xlu0 %v1428_v42, %s2185_s20 }
 0x153   :  { %v1157_v1 = vadd.f32 %v1155_v15, %v1147_v48  ;;  %v763_v15 = vmul.f32 %v761_v44, %v2484_v45  ;;  %v1463_v45 = vmul.f32 %v2935_v6, %v735_v34 }
 0x154   :  { %v2922_v28 = vpop.permute.xlu1 %420  ;;  %v1163_v25 = vpop.permute.xlu0 %1162 }
 0x155   :  { %v1168_v30 = vadd.f32 %v1163_v25, %v1152_v29 }
 0x156   :  { %1434 = vrot.lane.b32.xlu1 %v1429_v23, %s2185_s20  ;;  %740 = vrot.lane.b32.xlu0 %v736_v37, %s2184_s18  ;;  %v1462_v23 = vmul.f32 %v2926_v27, %v735_v34  ;;  %v2948_v37 = vstv %s1943_s24 }
 0x157   :  { %3646 = vst [vmem:[#allocation86_spill] sm:$0xff] %v2948_v37  ;;  %v1209_v41 = vmul.f32 %v2602_v4, %v2948_v37  ;;  %v1210_v11 = vmul.f32 %v2647_v19, %v2948_v37 }
 0x158   :  { %v1165_v3 = vpop.permute.xlu1 %1164  ;;  %v2930_v18 = vpop.permute.xlu0 %444 }
 0x159   :  { %v1169_v40 = vadd.f32 %v1165_v3, %v1153_v38 }
 0x15a   :  { %742 = vrot.lane.b32.xlu1 %v737_v24, %s2184_s18  ;;  %1454 = vrot.lane.b32.xlu0 %v1450_v32, %s2184_s18 }
 0x15c   :  { %v2939_v57 = vpop.permute.xlu1 %446  ;;  %v1175_v33 = vpop.permute.xlu0 %1174 }
 0x15d   :  { %v1180_v32 = vadd.f32 %v1175_v33, %v1156_v61 }
 0x15e   :  { %1456 = vrot.lane.b32.xlu1 %v1451_v17, %s2184_s18  ;;  %766 = vrot.lane.b32.xlu0 %v762_v43, %s2185_s20  ;;  %v1474_v43 = vmul.f32 %v2926_v27, %v2487_v46 }
 0x160   :  { %v1177_v42 = vpop.permute.xlu1 %1176  ;;  %v1187_v48 = vpop.permute.xlu0 %1186 }
 0x161   :  { %v1192_v24 = vadd.f32 %v1187_v48, %v1168_v30  ;;  %v1181_v38 = vadd.f32 %v1177_v42, %v1157_v1 }
 0x162   :  { %768 = vrot.lane.b32.xlu1 %v763_v15, %s2185_s20  ;;  %1466 = vrot.lane.b32.xlu0 %v1462_v23, %s2184_s18  ;;  %v1213_v15 = vmul.f32 %v2602_v4, %v2957_v10  ;;  %v1475_v23 = vmul.f32 %v2935_v6, %v2487_v46  ;;  %v1214_v4 = vmul.f32 %v2647_v19, %v2957_v10 }
 0x163   :  { %v1211_v29 = vadd.f32 %v1209_v41, %v1192_v24  ;;  %v1486_v24 = vmul.f32 %v2926_v27, %v761_v44 }
 0x164   :  { %v1189_v25 = vpop.permute.xlu1 %1188  ;;  %v1199_v17 = vpop.permute.xlu0 %1198 }
 0x165   :  { %v1193_v30 = vadd.f32 %v1189_v25, %v1169_v40  ;;  %v1204_v48 = vadd.f32 %v1199_v17, %v1180_v32  ;;  %v799_v40 = vstv %s1995_s26  ;;  %v1487_v32 = vmul.f32 %v2935_v6, %v761_v44  ;;  %v2980_v25 = vld [vmem:[#allocation2 + $0x92] sm:$0xff]  ;;  %s2188_s26 = smov 32  }
 0x166   :  { %1468 = vrot.lane.b32.xlu1 %v1463_v45, %s2184_s18  ;;  %1478 = vrot.lane.b32.xlu0 %v1474_v43, %s2185_s20  ;;  %v800_v46 = vmul.f32 %v799_v40, %v2505_v51  ;;  %v801_v45 = vmul.f32 %v799_v40, %v2507_v53  ;;  %v1508_v43 = vmul.f32 %v2980_v25, %v2510_v54 }
 0x167   :  { %v1212_v61 = vadd.f32 %v1210_v11, %v1193_v30  ;;  %v1215_v34 = vadd.f32 %v1213_v15, %v1204_v48  ;;  %v2989_v30 = vld [vmem:[#allocation2] sm:$0xff]  ;;  %v2995_v15 = vstv %s1996_s0 }
 0x168   :  { %v1201_v3 = vpop.permute.xlu1 %1200  ;;  %v2965_v33 = vpop.permute.xlu0 %483  ;;  %v268_v44 = vmul.f32 %v2989_v30, %v2819_v47  ;;  %v2993_v48 = vld [vmem:[#allocation2 + $0x9a] sm:$0xff] }
 0x169   :  { %v1205_v41 = vadd.f32 %v1201_v3, %v1181_v38 }
 0x16a   :  { %1480 = vrot.lane.b32.xlu1 %v1475_v23, %s2185_s20  ;;  %1490 = vrot.lane.b32.xlu0 %v1486_v24, %s2185_s20  ;;  %v1509_v23 = vmul.f32 %v2993_v48, %v2510_v54  ;;  %v826_v24 = vmul.f32 %v2995_v15, %v2505_v51  ;;  %v827_v54 = vmul.f32 %v2995_v15, %v2507_v53  ;;  %v3028_v53 = vstv %s1982_s27 }
 0x16b   :  { %v2974_v11 = vadd.f32 %v1214_v4, %v1205_v41  ;;  %v270_v41 = vadd.f32 %v268_v44, %v2835_v35  ;;  %v3006_v4 = vld [vmem:[#allocation2 + $0x8] sm:$0xff]  ;;  %v1520_v51 = vmul.f32 %v2980_v25, %v799_v40  ;;  %v3016_v44 = vstv %s1946_s1 }
 0x16c   :  { %v2976_v1 = vpop.permute.xlu1 %485  ;;  %v1222_v42 = vpop.permute.xlu0 %1221 }
 0x16e   :  { %1492 = vrot.lane.b32.xlu1 %v1487_v32, %s2185_s20  ;;  %804 = vrot.lane.b32.xlu0 %v800_v46, %s2184_s18  ;;  %v269_v32 = vmul.f32 %v3006_v4, %v2819_v47  ;;  %v296_v46 = vadd.f32 %v2791_v36, %v270_v41  ;;  %v1267_v36 = vmul.f32 %v2762_v20, %v3016_v44 }
 0x170   :  { %v1224_v19 = vpop.permute.xlu1 %1223  ;;  %v2984_v17 = vpop.permute.xlu0 %509  ;;  %v271_v47 = vadd.f32 %v269_v32, %v2835_v35  ;;  %v1521_v32 = vmul.f32 %v2993_v48, %v799_v40 }
 0x172   :  { %806 = vrot.lane.b32.xlu1 %v801_v45, %s2184_s18  ;;  %1512 = vrot.lane.b32.xlu0 %v1508_v43, %s2184_s18  ;;  %v1227_v45 = vadd.f32 %v1222_v42, %v1211_v29  ;;  %v332_v29 = vmul.f32 %v2853_v12, %v2351_v52  ;;  %v297_v42 = vadd.f32 %v2798_v21, %v271_v47 }
 0x173   :  { %v1268_v52 = vmul.f32 %v2771_v59, %v3016_v44  ;;  %v1533_v47 = vmul.f32 %v2993_v48, %v2513_v55 }
 0x174   :  { %v2999_v38 = vpop.permute.xlu1 %511  ;;  %v1234_v3 = vpop.permute.xlu0 %1233  ;;  %v323_v21 = vadd.f32 %v2823_v8, %v297_v42 }
 0x175   :  { %v1239_v41 = vadd.f32 %v1234_v3, %v1215_v34 }
 0x176   :  { %1514 = vrot.lane.b32.xlu1 %v1509_v23, %s2184_s18  ;;  %830 = vrot.lane.b32.xlu0 %v826_v24, %s2185_s20  ;;  %v322_v23 = vadd.f32 %v2808_v60, %v296_v46  ;;  %v1228_v24 = vadd.f32 %v1224_v19, %v1212_v61  ;;  %v1532_v46 = vmul.f32 %v2980_v25, %v2513_v55 }
 0x177   :  { %v333_v19 = vmul.f32 %v2853_v12, %v2357_v56  ;;  %v1544_v56 = vmul.f32 %v2980_v25, %v2995_v15  ;;  %v3058_v12 = vstv %s3018_s28  ;;  %v396_v55 = vmul.f32 %v2902_v31, %v2391_v9 }
 0x178   :  { %v1236_v43 = vpop.permute.xlu1 %1235  ;;  %v1246_v37 = vpop.permute.xlu0 %1245  ;;  %v334_v61 = vadd.f32 %v332_v29, %v322_v23 }
 0x179   :  { %v1251_v6 = vadd.f32 %v1246_v37, %v1227_v45  ;;  %v1271_v45 = vmul.f32 %v2762_v20, %v3028_v53  ;;  %v1240_v3 = vadd.f32 %v1236_v43, %v2974_v11  ;;  %v335_v23 = vadd.f32 %v333_v19, %v323_v21  ;;  %v3089_v21 = vld [vmem:[#allocation2 + $0xb0] sm:$0xff] }
 0x17a   :  { %832 = vrot.lane.b32.xlu1 %v827_v54, %s2185_s20  ;;  %1524 = vrot.lane.b32.xlu0 %v1520_v51, %s2184_s18  ;;  %v360_v40 = vadd.f32 %v2861_v26, %v334_v61  ;;  %v1272_v11 = vmul.f32 %v2771_v59, %v3028_v53  ;;  %v865_v59 = vmul.f32 %v3058_v12, %v2523_v63  ;;  %v3091_v61 = vstv %s1999_s29  ;;  %s2190_s29 = smov [#allocation10]  }
 0x17b   :  { %v3031_v35 = vadd.f32 %v1267_v36, %v1251_v6  ;;  %v361_v43 = vadd.f32 %v2870_v14, %v335_v23  ;;  %v397_v14 = vmul.f32 %v2902_v31, %v2397_v13  ;;  %v461_v31 = vmul.f32 %v2957_v10, %v2521_v62 }
 0x17c   :  { %v1248_v60 = vpop.permute.xlu1 %1247  ;;  %v1258_v37 = vpop.permute.xlu0 %1257  ;;  %v386_v26 = vadd.f32 %v2878_v39, %v360_v40  ;;  %v1545_v39 = vmul.f32 %v2993_v48, %v2995_v15  ;;  %v866_v15 = vmul.f32 %v3058_v12, %v2538_v5  ;;  %v462_v62 = vmul.f32 %v2957_v10, %v2582_v22 }
 0x17d   :  { %v1252_v34 = vadd.f32 %v1248_v60, %v1228_v24  ;;  %v1263_v6 = vadd.f32 %v1258_v37, %v1239_v41  ;;  %v387_v41 = vadd.f32 %v2887_v2, %v361_v43  ;;  %v3077_v37 = vld [vmem:[#allocation2 + $0xa8] sm:$0xff]  ;;  %v525_v22 = vmul.f32 %v3028_v53, %v2754_v16 }
 0x17e   :  { %1526 = vrot.lane.b32.xlu1 %v1521_v32, %s2184_s18  ;;  %1536 = vrot.lane.b32.xlu0 %v1532_v46, %s2185_s20  ;;  %v398_v60 = vadd.f32 %v396_v55, %v386_v26  ;;  %v1567_v2 = vmul.f32 %v3077_v37, %v2526_v0  ;;  %v588_v10 = vstv %s1985_s30  ;;  %v1580_v43 = vmul.f32 %v3089_v21, %v3058_v12  ;;  %v3647_v55 = vld [vmem:[#allocation30_spill] sm:$0xff]  ;;  %s1921_s30 = sshll.u32 %s2190_s29, 4  ;;  %s1922_s30 = int_to_ptr.vmem [resolvable:$true] %s1921_s30 }
 0x17f   :  { %v3047_v54 = vadd.f32 %v1268_v52, %v1252_v34  ;;  %v3049_v20 = vadd.f32 %v1271_v45, %v1263_v6  ;;  %v399_v52 = vadd.f32 %v397_v14, %v387_v41  ;;  %v891_v6 = vmul.f32 %v3091_v61, %v2523_v63  ;;  %p2152_p5 = scmp.lt.s32.totalorder %s1922_s30, %s1922_s30 }
 0x180   :  { %v1260_v51 = vpop.permute.xlu1 %1259  ;;  %v3051_v8 = vpop.permute.xlu0 %547  ;;  %v424_v9 = vadd.f32 %v2913_v7, %v398_v60  ;;  %v1579_v63 = vmul.f32 %v3077_v37, %v3058_v12  ;;  %v1591_v16 = vmul.f32 %v3077_v37, %v3647_v55  ;;  %v3649_v60 = vld [vmem:[#allocation76_spill] sm:$0xff] }
 0x181   :  { %v1264_v36 = vadd.f32 %v1260_v51, %v1240_v3  ;;  %v425_v13 = vadd.f32 %v2922_v28, %v399_v52 }
 0x182   :  { %1538 = vrot.lane.b32.xlu1 %v1533_v47, %s2185_s20  ;;  %1548 = vrot.lane.b32.xlu0 %v1544_v56, %s2185_s20  ;;  %v450_v45 = vadd.f32 %v2930_v18, %v424_v9  ;;  %v1568_v18 = vmul.f32 %v3089_v21, %v2526_v0  ;;  %v892_v0 = vmul.f32 %v3091_v61, %v2538_v5 }
 0x183   :  { %v3068_v29 = vadd.f32 %v1272_v11, %v1264_v36  ;;  %v451_v19 = vadd.f32 %v2939_v57, %v425_v13  ;;  %v526_v9 = vmul.f32 %v3028_v53, %v3649_v60  ;;  %v3182_v60 = vld [vmem:[#allocation2 + $0x51] sm:$0xff] }
 0x184   :  { %v3070_v42 = vpop.permute.xlu1 %549  ;;  %v1280_v24 = vpop.permute.xlu0 %1279  ;;  %v463_v40 = vadd.f32 %v461_v31, %v450_v45  ;;  %v2079_v31 = vld [vmem:[#allocation2 + $0x1a] sm:$0xff] }
 0x185   :  { %v1285_v3 = vadd.f32 %v1280_v24, %v3031_v35  ;;  %v464_v57 = vadd.f32 %v462_v62, %v451_v19  ;;  %v3648_v24 = vld [vmem:[#allocation80_spill] sm:$0xff] }
 0x186   :  { %1550 = vrot.lane.b32.xlu1 %v1545_v39, %s2185_s20  ;;  %869 = vrot.lane.b32.xlu0 %v865_v59, %s2184_s18  ;;  %v489_v28 = vadd.f32 %v2965_v33, %v463_v40  ;;  %v1325_v33 = vmul.f32 %v2802_v50, %v2660_v49  ;;  %v1326_v39 = vmul.f32 %v3648_v24, %v2660_v49 }
 0x187   :  { %v490_v5 = vadd.f32 %v2976_v1, %v464_v57  ;;  %v1329_v59 = vmul.f32 %v2802_v50, %v588_v10  ;;  %v1604_v57 = vmul.f32 %v3089_v21, %v3091_v61 }
 0x188   :  { %v1282_v32 = vpop.permute.xlu1 %1281  ;;  %v574_v46 = vpop.permute.xlu0 %573  ;;  %v515_v56 = vadd.f32 %v2984_v17, %v489_v28 }
 0x189   :  { %v1286_v35 = vadd.f32 %v1282_v32, %v3047_v54  ;;  %v516_v1 = vadd.f32 %v2999_v38, %v490_v5  ;;  %v2081_v5 = vld [vmem:[#allocation2 + $0x30] sm:$0xff] }
 0x18a   :  { %871 = vrot.lane.b32.xlu1 %v866_v15, %s2184_s18  ;;  %1571 = vrot.lane.b32.xlu0 %v1567_v2, %s2184_s18  ;;  %v527_v54 = vadd.f32 %v525_v22, %v515_v56  ;;  %v1592_v15 = vmul.f32 %v3089_v21, %v3647_v55  ;;  %v3650_v2 = vld [vmem:[#allocation15_spill] sm:$0xff]  ;;  %v3651_v56 = vld [vmem:[#allocation16_spill] sm:$0xff]  ;;  %v928_v22 = vstv %s2001_s7 }
 0x18b   :  { %v273_v53 = vmul.f32 %v2989_v30, %v3650_v2  ;;  %v528_v52 = vadd.f32 %v526_v9, %v516_v1  ;;  %v274_v40 = vmul.f32 %v3006_v4, %v3650_v2  ;;  %v930_v9 = vmul.f32 %v3182_v60, %v928_v22  ;;  %v3653_v2 = vld [vmem:[#allocation55_spill] sm:$0xff] }
 0x18c   :  { %v3098_v7 = vpop.permute.xlu1 %575  ;;  %v1292_v34 = vpop.permute.xlu0 %1291  ;;  %v553_v12 = vadd.f32 %v3051_v8, %v527_v54  ;;  %v1330_v8 = vmul.f32 %v3648_v24, %v588_v10  ;;  %v3176_v24 = vld [vmem:[#allocation2 + $0xa9] sm:$0xff] }
 0x18d   :  { %v1297_v26 = vadd.f32 %v1292_v34, %v3049_v20  ;;  %v589_v34 = vmul.f32 %v2079_v31, %v588_v10 }
 0x18e   :  { %1573 = vrot.lane.b32.xlu1 %v1568_v18, %s2184_s18  ;;  %895 = vrot.lane.b32.xlu0 %v891_v6, %s2185_s20  ;;  %v579_v45 = vadd.f32 %v574_v46, %v553_v12  ;;  %v1603_v46 = vmul.f32 %v3077_v37, %v3091_v61  ;;  %v300_v61 = vmul.f32 %v3006_v4, %v3651_v56  ;;  %v3652_v12 = vld [vmem:[#allocation34_spill] sm:$0xff] }
 0x190   :  { %v1294_v51 = vpop.permute.xlu1 %1293  ;;  %v1304_v47 = vpop.permute.xlu0 %1303  ;;  %v591_v62 = vadd.f32 %v589_v34, %v579_v45 }
 0x191   :  { %v1309_v23 = vadd.f32 %v1304_v47, %v1285_v3  ;;  %v1298_v14 = vadd.f32 %v1294_v51, %v3068_v29  ;;  %v554_v29 = vadd.f32 %v3070_v42, %v528_v52  ;;  %v3162_v42 = vstv %s1988_s6  ;;  %v2080_v51 = vld [vmem:[#allocation2 + $0x22] sm:$0xff]  ;;  %s2147_s6 = scalar_lea.vmem %s1922_s30, 512 }
 0x192   :  { %897 = vrot.lane.b32.xlu1 %v892_v0, %s2185_s20  ;;  %1583 = vrot.lane.b32.xlu0 %v1579_v63, %s2184_s18  ;;  %v590_v47 = vmul.f32 %v2080_v51, %v588_v10  ;;  %p2148_p4 = scmp.ne.s32.totalorder %s1922_s30, %s2147_s6  ;;  %p2153_p6 = scmp.lt.s32.totalorder %s2147_s6, %s2147_s6 }
 0x193   :  { %v3125_v36 = vadd.f32 %v1325_v33, %v1309_v23  ;;  %v580_v28 = vadd.f32 %v3098_v7, %v554_v29  ;;  %v299_v23 = vmul.f32 %v2989_v30, %v3651_v56 }
 0x194   :  { %v1306_v17 = vpop.permute.xlu1 %1305  ;;  %v1316_v11 = vpop.permute.xlu0 %1315  ;;  %p2154_p7 = por %p2153_p6, %p2152_p5 }
 0x195   :  { %v1310_v41 = vadd.f32 %v1306_v17, %v1286_v35  ;;  %v1321_v20 = vadd.f32 %v1316_v11, %v1297_v26  ;;  %v592_v33 = vadd.f32 %v590_v47, %v580_v28  ;;  %v654_v35 = vmul.f32 %v2081_v5, %v3162_v42 }
 0x196   :  { %1585 = vrot.lane.b32.xlu1 %v1580_v43, %s2184_s18  ;;  %1595 = vrot.lane.b32.xlu0 %v1591_v16, %s2185_s20  ;;  %v3173_v43 = vld [vmem:[#allocation2 + $0x49] sm:$0xff]  ;;  %v1637_v47 = vmul.f32 %v3176_v24, %v928_v22  ;;  %p2155_p8 = pnand %p2154_p7, %p2148_p4 }
 0x197   :  { %v3141_v49 = vadd.f32 %v1326_v39, %v1310_v41  ;;  %v3143_v50 = vadd.f32 %v1329_v59, %v1321_v20  ;;  %v929_v55 = vmul.f32 %v3173_v43, %v928_v22  ;;  %v2083_v39 = vld [vmem:[#allocation2 + $0x38] sm:$0xff] }
 0x198   :  { %v1318_v38 = vpop.permute.xlu1 %1317  ;;  %v612_v32 = vpop.permute.xlu0 %611  ;;  %v655_v59 = vmul.f32 %v2083_v39, %v3162_v42 }
 0x199   :  { %v1322_v13 = vadd.f32 %v1318_v38, %v1298_v14  ;;  %v617_v3 = vadd.f32 %v612_v32, %v591_v62  ;;  %v1625_v14 = vmul.f32 %v3176_v24, %v3652_v12  ;;  %v3187_v32 = vld [vmem:[#allocation2 + $0xb1] sm:$0xff] }
 0x19a   :  { %1597 = vrot.lane.b32.xlu1 %v1592_v15, %s2185_s20  ;;  %277 = vrot.lane.b32.xlu0 %v273_v53, %s2184_s18  ;;  %v3189_v15 = vstv %s2002_s8  ;;  %v1384_v53 = vmul.f32 %v2874_v58, %v3653_v2  ;;  %v1626_v29 = vmul.f32 %v3187_v32, %v3652_v12  ;;  %v1638_v56 = vmul.f32 %v3187_v32, %v928_v22 }
 0x19b   :  { %v3153_v18 = vadd.f32 %v1330_v8, %v1322_v13  ;;  %v955_v31 = vmul.f32 %v3173_v43, %v3189_v15  ;;  %v956_v51 = vmul.f32 %v3182_v60, %v3189_v15 }
 0x19c   :  { %v614_v6 = vpop.permute.xlu1 %613  ;;  %v1338_v19 = vpop.permute.xlu0 %1337 }
 0x19d   :  { %v618_v10 = vadd.f32 %v614_v6, %v592_v33  ;;  %v1343_v1 = vadd.f32 %v1338_v19, %v3125_v36  ;;  %v3654_v19 = vld [vmem:[#allocation83_spill] sm:$0xff] }
 0x19e   :  { %279 = vrot.lane.b32.xlu1 %v274_v40, %s2184_s18  ;;  %1607 = vrot.lane.b32.xlu0 %v1603_v46, %s2185_s20  ;;  %v1385_v40 = vmul.f32 %v3654_v19, %v3653_v2  ;;  %v1388_v46 = vmul.f32 %v2874_v58, %v3162_v42  ;;  %v1389_v58 = vmul.f32 %v3654_v19, %v3162_v42 }
 0x1a0   :  { %v1340_v0 = vpop.permute.xlu1 %1339  ;;  %v638_v63 = vpop.permute.xlu0 %637 }
 0x1a1   :  { %v643_v7 = vadd.f32 %v638_v63, %v617_v3  ;;  %v1344_v36 = vadd.f32 %v1340_v0, %v3141_v49 }
 0x1a2   :  { %1609 = vrot.lane.b32.xlu1 %v1604_v57, %s2185_s20  ;;  %303 = vrot.lane.b32.xlu0 %v299_v23, %s2185_s20  ;;  %v3655_v23 = vld [vmem:[#allocation38_spill] sm:$0xff] }
 0x1a3   :  { %v656_v26 = vadd.f32 %v654_v35, %v643_v7  ;;  %v1649_v33 = vmul.f32 %v3176_v24, %v3655_v23  ;;  %v3220_v7 = vstv %s1991_s9 }
 0x1a4   :  { %v640_v17 = vpop.permute.xlu1 %639  ;;  %v1350_v11 = vpop.permute.xlu0 %1349 }
 0x1a5   :  { %v644_v16 = vadd.f32 %v640_v17, %v618_v10  ;;  %v1355_v52 = vadd.f32 %v1350_v11, %v3143_v50  ;;  %v1650_v10 = vmul.f32 %v3187_v32, %v3655_v23  ;;  %v3224_v17 = vld [vmem:[#allocation2 + $0x1] sm:$0xff]  ;;  %v3656_v11 = vld [vmem:[#allocation17_spill] sm:$0xff] }
 0x1a6   :  { %305 = vrot.lane.b32.xlu1 %v300_v61, %s2185_s20  ;;  %933 = vrot.lane.b32.xlu0 %v929_v55, %s2184_s18  ;;  %v337_v22 = vmul.f32 %v3224_v17, %v3656_v11  ;;  %v2086_v55 = vld [vmem:[#allocation2 + $0x31] sm:$0xff] }
 0x1a7   :  { %v657_v54 = vadd.f32 %v655_v59, %v644_v16  ;;  %v718_v16 = vmul.f32 %v2086_v55, %v3220_v7 }
 0x1a8   :  { %v1352_v41 = vpop.permute.xlu1 %1351  ;;  %v1362_v20 = vpop.permute.xlu0 %1361 }
 0x1a9   :  { %v1367_v38 = vadd.f32 %v1362_v20, %v1343_v1  ;;  %v1356_v49 = vadd.f32 %v1352_v41, %v3153_v18  ;;  %v3231_v41 = vld [vmem:[#allocation2 + $0x9] sm:$0xff] }
 0x1aa   :  { %935 = vrot.lane.b32.xlu1 %v930_v9, %s2184_s18  ;;  %1629 = vrot.lane.b32.xlu0 %v1625_v14, %s2184_s18  ;;  %v338_v20 = vmul.f32 %v3231_v41, %v3656_v11  ;;  %v1661_v9 = vmul.f32 %v3176_v24, %v3189_v15  ;;  %v2088_v14 = vld [vmem:[#allocation2 + $0x39] sm:$0xff] }
 0x1ab   :  { %v1386_v45 = vadd.f32 %v1384_v53, %v1367_v38  ;;  %v719_v38 = vmul.f32 %v2088_v14, %v3220_v7 }
 0x1ac   :  { %v1364_v13 = vpop.permute.xlu1 %1363  ;;  %v1374_v8 = vpop.permute.xlu0 %1373 }
 0x1ad   :  { %v1368_v34 = vadd.f32 %v1364_v13, %v1344_v36  ;;  %v1379_v6 = vadd.f32 %v1374_v8, %v1355_v52  ;;  %v1662_v52 = vmul.f32 %v3187_v32, %v3189_v15  ;;  %v3657_v13 = vld [vmem:[#allocation18_spill] sm:$0xff] }
 0x1ae   :  { %1631 = vrot.lane.b32.xlu1 %v1626_v29, %s2184_s18  ;;  %959 = vrot.lane.b32.xlu0 %v955_v31, %s2185_s20  ;;  %v363_v8 = vmul.f32 %v3224_v17, %v3657_v13  ;;  %v992_v31 = vstv %s2004_s10  ;;  %v364_v15 = vmul.f32 %v3231_v41, %v3657_v13 }
 0x1af   :  { %v1387_v50 = vadd.f32 %v1385_v40, %v1368_v34  ;;  %v1390_v28 = vadd.f32 %v1388_v46, %v1379_v6  ;;  %v3658_v34 = vld [vmem:[#allocation56_spill] sm:$0xff] }
 0x1b0   :  { %v1376_v62 = vpop.permute.xlu1 %1375  ;;  %v677_v3 = vpop.permute.xlu0 %676  ;;  %v1442_v6 = vmul.f32 %v2926_v27, %v3658_v34 }
 0x1b1   :  { %v1380_v0 = vadd.f32 %v1376_v62, %v1356_v49  ;;  %v682_v5 = vadd.f32 %v677_v3, %v656_v26  ;;  %v3250_v62 = vld [vmem:[#allocation2 + $0x4a] sm:$0xff] }
 0x1b2   :  { %961 = vrot.lane.b32.xlu1 %v956_v51, %s2185_s20  ;;  %1641 = vrot.lane.b32.xlu0 %v1637_v47, %s2184_s18  ;;  %v993_v3 = vmul.f32 %v3250_v62, %v992_v31 }
 0x1b3   :  { %v1391_v63 = vadd.f32 %v1389_v58, %v1380_v0  ;;  %v3253_v0 = vld [vmem:[#allocation2 + $0xaa] sm:$0xff] }
 0x1b4   :  { %v679_v57 = vpop.permute.xlu1 %678  ;;  %v1397_v18 = vpop.permute.xlu0 %1396  ;;  %v3659_v58 = vld [vmem:[#allocation85_spill] sm:$0xff]  ;;  %v1695_v14 = vmul.f32 %v3253_v0, %v992_v31 }
 0x1b5   :  { %v683_v26 = vadd.f32 %v679_v57, %v657_v54  ;;  %v1402_v54 = vadd.f32 %v1397_v18, %v1386_v45  ;;  %v1443_v57 = vmul.f32 %v3659_v58, %v3658_v34 }
 0x1b6   :  { %1643 = vrot.lane.b32.xlu1 %v1638_v56, %s2184_s18  ;;  %1653 = vrot.lane.b32.xlu0 %v1649_v33, %s2185_s20 }
 0x1b8   :  { %v1399_v42 = vpop.permute.xlu1 %1398  ;;  %v703_v35 = vpop.permute.xlu0 %702 }
 0x1b9   :  { %v708_v61 = vadd.f32 %v703_v35, %v682_v5  ;;  %v1403_v45 = vadd.f32 %v1399_v42, %v1387_v50  ;;  %v1446_v50 = vmul.f32 %v2926_v27, %v3220_v7  ;;  %v3261_v5 = vld [vmem:[#allocation2 + $0x52] sm:$0xff]  ;;  %v3268_v27 = vstv %s2005_s13 }
 0x1ba   :  { %1655 = vrot.lane.b32.xlu1 %v1650_v10, %s2185_s20  ;;  %341 = vrot.lane.b32.xlu0 %v337_v22, %s2184_s18  ;;  %v994_v42 = vmul.f32 %v3261_v5, %v992_v31  ;;  %v3660_v35 = vld [vmem:[#allocation42_spill] sm:$0xff] }
 0x1bb   :  { %v720_v39 = vadd.f32 %v718_v16, %v708_v61  ;;  %v1683_v10 = vmul.f32 %v3253_v0, %v3660_v35  ;;  %v3266_v22 = vld [vmem:[#allocation2 + $0xb2] sm:$0xff]  ;;  %v1447_v61 = vmul.f32 %v3659_v58, %v3220_v7 }
 0x1bc   :  { %v705_v59 = vpop.permute.xlu1 %704  ;;  %v1409_v1 = vpop.permute.xlu0 %1408 }
 0x1bd   :  { %v709_v12 = vadd.f32 %v705_v59, %v683_v26  ;;  %v1414_v19 = vadd.f32 %v1409_v1, %v1390_v28  ;;  %v1684_v26 = vmul.f32 %v3266_v22, %v3660_v35  ;;  %v1019_v59 = vmul.f32 %v3250_v62, %v3268_v27  ;;  %v3300_v35 = vld [vmem:[#allocation2 + $0xa] sm:$0xff] }
 0x1be   :  { %343 = vrot.lane.b32.xlu1 %v338_v20, %s2184_s18  ;;  %1665 = vrot.lane.b32.xlu0 %v1661_v9, %s2185_s20  ;;  %v781_v1 = vstv %s1994_s14 }
 0x1bf   :  { %v721_v2 = vadd.f32 %v719_v38, %v709_v12  ;;  %v1020_v12 = vmul.f32 %v3261_v5, %v3268_v27 }
 0x1c0   :  { %v1411_v53 = vpop.permute.xlu1 %1410  ;;  %v1421_v36 = vpop.permute.xlu0 %1420 }
 0x1c1   :  { %v1426_v29 = vadd.f32 %v1421_v36, %v1402_v54  ;;  %v1415_v28 = vadd.f32 %v1411_v53, %v1391_v63  ;;  %v2091_v54 = vld [vmem:[#allocation2 + $0x32] sm:$0xff] }
 0x1c2   :  { %1667 = vrot.lane.b32.xlu1 %v1662_v52, %s2185_s20  ;;  %367 = vrot.lane.b32.xlu0 %v363_v8, %s2185_s20  ;;  %v782_v53 = vmul.f32 %v2091_v54, %v781_v1  ;;  %v1505_v54 = vmul.f32 %v2993_v48, %v781_v1 }
 0x1c3   :  { %v1444_v40 = vadd.f32 %v1442_v6, %v1426_v29  ;;  %v3661_v29 = vld [vmem:[#allocation45_spill] sm:$0xff] }
 0x1c4   :  { %v1423_v46 = vpop.permute.xlu1 %1422  ;;  %v1433_v49 = vpop.permute.xlu0 %1432  ;;  %v1707_v34 = vmul.f32 %v3253_v0, %v3661_v29 }
 0x1c5   :  { %v1427_v51 = vadd.f32 %v1423_v46, %v1403_v45  ;;  %v1438_v47 = vadd.f32 %v1433_v49, %v1414_v19  ;;  %v2092_v45 = vld [vmem:[#allocation2 + $0x3a] sm:$0xff] }
 0x1c6   :  { %369 = vrot.lane.b32.xlu1 %v364_v15, %s2185_s20  ;;  %997 = vrot.lane.b32.xlu0 %v993_v3, %s2184_s18  ;;  %v783_v19 = vmul.f32 %v2092_v45, %v781_v1  ;;  %v3326_v45 = vld [vmem:[#allocation2 + $0x20] sm:$0xff] }
 0x1c7   :  { %v1445_v18 = vadd.f32 %v1443_v57, %v1427_v51  ;;  %v1448_v56 = vadd.f32 %v1446_v50, %v1438_v47  ;;  %v3292_v51 = vld [vmem:[#allocation2 + $0x2] sm:$0xff]  ;;  %v3663_v57 = vld [vmem:[#allocation57_spill] sm:$0xff] }
 0x1c8   :  { %v1435_v23 = vpop.permute.xlu1 %1434  ;;  %v741_v33 = vpop.permute.xlu0 %740  ;;  %v1500_v50 = vmul.f32 %v2980_v25, %v3663_v57 }
 0x1c9   :  { %v1439_v11 = vadd.f32 %v1435_v23, %v1415_v28  ;;  %v746_v20 = vadd.f32 %v741_v33, %v720_v39  ;;  %v1696_v39 = vmul.f32 %v3266_v22, %v992_v31  ;;  %v3662_v31 = vld [vmem:[#allocation19_spill] sm:$0xff] }
 0x1ca   :  { %999 = vrot.lane.b32.xlu1 %v994_v42, %s2184_s18  ;;  %1687 = vrot.lane.b32.xlu0 %v1683_v10, %s2184_s18  ;;  %v401_v47 = vmul.f32 %v3292_v51, %v3662_v31  ;;  %v402_v10 = vmul.f32 %v3300_v35, %v3662_v31 }
 0x1cb   :  { %v1449_v63 = vadd.f32 %v1447_v61, %v1439_v11  ;;  %v1719_v11 = vmul.f32 %v3253_v0, %v3268_v27 }
 0x1cc   :  { %v743_v55 = vpop.permute.xlu1 %742  ;;  %v1455_v16 = vpop.permute.xlu0 %1454 }
 0x1cd   :  { %v747_v36 = vadd.f32 %v743_v55, %v721_v2  ;;  %v1460_v46 = vadd.f32 %v1455_v16, %v1444_v40  ;;  %v1708_v2 = vmul.f32 %v3266_v22, %v3661_v29  ;;  %v1501_v16 = vmul.f32 %v2993_v48, %v3663_v57 }
 0x1ce   :  { %1689 = vrot.lane.b32.xlu1 %v1684_v26, %s2184_s18  ;;  %1023 = vrot.lane.b32.xlu0 %v1019_v59, %s2185_s20  ;;  %v1504_v26 = vmul.f32 %v2980_v25, %v781_v1  ;;  %v846_v48 = vstv %s1997_s15 }
 0x1d0   :  { %v1457_v7 = vpop.permute.xlu1 %1456  ;;  %v767_v9 = vpop.permute.xlu0 %766 }
 0x1d1   :  { %v772_v38 = vadd.f32 %v767_v9, %v746_v20  ;;  %v1461_v40 = vadd.f32 %v1457_v7, %v1445_v18  ;;  %v1720_v9 = vmul.f32 %v3266_v22, %v3268_v27 }
 0x1d2   :  { %1025 = vrot.lane.b32.xlu1 %v1020_v12, %s2185_s20  ;;  %1699 = vrot.lane.b32.xlu0 %v1695_v14, %s2184_s18  ;;  %v3664_v12 = vld [vmem:[#allocation20_spill] sm:$0xff] }
 0x1d3   :  { %v784_v52 = vadd.f32 %v782_v53, %v772_v38  ;;  %v427_v14 = vmul.f32 %v3292_v51, %v3664_v12 }
 0x1d4   :  { %v769_v13 = vpop.permute.xlu1 %768  ;;  %v1467_v8 = vpop.permute.xlu0 %1466 }
 0x1d5   :  { %v773_v6 = vadd.f32 %v769_v13, %v747_v36  ;;  %v1472_v28 = vadd.f32 %v1467_v8, %v1448_v56  ;;  %v428_v36 = vmul.f32 %v3300_v35, %v3664_v12  ;;  %v3320_v13 = vld [vmem:[#allocation2 + $0x18] sm:$0xff]  ;;  %v3665_v8 = vld [vmem:[#allocation41_spill] sm:$0xff] }
 0x1d6   :  { %1701 = vrot.lane.b32.xlu1 %v1696_v39, %s2184_s18  ;;  %1711 = vrot.lane.b32.xlu0 %v1707_v34, %s2185_s20  ;;  %v466_v27 = vmul.f32 %v3320_v13, %v3665_v8 }
 0x1d7   :  { %v785_v49 = vadd.f32 %v783_v19, %v773_v6  ;;  %v467_v19 = vmul.f32 %v3326_v45, %v3665_v8  ;;  %v3670_v8 = vld [vmem:[#allocation21_spill] sm:$0xff] }
 0x1d8   :  { %v1469_v15 = vpop.permute.xlu1 %1468  ;;  %v1479_v3 = vpop.permute.xlu0 %1478 }
 0x1d9   :  { %v1484_v58 = vadd.f32 %v1479_v3, %v1460_v46  ;;  %v1473_v18 = vadd.f32 %v1469_v15, %v1449_v63  ;;  %v3666_v46 = vld [vmem:[#allocation75_spill] sm:$0xff] }
 0x1da   :  { %1713 = vrot.lane.b32.xlu1 %v1708_v2, %s2185_s20  ;;  %405 = vrot.lane.b32.xlu0 %v401_v47, %s2184_s18  ;;  %v492_v15 = vmul.f32 %v3320_v13, %v3666_v46  ;;  %v493_v57 = vmul.f32 %v3326_v45, %v3666_v46  ;;  %v3672_v46 = vld [vmem:[#allocation23_spill] sm:$0xff] }
 0x1db   :  { %v1502_v23 = vadd.f32 %v1500_v50, %v1484_v58  ;;  %v3336_v50 = vld [vmem:[#allocation2 + $0x19] sm:$0xff] }
 0x1dc   :  { %v1481_v33 = vpop.permute.xlu1 %1480  ;;  %v1491_v42 = vpop.permute.xlu0 %1490 }
 0x1dd   :  { %v1485_v61 = vadd.f32 %v1481_v33, %v1461_v40  ;;  %v1496_v55 = vadd.f32 %v1491_v42, %v1472_v28  ;;  %v3667_v40 = vld [vmem:[#allocation77_spill] sm:$0xff] }
 0x1de   :  { %407 = vrot.lane.b32.xlu1 %v402_v10, %s2184_s18  ;;  %1723 = vrot.lane.b32.xlu0 %v1719_v11, %s2185_s20  ;;  %v530_v28 = vmul.f32 %v3336_v50, %v3667_v40  ;;  %v2099_v42 = vld [vmem:[#allocation2 + $0x50] sm:$0xff] }
 0x1df   :  { %v1503_v56 = vadd.f32 %v1501_v16, %v1485_v61  ;;  %v1506_v59 = vadd.f32 %v1504_v26, %v1496_v55  ;;  %v848_v10 = vmul.f32 %v2099_v42, %v846_v48  ;;  %v3342_v16 = vld [vmem:[#allocation2 + $0x21] sm:$0xff] }
 0x1e0   :  { %v1493_v20 = vpop.permute.xlu1 %1492  ;;  %v805_v7 = vpop.permute.xlu0 %804  ;;  %v531_v26 = vmul.f32 %v3342_v16, %v3667_v40  ;;  %v3675_v40 = vld [vmem:[#allocation26_spill] sm:$0xff] }
 0x1e1   :  { %v1497_v38 = vadd.f32 %v1493_v20, %v1473_v18  ;;  %v810_v1 = vadd.f32 %v805_v7, %v784_v52  ;;  %v3668_v18 = vld [vmem:[#allocation78_spill] sm:$0xff] }
 0x1e2   :  { %1725 = vrot.lane.b32.xlu1 %v1720_v9, %s2185_s20  ;;  %431 = vrot.lane.b32.xlu0 %v427_v14, %s2185_s20 }
 0x1e3   :  { %v1507_v25 = vadd.f32 %v1505_v54, %v1497_v38  ;;  %v557_v54 = vmul.f32 %v3342_v16, %v3668_v18 }
 0x1e4   :  { %v807_v53 = vpop.permute.xlu1 %806  ;;  %v1513_v63 = vpop.permute.xlu0 %1512 }
 0x1e5   :  { %v811_v39 = vadd.f32 %v807_v53, %v785_v49  ;;  %v1518_v29 = vadd.f32 %v1513_v63, %v1502_v23  ;;  %v2097_v49 = vld [vmem:[#allocation2 + $0x48] sm:$0xff] }
 0x1e6   :  { %433 = vrot.lane.b32.xlu1 %v428_v36, %s2185_s20  ;;  %470 = vrot.lane.b32.xlu0 %v466_v27, %s2184_s18  ;;  %v847_v31 = vmul.f32 %v2097_v49, %v846_v48  ;;  %v3674_v49 = vld [vmem:[#allocation25_spill] sm:$0xff] }
 0x1e8   :  { %v1515_v34 = vpop.permute.xlu1 %1514  ;;  %v831_v6 = vpop.permute.xlu0 %830 }
 0x1e9   :  { %v1519_v3 = vadd.f32 %v1515_v34, %v1503_v56  ;;  %v836_v2 = vadd.f32 %v831_v6, %v810_v1  ;;  %v556_v56 = vmul.f32 %v3336_v50, %v3668_v18  ;;  %v1564_v6 = vmul.f32 %v3089_v21, %v846_v48  ;;  %v3679_v18 = vld [vmem:[#allocation79_spill] sm:$0xff] }
 0x1ea   :  { %472 = vrot.lane.b32.xlu1 %v467_v19, %s2184_s18  ;;  %496 = vrot.lane.b32.xlu0 %v492_v15, %s2185_s20  ;;  %v3671_v19 = vld [vmem:[#allocation22_spill] sm:$0xff] }
 0x1eb   :  { %v849_v47 = vadd.f32 %v847_v31, %v836_v2  ;;  %v3673_v2 = vld [vmem:[#allocation24_spill] sm:$0xff]  ;;  %v910_v31 = vstv %s2000_s2 }
 0x1ec   :  { %v833_v52 = vpop.permute.xlu1 %832  ;;  %v1525_v58 = vpop.permute.xlu0 %1524 }
 0x1ed   :  { %v837_v23 = vadd.f32 %v833_v52, %v811_v39  ;;  %v1530_v33 = vadd.f32 %v1525_v58, %v1506_v59  ;;  %v3669_v59 = vld [vmem:[#allocation58_spill] sm:$0xff] }
 0x1ee   :  { %498 = vrot.lane.b32.xlu1 %v493_v57, %s2185_s20  ;;  %534 = vrot.lane.b32.xlu0 %v530_v28, %s2184_s18  ;;  %v1559_v9 = vmul.f32 %v3077_v37, %v3669_v59  ;;  %v1560_v36 = vmul.f32 %v3089_v21, %v3669_v59  ;;  %v3676_v28 = vld [vmem:[#allocation27_spill] sm:$0xff] }
 0x1ef   :  { %v850_v11 = vadd.f32 %v848_v10, %v837_v23 }
 0x1f0   :  { %v1527_v61 = vpop.permute.xlu1 %1526  ;;  %v1537_v55 = vpop.permute.xlu0 %1536 }
 0x1f1   :  { %v1531_v20 = vadd.f32 %v1527_v61, %v1507_v25  ;;  %v1542_v7 = vadd.f32 %v1537_v55, %v1518_v29  ;;  %v1563_v25 = vmul.f32 %v3077_v37, %v846_v48  ;;  %v911_v48 = vmul.f32 %v3173_v43, %v910_v31 }
 0x1f2   :  { %536 = vrot.lane.b32.xlu1 %v531_v26, %s2184_s18  ;;  %560 = vrot.lane.b32.xlu0 %v556_v56, %s2185_s20  ;;  %v912_v55 = vmul.f32 %v3182_v60, %v910_v31  ;;  %v3678_v26 = vld [vmem:[#allocation29_spill] sm:$0xff]  ;;  %v263_v56 = vmul.f32 %v2989_v30, %v3679_v18  ;;  %v3682_v60 = vld [vmem:[#allocation32_spill] sm:$0xff] }
 0x1f3   :  { %v1561_v12 = vadd.f32 %v1559_v9, %v1542_v7  ;;  %v3680_v9 = vld [vmem:[#allocation59_spill] sm:$0xff] }
 0x1f4   :  { %v1539_v14 = vpop.permute.xlu1 %1538  ;;  %v1549_v38 = vpop.permute.xlu0 %1548 }
 0x1f5   :  { %v1543_v53 = vadd.f32 %v1539_v14, %v1519_v3  ;;  %v1554_v63 = vadd.f32 %v1549_v38, %v1530_v33  ;;  %v1617_v14 = vmul.f32 %v3176_v24, %v3680_v9  ;;  %v3681_v38 = vld [vmem:[#allocation31_spill] sm:$0xff] }
 0x1f6   :  { %562 = vrot.lane.b32.xlu1 %v557_v54, %s2185_s20  ;;  %598 = vrot.lane.b32.xlu0 %v3670_v8, %s2184_s18 }
 0x1f7   :  { %v1562_v27 = vadd.f32 %v1560_v36, %v1543_v53  ;;  %v1565_v39 = vadd.f32 %v1563_v25, %v1554_v63  ;;  %v3683_v53 = vld [vmem:[#allocation81_spill] sm:$0xff] }
 0x1f8   :  { %v1551_v29 = vpop.permute.xlu1 %1550  ;;  %v870_v1 = vpop.permute.xlu0 %869  ;;  %v265_v63 = vadd.f32 %v263_v56, %v3683_v53 }
 0x1f9   :  { %v1555_v34 = vadd.f32 %v1551_v29, %v1531_v20  ;;  %v875_v52 = vadd.f32 %v870_v1, %v849_v47  ;;  %v3677_v47 = vld [vmem:[#allocation28_spill] sm:$0xff]  ;;  %v1618_v1 = vmul.f32 %v3187_v32, %v3680_v9  ;;  %v974_v9 = vstv %s2003_s16 }
 0x1fa   :  { %600 = vrot.lane.b32.xlu1 %v3671_v19, %s2184_s18  ;;  %624 = vrot.lane.b32.xlu0 %v3672_v46, %s2185_s20 }
 0x1fb   :  { %v1566_v37 = vadd.f32 %v1564_v6, %v1555_v34  ;;  %v3684_v34 = vld [vmem:[#allocation33_spill] sm:$0xff]  ;;  %v3685_v6 = vld [vmem:[#allocation35_spill] sm:$0xff] }
 0x1fc   :  { %v872_v15 = vpop.permute.xlu1 %871  ;;  %v1572_v3 = vpop.permute.xlu0 %1571 }
 0x1fd   :  { %v876_v23 = vadd.f32 %v872_v15, %v850_v11  ;;  %v1577_v43 = vadd.f32 %v1572_v3, %v1561_v12  ;;  %v264_v12 = vmul.f32 %v3006_v4, %v3679_v18 }
 0x1fe   :  { %626 = vrot.lane.b32.xlu1 %v3673_v2, %s2185_s20  ;;  %663 = vrot.lane.b32.xlu0 %v3674_v49, %s2184_s18  ;;  %v1621_v49 = vmul.f32 %v3176_v24, %v910_v31  ;;  %v3690_v24 = vld [vmem:[#allocation40_spill] sm:$0xff] }
 0x1ff   :  { %v266_v19 = vadd.f32 %v264_v12, %v3683_v53  ;;  %v3695_v53 = vld [vmem:[#allocation48_spill] sm:$0xff] }
 0x200   :  { %v1574_v58 = vpop.permute.xlu1 %1573  ;;  %v896_v57 = vpop.permute.xlu0 %895 }
 0x201   :  { %v901_v21 = vadd.f32 %v896_v57, %v875_v52  ;;  %v1578_v54 = vadd.f32 %v1574_v58, %v1562_v27  ;;  %v3686_v52 = vld [vmem:[#allocation36_spill] sm:$0xff]  ;;  %v3687_v58 = vld [vmem:[#allocation37_spill] sm:$0xff] }
 0x202   :  { %665 = vrot.lane.b32.xlu1 %v3675_v40, %s2184_s18  ;;  %689 = vrot.lane.b32.xlu0 %v3676_v28, %s2185_s20 }
 0x203   :  { %v913_v33 = vadd.f32 %v911_v48, %v901_v21 }
 0x204   :  { %v898_v42 = vpop.permute.xlu1 %897  ;;  %v1584_v10 = vpop.permute.xlu0 %1583 }
 0x205   :  { %v902_v61 = vadd.f32 %v898_v42, %v876_v23  ;;  %v1589_v27 = vadd.f32 %v1584_v10, %v1565_v39  ;;  %v1622_v23 = vmul.f32 %v3187_v32, %v910_v31  ;;  %v3688_v42 = vld [vmem:[#allocation82_spill] sm:$0xff]  ;;  %v3691_v32 = vld [vmem:[#allocation43_spill] sm:$0xff] }
 0x206   :  { %691 = vrot.lane.b32.xlu1 %v3677_v47, %s2185_s20  ;;  %727 = vrot.lane.b32.xlu0 %v3678_v26, %s2184_s18  ;;  %v327_v10 = vmul.f32 %v3224_v17, %v3688_v42  ;;  %v328_v18 = vmul.f32 %v3231_v41, %v3688_v42  ;;  %v3692_v17 = vld [vmem:[#allocation44_spill] sm:$0xff] }
 0x207   :  { %v914_v20 = vadd.f32 %v912_v55, %v902_v61  ;;  %v3689_v61 = vld [vmem:[#allocation39_spill] sm:$0xff] }
 0x208   :  { %v1586_v7 = vpop.permute.xlu1 %1585  ;;  %v1596_v59 = vpop.permute.xlu0 %1595 }
 0x209   :  { %v1601_v11 = vadd.f32 %v1596_v59, %v1577_v43  ;;  %v1590_v57 = vadd.f32 %v1586_v7, %v1566_v37  ;;  %v3693_v59 = vld [vmem:[#allocation46_spill] sm:$0xff] }
 0x20a   :  { %729 = vrot.lane.b32.xlu1 %v3681_v38, %s2184_s18  ;;  %753 = vrot.lane.b32.xlu0 %v3682_v60, %s2185_s20 }
 0x20b   :  { %v1619_v30 = vadd.f32 %v1617_v14, %v1601_v11  ;;  %v3694_v11 = vld [vmem:[#allocation47_spill] sm:$0xff] }
 0x20c   :  { %v1598_v36 = vpop.permute.xlu1 %1597  ;;  %v278_v25 = vpop.permute.xlu0 %277 }
 0x20d   :  { %v1602_v8 = vadd.f32 %v1598_v36, %v1578_v54  ;;  %v283_v29 = vadd.f32 %v278_v25, %v265_v63  ;;  %v975_v54 = vmul.f32 %v3250_v62, %v974_v9  ;;  %v3696_v63 = vld [vmem:[#allocation49_spill] sm:$0xff] }
 0x20e   :  { %755 = vrot.lane.b32.xlu1 %v3684_v34, %s2185_s20  ;;  %791 = vrot.lane.b32.xlu0 %v3685_v6, %s2184_s18  ;;  %v3698_v34 = vld [vmem:[#allocation51_spill] sm:$0xff] }
 0x20f   :  { %v1620_v46 = vadd.f32 %v1618_v1, %v1602_v8  ;;  %v976_v1 = vmul.f32 %v3261_v5, %v974_v9 }
 0x210   :  { %v280_v15 = vpop.permute.xlu1 %279  ;;  %v1608_v4 = vpop.permute.xlu0 %1607 }
 0x211   :  { %v284_v3 = vadd.f32 %v280_v15, %v266_v19  ;;  %v1613_v2 = vadd.f32 %v1608_v4, %v1589_v27  ;;  %v3699_v4 = vld [vmem:[#allocation60_spill] sm:$0xff] }
 0x212   :  { %793 = vrot.lane.b32.xlu1 %v3686_v52, %s2184_s18  ;;  %817 = vrot.lane.b32.xlu0 %v3687_v58, %s2185_s20 }
 0x213   :  { %v1623_v21 = vadd.f32 %v1621_v49, %v1613_v2  ;;  %v3701_v2 = vld [vmem:[#allocation53_spill] sm:$0xff] }
 0x214   :  { %v1610_v48 = vpop.permute.xlu1 %1609  ;;  %v304_v40 = vpop.permute.xlu0 %303 }
 0x215   :  { %v1614_v39 = vadd.f32 %v1610_v48, %v1590_v57  ;;  %v309_v28 = vadd.f32 %v304_v40, %v283_v29  ;;  %v3702_v40 = vld [vmem:[#allocation54_spill] sm:$0xff] }
 0x216   :  { %819 = vrot.lane.b32.xlu1 %v3689_v61, %s2185_s20  ;;  %856 = vrot.lane.b32.xlu0 %v3690_v24, %s2184_s18  ;;  %v1679_v24 = vmul.f32 %v3253_v0, %v974_v9 }
 0x217   :  { %v1624_v55 = vadd.f32 %v1622_v23, %v1614_v39  ;;  %v329_v47 = vadd.f32 %v327_v10, %v309_v28 }
 0x218   :  { %v306_v37 = vpop.permute.xlu1 %305  ;;  %v934_v26 = vpop.permute.xlu0 %933 }
 0x219   :  { %v310_v43 = vadd.f32 %v306_v37, %v284_v3  ;;  %v939_v14 = vadd.f32 %v934_v26, %v913_v33  ;;  %v3697_v33 = vld [vmem:[#allocation50_spill] sm:$0xff]  ;;  %v3700_v3 = vld [vmem:[#allocation52_spill] sm:$0xff] }
 0x21a   :  { %858 = vrot.lane.b32.xlu1 %v3691_v32, %s2184_s18  ;;  %882 = vrot.lane.b32.xlu0 %v3692_v17, %s2185_s20  ;;  %v1680_v32 = vmul.f32 %v3266_v22, %v974_v9  ;;  %v3703_v17 = vld [vmem:[#allocation84_spill] sm:$0xff]  ;;  %v3704_v9 = vmov 0.0  }
 0x21b   :  { %v330_v31 = vadd.f32 %v328_v18, %v310_v43  ;;  %2032 = vmatprep.mubr.msk.bf16.mxu0 %vm2187_vm3, %v3704_v9 }
 0x21c   :  { %v936_v56 = vpop.permute.xlu1 %935  ;;  %v1630_v7 = vpop.permute.xlu0 %1629 }
 0x21d   :  { %v940_v12 = vadd.f32 %v936_v56, %v914_v20  ;;  %v1635_v62 = vadd.f32 %v1630_v7, %v1619_v30  ;;  %v1675_v20 = vmul.f32 %v3253_v0, %v3699_v4  ;;  %v1676_v30 = vmul.f32 %v3266_v22, %v3699_v4 }
 0x21e   :  { %884 = vrot.lane.b32.xlu1 %v3693_v59, %s2185_s20  ;;  %920 = vrot.lane.b32.xlu0 %v3694_v11, %s2184_s18  ;;  %v391_v56 = vmul.f32 %v3292_v51, %v3703_v17 }
 0x220   :  { %v1632_v38 = vpop.permute.xlu1 %1631  ;;  %v960_v60 = vpop.permute.xlu0 %959 }
 0x221   :  { %v965_v41 = vadd.f32 %v960_v60, %v939_v14  ;;  %v1636_v5 = vadd.f32 %v1632_v38, %v1620_v46  ;;  %v2071_v60 = vld [vmem:[%s3511_s3] sm:$0xff]  }
 0x222   :  { %922 = vrot.lane.b32.xlu1 %v3695_v53, %s2184_s18  ;;  %946 = vrot.lane.b32.xlu0 %v3696_v63, %s2185_s20 }
 0x223   :  { %v977_v36 = vadd.f32 %v975_v54, %v965_v41  ;;  %2025 = vmatpush3.bf16.msra.mxu0 %v2071_v60 }
 0x224   :  { %v962_v25 = vpop.permute.xlu1 %961  ;;  %v1642_v8 = vpop.permute.xlu0 %1641  ;;  %2026 = vmatprep.subr.bf16.mxu0 %v3704_v9 }
 0x225   :  { %v966_v29 = vadd.f32 %v962_v25, %v940_v12  ;;  %v1647_v39 = vadd.f32 %v1642_v8, %v1623_v21 }
 0x226   :  { %948 = vrot.lane.b32.xlu1 %v3697_v33, %s2185_s20  ;;  %984 = vrot.lane.b32.xlu0 %v3698_v34, %s2184_s18  ;;  %v2073_v33 = vld [vmem:[%s3511_s3 + $0x10] sm:$0xff]  }
 0x227   :  { %v978_v6 = vadd.f32 %v976_v1, %v966_v29 }
 0x228   :  { %v1644_v27 = vpop.permute.xlu1 %1643  ;;  %v1654_v19 = vpop.permute.xlu0 %1653 }
 0x229   :  { %v1659_v15 = vadd.f32 %v1654_v19, %v1635_v62  ;;  %v1648_v46 = vadd.f32 %v1644_v27, %v1624_v55 }
 0x22a   :  { %986 = vrot.lane.b32.xlu1 %v3700_v3, %s2184_s18  ;;  %1010 = vrot.lane.b32.xlu0 %v3701_v2, %s2185_s20 }
 0x22b   :  { %v1677_v49 = vadd.f32 %v1675_v20, %v1659_v15  ;;  %v2074_v20 = vld [vmem:[%s3511_s3 + $0x18] sm:$0xff]  }
 0x22c   :  { %v1656_v52 = vpop.permute.xlu1 %1655  ;;  %v342_v58 = vpop.permute.xlu0 %341 }
 0x22d   :  { %v1660_v57 = vadd.f32 %v1656_v52, %v1636_v5  ;;  %v347_v48 = vadd.f32 %v342_v58, %v329_v47 }
 0x22e   :  { %1012 = vrot.lane.b32.xlu1 %v3702_v40, %s2185_s20 }
 0x22f   :  { %v1678_v28 = vadd.f32 %v1676_v30, %v1660_v57 }
 0x230   :  { %v344_v23 = vpop.permute.xlu1 %343  ;;  %v1666_v42 = vpop.permute.xlu0 %1665 }
 0x231   :  { %v348_v10 = vadd.f32 %v344_v23, %v330_v31  ;;  %v1671_v61 = vadd.f32 %v1666_v42, %v1647_v39  ;;  %v392_v31 = vmul.f32 %v3300_v35, %v3703_v17  ;;  %v2072_v35 = vld [vmem:[%s3511_s3 + $0x8] sm:$0xff]   ;;  %v3705_v39 = vld [vmem:[#allocation86_spill] sm:$0xff]  ;;  %s2189_s3 = smov 48  }
 0x232   :  { %2027 = vmatpush3.bf16.msra.mxu0 %v2072_v35  ;;  %v3708_v35 = vld [vmem:[#allocation63_spill] sm:$0xff] }
 0x233   :  { %v1681_v37 = vadd.f32 %v1679_v24, %v1671_v61  ;;  %2028 = vmatprep.subr.bf16.mxu0 %v3704_v9 }
 0x234   :  { %v1668_v26 = vpop.permute.xlu1 %1667  ;;  %v368_v43 = vpop.permute.xlu0 %367 }
 0x235   :  { %v1672_v18 = vadd.f32 %v1668_v26, %v1648_v46  ;;  %v373_v47 = vadd.f32 %v368_v43, %v347_v48  ;;  %v457_v46 = vmul.f32 %v3326_v45, %v3705_v39 }
 0x236   :  { %2029 = vmatpush3.bf16.msra.mxu0 %v2073_v33  ;;  %v3709_v33 = vld [vmem:[#allocation64_spill] sm:$0xff] }
 0x237   :  { %v1682_v7 = vadd.f32 %v1680_v32, %v1672_v18  ;;  %v393_v21 = vadd.f32 %v391_v56, %v373_v47  ;;  %2030 = vmatprep.subr.bf16.mxu0 %v3704_v9  ;;  %v520_v32 = vmul.f32 %v3336_v50, %v3016_v44 }
 0x238   :  { %v370_v59 = vpop.permute.xlu1 %369  ;;  %v998_v11 = vpop.permute.xlu0 %997 }
 0x239   :  { %v374_v14 = vadd.f32 %v370_v59, %v348_v10  ;;  %v1003_v51 = vadd.f32 %v998_v11, %v977_v36  ;;  %v521_v59 = vmul.f32 %v3342_v16, %v3016_v44 }
 0x23a   :  { %2031 = vmatpush3.bf16.msra.mxu0 %v2074_v20 }
 0x23b   :  { %v394_v0 = vadd.f32 %v392_v31, %v374_v14 }
 0x23c   :  { %v1000_v55 = vpop.permute.xlu1 %999  ;;  %v1688_v38 = vpop.permute.xlu0 %1687 }
 0x23d   :  { %v1004_v54 = vadd.f32 %v1000_v55, %v978_v6  ;;  %v1693_v36 = vadd.f32 %v1688_v38, %v1677_v49  ;;  %v3706_v38 = vld [vmem:[#allocation61_spill] sm:$0xff] }
 0x240   :  { %v1690_v41 = vpop.permute.xlu1 %1689  ;;  %v1024_v22 = vpop.permute.xlu0 %1023 }
 0x241   :  { %v1029_v12 = vadd.f32 %v1024_v22, %v1003_v51  ;;  %v1694_v34 = vadd.f32 %v1690_v41, %v1678_v28  ;;  %v456_v28 = vmul.f32 %v3320_v13, %v3705_v39  ;;  %v3707_v51 = vld [vmem:[#allocation62_spill] sm:$0xff] }
 0x244   :  { %v1026_v53 = vpop.permute.xlu1 %1025  ;;  %v1700_v63 = vpop.permute.xlu0 %1699 }
 0x245   :  { %v1030_v25 = vadd.f32 %v1026_v53, %v1004_v54  ;;  %v1705_v49 = vadd.f32 %v1700_v63, %v1681_v37 }
 0x247   :  { %v2056_v8 = vpack.i.bf16 %v1030_v25, %v1029_v12 }
 0x248   :  { %v1702_v29 = vpop.permute.xlu1 %1701  ;;  %v1712_v1 = vpop.permute.xlu0 %1711 }
 0x249   :  { %2057 = vrot.lane.b32.xlu0 %v2056_v8, %s2186_s23  ;;  %v1717_v27 = vadd.f32 %v1712_v1, %v1693_v36  ;;  %v1706_v52 = vadd.f32 %v1702_v29, %v1682_v7 }
 0x24c   :  { %v1714_v62 = vpop.permute.xlu1 %1713  ;;  %v406_v6 = vpop.permute.xlu0 %405 }
 0x24d   :  { %v1718_v19 = vadd.f32 %v1714_v62, %v1694_v34  ;;  %v411_v15 = vadd.f32 %v406_v6, %v393_v21 }
 0x24f   :  { %v2061_v4 = vpack.i.bf16 %v1718_v19, %v1717_v27  ;;  %v3710_v19 = vld [vmem:[#allocation65_spill] sm:$0xff] }
 0x250   :  { %v408_v3 = vpop.permute.xlu1 %407  ;;  %v1724_v2 = vpop.permute.xlu0 %1723 }
 0x251   :  { %v412_v5 = vadd.f32 %v408_v3, %v394_v0  ;;  %2062 = vrot.lane.b32.xlu1 %v2061_v4, %s2188_s26  ;;  %v1729_v48 = vadd.f32 %v1724_v2, %v1705_v49 }
 0x254   :  { %v1726_v58 = vpop.permute.xlu1 %1725  ;;  %v432_v57 = vpop.permute.xlu0 %431 }
 0x255   :  { %v1730_v30 = vadd.f32 %v1726_v58, %v1706_v52  ;;  %v437_v40 = vadd.f32 %v432_v57, %v411_v15 }
 0x257   :  { %v2066_v23 = vpack.i.bf16 %v1730_v30, %v1729_v48  ;;  %v458_v42 = vadd.f32 %v456_v28, %v437_v40  ;;  %v3712_v30 = vld [vmem:[#allocation67_spill] sm:$0xff] }
 0x258   :  { %v434_v10 = vpop.permute.xlu1 %433  ;;  %v471_v61 = vpop.permute.xlu0 %470 }
 0x259   :  { %v438_v24 = vadd.f32 %v434_v10, %v412_v5  ;;  %2067 = vrot.lane.b32.xlu0 %v2066_v23, %s2189_s3  ;;  %v476_v37 = vadd.f32 %v471_v61, %v458_v42  ;;  %v3711_v5 = vld [vmem:[#allocation66_spill] sm:$0xff]  ;;  %v3713_v10 = vld [vmem:[#allocation68_spill] sm:$0xff] }
 0x25b   :  { %v459_v26 = vadd.f32 %v457_v46, %v438_v24 }
 0x25c   :  { %v473_v43 = vpop.permute.xlu1 %472  ;;  %v497_v18 = vpop.permute.xlu0 %496 }
 0x25d   :  { %v502_v47 = vadd.f32 %v497_v18, %v476_v37  ;;  %v477_v17 = vadd.f32 %v473_v43, %v459_v26  ;;  %v3714_v43 = vld [vmem:[#allocation69_spill] sm:$0xff] }
 0x25f   :  { %v522_v13 = vadd.f32 %v520_v32, %v502_v47 }
 0x260   :  { %v499_v56 = vpop.permute.xlu1 %498  ;;  %v535_v7 = vpop.permute.xlu0 %534 }
 0x261   :  { %v503_v21 = vadd.f32 %v499_v56, %v477_v17  ;;  %v540_v11 = vadd.f32 %v535_v7, %v522_v13  ;;  %v3715_v56 = vld [vmem:[#allocation70_spill] sm:$0xff] }
 0x263   :  { %v523_v14 = vadd.f32 %v521_v59, %v503_v21 }
 0x264   :  { %v537_v31 = vpop.permute.xlu1 %536  ;;  %v561_v45 = vpop.permute.xlu0 %560 }
 0x265   :  { %v566_v0 = vadd.f32 %v561_v45, %v540_v11  ;;  %v541_v55 = vadd.f32 %v537_v31, %v523_v14  ;;  %v3716_v31 = vld [vmem:[#allocation71_spill] sm:$0xff] }
 0x267   :  { %v586_v60 = vadd.f32 %v3706_v38, %v566_v0 }
 0x268   :  { %v563_v41 = vpop.permute.xlu1 %562  ;;  %v599_v22 = vpop.permute.xlu0 %598 }
 0x269   :  { %v567_v9 = vadd.f32 %v563_v41, %v541_v55  ;;  %v604_v50 = vadd.f32 %v599_v22, %v586_v60  ;;  %v3717_v41 = vld [vmem:[#allocation72_spill] sm:$0xff] }
 0x26b   :  { %v587_v54 = vadd.f32 %v3707_v51, %v567_v9 }
 0x26c   :  { %v601_v53 = vpop.permute.xlu1 %600  ;;  %v625_v63 = vpop.permute.xlu0 %624 }
 0x26d   :  { %v630_v12 = vadd.f32 %v625_v63, %v604_v50  ;;  %v605_v25 = vadd.f32 %v601_v53, %v587_v54  ;;  %v3718_v53 = vld [vmem:[#allocation73_spill] sm:$0xff] }
 0x26f   :  { %v651_v44 = vadd.f32 %v3708_v35, %v630_v12  ;;  %v3719_v35 = vld [vmem:[#allocation74_spill] sm:$0xff] }
 0x270   :  { %v627_v16 = vpop.permute.xlu1 %626  ;;  %v664_v8 = vpop.permute.xlu0 %663 }
 0x271   :  { %v631_v29 = vadd.f32 %v627_v16, %v605_v25  ;;  %v669_v1 = vadd.f32 %v664_v8, %v651_v44 }
 0x273   :  { %v652_v36 = vadd.f32 %v3709_v33, %v631_v29 }
 0x274   :  { %v666_v34 = vpop.permute.xlu1 %665  ;;  %v690_v62 = vpop.permute.xlu0 %689 }
 0x275   :  { %v695_v6 = vadd.f32 %v690_v62, %v669_v1  ;;  %v670_v27 = vadd.f32 %v666_v34, %v652_v36 }
 0x277   :  { %v715_v15 = vadd.f32 %v3710_v19, %v695_v6 }
 0x278   :  { %v692_v4 = vpop.permute.xlu1 %691  ;;  %v728_v20 = vpop.permute.xlu0 %727 }
 0x279   :  { %v696_v3 = vadd.f32 %v692_v4, %v670_v27  ;;  %v733_v2 = vadd.f32 %v728_v20, %v715_v15 }
 0x27b   :  { %v716_v49 = vadd.f32 %v3711_v5, %v696_v3 }
 0x27c   :  { %v730_v52 = vpop.permute.xlu1 %729  ;;  %v754_v58 = vpop.permute.xlu0 %753 }
 0x27d   :  { %v759_v57 = vadd.f32 %v754_v58, %v733_v2  ;;  %v734_v48 = vadd.f32 %v730_v52, %v716_v49 }
 0x27f   :  { %v779_v40 = vadd.f32 %v3712_v30, %v759_v57 }
 0x280   :  { %v756_v39 = vpop.permute.xlu1 %755  ;;  %v792_v28 = vpop.permute.xlu0 %791 }
 0x281   :  { %v760_v23 = vadd.f32 %v756_v39, %v734_v48  ;;  %v797_v42 = vadd.f32 %v792_v28, %v779_v40  ;;  %v2075_v39 = vld [vmem:[%s3512_s4] sm:$0xff]  }
 0x282   :  { %2038 = vmatprep.mubr.msk.bf16.mxu1 %vm1755_vm4, %v2075_v39 }
 0x283   :  { %v780_v61 = vadd.f32 %v3713_v10, %v760_v23 }
 0x284   :  { %v794_v24 = vpop.permute.xlu1 %793  ;;  %v818_v46 = vpop.permute.xlu0 %817 }
 0x285   :  { %v823_v37 = vadd.f32 %v818_v46, %v797_v42  ;;  %v798_v26 = vadd.f32 %v794_v24, %v780_v61  ;;  %v2076_v24 = vld [vmem:[%s3512_s4 + $0x8] sm:$0xff]  }
 0x287   :  { %v844_v18 = vadd.f32 %v3714_v43, %v823_v37 }
 0x288   :  { %v820_v47 = vpop.permute.xlu1 %819  ;;  %v857_v32 = vpop.permute.xlu0 %856 }
 0x289   :  { %v824_v17 = vadd.f32 %v820_v47, %v798_v26  ;;  %v862_v13 = vadd.f32 %v857_v32, %v844_v18 }
 0x28b   :  { %v845_v7 = vadd.f32 %v3715_v56, %v824_v17 }
 0x28c   :  { %v859_v21 = vpop.permute.xlu1 %858  ;;  %v883_v59 = vpop.permute.xlu0 %882 }
 0x28d   :  { %v888_v11 = vadd.f32 %v883_v59, %v862_v13  ;;  %v863_v14 = vadd.f32 %v859_v21, %v845_v7 }
 0x28f   :  { %v908_v45 = vadd.f32 %v3716_v31, %v888_v11 }
 0x290   :  { %v885_v0 = vpop.permute.xlu1 %884  ;;  %v921_v55 = vpop.permute.xlu0 %920 }
 0x291   :  { %v889_v38 = vadd.f32 %v885_v0, %v863_v14  ;;  %v926_v60 = vadd.f32 %v921_v55, %v908_v45 }
 0x293   :  { %v909_v22 = vadd.f32 %v3717_v41, %v889_v38 }
 0x294   :  { %v923_v9 = vpop.permute.xlu1 %922  ;;  %v947_v50 = vpop.permute.xlu0 %946 }
 0x295   :  { %v952_v51 = vadd.f32 %v947_v50, %v926_v60  ;;  %v927_v54 = vadd.f32 %v923_v9, %v909_v22 }
 0x297   :  { %v972_v63 = vadd.f32 %v3718_v53, %v952_v51 }
 0x298   :  { %v949_v12 = vpop.permute.xlu1 %948  ;;  %v985_v16 = vpop.permute.xlu0 %984 }
 0x299   :  { %v953_v25 = vadd.f32 %v949_v12, %v927_v54  ;;  %v990_v34 = vadd.f32 %v985_v16, %v972_v63 }
 0x29b   :  { %v973_v44 = vadd.f32 %v3719_v35, %v953_v25 }
 0x29c   :  { %v987_v8 = vpop.permute.xlu1 %986  ;;  %v1011_v29 = vpop.permute.xlu0 %1010 }
 0x29d   :  { %v991_v62 = vadd.f32 %v987_v8, %v973_v44  ;;  %v1016_v4 = vadd.f32 %v1011_v29, %v990_v34 }
 0x2a0   :  { %v1013_v1 = vpop.permute.xlu1 %1012 }
 0x2a1   :  { %v1017_v20 = vadd.f32 %v1013_v1, %v991_v62 }
 0x2bb   :  { %v2058_v33 = vpop.permute.xlu0 %2057 }
 0x2bc   :  { %v2060_v6 = vunpack.i.h.bf16 %v2058_v33  ;;  %v2059_v27 = vunpack.i.l.bf16 %v2058_v33 }
 0x2be   :  { %v1757_v2 = vsel %vm1755_vm4, %v1017_v20, %v2060_v6  ;;  %v1756_v5 = vsel %vm1755_vm4, %v1016_v4, %v2059_v27 }
 0x2c3   :  { %v2063_v36 = vpop.permute.xlu1 %2062 }
 0x2c4   :  { %v2065_v19 = vunpack.i.h.bf16 %v2063_v36  ;;  %v2064_v15 = vunpack.i.l.bf16 %v2063_v36 }
 0x2c6   :  { %v1759_v58 = vsel %vm1758_vm5, %v1756_v5, %v2064_v15  ;;  %v1760_v57 = vsel %vm1758_vm5, %v1757_v2, %v2065_v19 }
 0x2cb   :  { %v2068_v3 = vpop.permute.xlu0 %2067 }
 0x2cc   :  { %v2070_v49 = vunpack.i.h.bf16 %v2068_v3  ;;  %v2069_v52 = vunpack.i.l.bf16 %v2068_v3 }
 0x2ce   :  { %v1762_v48 = vsel %vm1761_vm6, %v1759_v58, %v2069_v52  ;;  %v1763_v30 = vsel %vm1761_vm6, %v1760_v57, %v2070_v49 }
 0x2cf   :  { %v1764_v40 = vpack.c.bf16 %v1763_v30, %v1762_v48 }
 0x2d1   :  { %2033 = vmatmul.mubr.msk.bf16.vlgmr.msra.gmra.mrb[0].mxu0 %vm1797_vm7, %v1764_v40 }
 0x3a4   :  { %v1835_v28 = vpop.f32.mrb[0].mxu0 }
 0x3a5   :  { %v2034_v23 = vpop.f32.mrb[1].mxu0 }
 0x3a6   :  { %v1838_v42 = vpop.f32.mrb[2].mxu0 }
 0x3a7   :  { %v1846_v10 = vpack.c.bf16 %v1838_v42, %v1835_v28  ;;  %v2035_v61 = vpop.f32.mrb[3].mxu0 }
 0x3a9   :  { %2036 = vmatprep.subr.bf16.mxu1 %v1846_v10 }
 0x3aa   :  { %2037 = vmatpush3.bf16.msra.mxu1 %v1846_v10 }
 0x3ad   :  { %2039 = vmatmul.mubr.msk.bf16.vlgmr.msra.gmra.mrb[0].mxu1 %vm1755_vm4, %v2076_v24 }
 0x480   :  { %v2040_v46 = vpop.f32.mrb[0].mxu1 }
 0x481   :  { %1914 = vst [vmem:[#allocation10 + $0x10] sm:$0xff] %v2040_v46  ;;  %v1897_v37 = vpop.f32.mrb[1].mxu1 }
 0x482   :  { %1912 = vst [vmem:[#allocation10] sm:$0xff] %v1897_v37  ;;  %v2041_v26 = vpop.f32.mrb[2].mxu1 }
 0x483   :  { %1915 = vst [vmem:[#allocation10 + $0x18] sm:$0xff] %v2041_v26  ;;  %v1900_v43 = vpop.f32.mrb[3].mxu1 }
 0x484   :  { %1913 = vst [vmem:[#allocation10 + $0x8] sm:$0xff] %v1900_v43 }
 0x485   :  { %2158 = shalt.err (!%p2155_p8)
}
 0x486   :  { %s2159_s8 = scalar_lea.hbm %s3513_s5, 512 }
 0x487   :  { %p2160_p9 = scmp.ne.s32.totalorder %s3513_s5, %s2159_s8  ;;  %p2163_p10 = scmp.lt.u32.totalorder %s2159_s8, %s3513_s5 }
 0x489   :  { %p2165_p11 = pnand %p2163_p10, %p2160_p9 }
 0x48b   :  { %2168 = shalt.err (!%p2165_p11)
}
 0x48c   :  { %1927 = dma.vmem_to_hbm [thread:$0]  %s1922_s30, 512, %s3513_s5, [#allocation5], %s2180_s11, %s2180_s11, %s2181_s12  }
 0x48d   :  { %2175 = dma.done.wait [#allocation5], 512  }
 0x48e   :  { %2176 = vsyncadd [#allocation5], 4294966784 }
 0x48f   :  { %1931 = vsyncpa [#allocation4], 1 }
 0x490   :  { %1932 = vsyncpa [#allocation5], 1 }
 0x491   :  { %1933 = vsyncpa [#allocation6], 1 }
 0x492   :  { %1934 = vsyncpa [#allocation8], 1 }

</bundles_post_ra>
